<compile_context>
chip_gen: v6e
topology: v6e:2x2x1
jax: 0.10.0
libtpu: 0.0.40
codegen_flags: <defaults>
</compile_context>

<pallas_src>
import functools

import numpy as np
import jax
import jax.numpy as jnp
from jax.experimental import pallas as pl
from jax.experimental.pallas import tpu as pltpu

VAE_LATENT_DIM = 16


# ----------------------------------------------------------------------------
# Wrapper-side weight preparation: fold every conv / conv-transpose kernel into
# per-kernel-row "banded" matrices mapping (input_width*in_ch) -> (out_width*out_ch)
# lanes.  Column taps, W padding, W stride and output_padding live in these
# matrices; row taps are handled by row-phase slices inside the kernel.
# ----------------------------------------------------------------------------
def _conv_placement(kw, w_in, w_out, stride, pad):
    """P[kj, wi, wo] = 1 iff forward-conv output column wo reads input wi with tap kj."""
    p = np.zeros((kw, w_in, w_out), np.float32)
    for kj in range(kw):
        for wo in range(w_out):
            wi = stride * wo + kj - pad
            if 0 <= wi < w_in:
                p[kj, wi, wo] = 1.0
    return p


def _convT_placement(kw, w_in, w_out, stride, pad):
    """P[kj, wi, wo] = 1 iff transposed-conv input column wi writes output wo with tap kj."""
    p = np.zeros((kw, w_in, w_out), np.float32)
    for kj in range(kw):
        for wi in range(w_in):
            wo = stride * wi + kj - pad
            if 0 <= wo < w_out:
                p[kj, wi, wo] = 1.0
    return p


def _banded(p, w_kio):
    """(KW, Win, Wout) placement x (KW, IC, OC) taps -> (Win*IC, Wout*OC)."""
    kw, w_in, w_out = p.shape
    ic, oc = w_kio.shape[1], w_kio.shape[2]
    r = jnp.einsum("jwq,jio->wiqo", jnp.asarray(p, w_kio.dtype), w_kio)
    return r.reshape(w_in * ic, w_out * oc)


def _prepare_weights(params, wdtype=jnp.bfloat16):
    f32 = jnp.float32
    p1 = _conv_placement(3, 28, 14, 2, 1)     # conv1: 28 -> 14, stride 2, pad 1
    p2 = _conv_placement(3, 14, 7, 2, 1)      # conv2: 14 -> 7
    p3 = _conv_placement(7, 7, 1, 1, 0)       # enc3 : 7  -> 1 (valid)
    pt2 = _convT_placement(3, 7, 14, 2, 1)    # dec2 : 7  -> 14
    pt3 = _convT_placement(3, 14, 28, 2, 1)   # dec3 : 14 -> 28

    def conv_taps(p, w):          # w: (OC, IC, KH, KW)  (PyTorch Conv2d layout)
        return jnp.stack([_banded(p, jnp.transpose(w[:, :, ki, :], (2, 1, 0)))
                          for ki in range(w.shape[2])])

    def convT_taps(p, w, order):  # w: (IC, OC, KH, KW)  (PyTorch ConvTranspose2d layout)
        return jnp.stack([_banded(p, jnp.transpose(w[:, :, ki, :], (2, 0, 1)))
                          for ki in order])

    # conv1: fold the 3 row taps along K into one (128, 224) matrix; the packed
    # input slab presents [tap0 | tap1 | tap2 | 0-pad] in 128 lanes per phase.
    w1t = conv_taps(p1, params["enc1_w"])                                      # (3, 28, 224)
    w1s = jnp.concatenate([w1t[0], w1t[1], w1t[2], jnp.zeros((44, 224), f32)], axis=0)

    return dict(
        w1s=w1s.astype(wdtype),                                                # (128, 224)
        b1=jnp.tile(params["enc1_b"], 14).reshape(1, -1).astype(f32),          # (1, 224)
        w2=conv_taps(p2, params["enc2_w"]).astype(wdtype),                     # (3, 224, 224)
        b2=jnp.tile(params["enc2_b"], 7).reshape(1, -1).astype(f32),           # (1, 224)
        w3=conv_taps(p3, params["enc3_w"]).astype(wdtype),                     # (7, 224, 64)
        b3=params["enc3_b"].reshape(1, -1).astype(f32),                        # (1, 64)
        # fc_mu / fc_logvar / fc_decode stay f32 (tiny; logvar feeds exp()).
        wmulv=jnp.concatenate([params["fc_mu_w"].T,
                               params["fc_logvar_w"].T], axis=1).astype(f32),  # (64, 2L)
        bmulv=jnp.concatenate([params["fc_mu_b"],
                               params["fc_logvar_b"]]).reshape(1, -1).astype(f32),
        wdec=params["fc_dec_w"].T.astype(f32),                                 # (L, 64)
        bdec=params["fc_dec_b"].reshape(1, -1).astype(f32),                    # (1, 64)
        wd1=jnp.stack([jnp.transpose(params["dec1_w"][:, :, i, :], (0, 2, 1)).reshape(64, -1)
                       for i in range(7)]).astype(wdtype),                     # (7, 64, 224)
        bd1=jnp.tile(params["dec1_b"], 7).reshape(1, -1).astype(f32),          # (1, 224)
        m2=convT_taps(pt2, params["dec2_w"], (1, 0, 2)).astype(wdtype),        # (3, 224, 224)
        bd2=jnp.tile(params["dec2_b"], 14).reshape(1, -1).astype(f32),         # (1, 224)
        m3=convT_taps(pt3, params["dec3_w"], (1, 0, 2)).astype(wdtype),        # (3, 224, 28)
        bd3=jnp.tile(params["dec3_b"], 28).reshape(1, -1).astype(f32),         # (1, 28)
    )


# ----------------------------------------------------------------------------
# The fused Pallas kernel: S samples per grid step.
# Activation layout: (rows*S, lanes) with row index = r*S + s.
# ----------------------------------------------------------------------------
def _vae_fused_kernel(
    S, L,
    pin_ref, eps_ref,
    w1s_ref, b1_ref, w2_ref, b2_ref, w3_ref, b3_ref,
    wmulv_ref, bmulv_ref, wdec_ref, bdec_ref,
    wd1_ref, bd1_ref, m2_ref, bd2_ref, m3_ref, bd3_ref,
    stats_ref, img_ref,
):
    f32 = jnp.float32
    bf16 = jnp.bfloat16
    R7 = 7 * S

    def mm(a, w):  # MXU matmul, f32 accumulation (operands already bf16 or f32)
        return jnp.dot(a, w, preferred_element_type=f32)

    relu = lambda v: jnp.maximum(v, 0.0)

    def down1(x):  # out[r] = x[r-1] (per row-phase block), out[0] = 0
        return jnp.concatenate([jnp.zeros((S, x.shape[1]), x.dtype), x[:6 * S]], axis=0)

    def up1(x):    # out[r] = x[r+1], out[6] = 0
        return jnp.concatenate([x[S:7 * S], jnp.zeros((S, x.shape[1]), x.dtype)], axis=0)

    # ---- conv1 (1->16, 3x3, stride 2, pad 1): 28x28 -> 14x14 ----------------
    # Row taps are pre-packed along lanes in the input slab: lanes [0:128) hold
    # the even-output-row taps, lanes [128:256) the odd-output-row taps, both
    # multiplied by the same stacked (128, 224) banded matrix.
    pin = pin_ref[...]                                   # (8S, 256) bf16
    w1s = w1s_ref[...]
    b1 = b1_ref[...]
    h1_even = relu(mm(pin[:R7, 0:128], w1s) + b1).astype(bf16)     # (7S, 224) rows 0,2,..,12
    h1_odd = relu(mm(pin[:R7, 128:256], w1s) + b1).astype(bf16)    # (7S, 224) rows 1,3,..,13

    # ---- conv2 (16->32, 3x3, stride 2, pad 1): 14x14 -> 7x7 -----------------
    h2 = relu(mm(down1(h1_odd), w2_ref[0]) + mm(h1_even, w2_ref[1])
              + mm(h1_odd, w2_ref[2]) + b2_ref[...]).astype(bf16)  # (7S, 7*32)

    # ---- enc3 (32->64, 7x7 valid) == 7 row-block matmuls summed --------------
    feat = mm(h2[0:S], w3_ref[0])
    for ki in range(1, 7):
        feat = feat + mm(h2[ki * S:(ki + 1) * S], w3_ref[ki])
    feat = feat + b3_ref[...]                                      # (S, 64) f32

    # ---- fc_mu + fc_logvar (fused, f32), reparameterize, fc_decode (f32) ----
    stats = mm(feat, wmulv_ref[...]) + bmulv_ref[...]              # (S, 2L)
    stats_ref[...] = stats
    mu = stats[:, 0:L]
    logvar = stats[:, L:2 * L]
    z = mu + eps_ref[...] * jnp.exp(0.5 * logvar)
    zdec = mm(z, wdec_ref[...]) + bdec_ref[...]                    # (S, 64) f32
    zdec_b = zdec.astype(bf16)

    # ---- dec1 (ConvTranspose 64->32, 7x7 on 1x1 input) == 7 row matmuls -----
    bd1 = bd1_ref[...]
    hd1 = jnp.concatenate([relu(mm(zdec_b, wd1_ref[i]) + bd1) for i in range(7)],
                          axis=0).astype(bf16)                     # (7S, 224)

    # ---- dec2 (ConvTranspose 32->16, 3x3, stride 2, pad 1, op 1): 7 -> 14 ---
    bd2 = bd2_ref[...]
    d2_even = relu(mm(hd1, m2_ref[0]) + bd2).astype(bf16)                        # rows 0,2,..,12
    d2_odd = relu(mm(up1(hd1), m2_ref[1]) + mm(hd1, m2_ref[2]) + bd2).astype(bf16)  # rows 1,3,..,13

    # ---- dec3 (ConvTranspose 16->1, 3x3, stride 2) + sigmoid: 14 -> 28 ------
    # Four output-row phases packed along lanes, padded to 128 lanes (lane-dense store).
    bd3 = bd3_ref[...]
    o0 = mm(d2_even, m3_ref[0]) + bd3                              # rows 4m
    o1 = mm(d2_odd, m3_ref[1]) + mm(d2_even, m3_ref[2]) + bd3      # rows 4m+1
    o2 = mm(d2_odd, m3_ref[0]) + bd3                               # rows 4m+2
    o3 = mm(up1(d2_even), m3_ref[1]) + mm(d2_odd, m3_ref[2]) + bd3  # rows 4m+3
    img_ref[...] = jnp.concatenate(
        [jax.nn.sigmoid(o0), jax.nn.sigmoid(o1), jax.nn.sigmoid(o2), jax.nn.sigmoid(o3),
         jnp.zeros((R7, 16), f32)], axis=-1)                        # (7S, 128)


# ----------------------------------------------------------------------------
# Forward wrapper
# ----------------------------------------------------------------------------
def vae_forward(params, x_nchw, eps, samples_per_step=32):
    """x_nchw: (B, 1, 28, 28) f32; eps: (B, latent) reparameterization noise.

    samples_per_step ~32 targets M~224 (v6e/v7x 256-row MXU); use ~16 on v5e.
    """
    f32 = jnp.float32
    B = x_nchw.shape[0]
    L = eps.shape[-1]

    # Samples per grid step: multiple of 16 (bf16 sublane tile) and no larger
    # than the next multiple of 16 above B (avoid gross padding for tiny B).
    S = min(samples_per_step, 16 * pl.cdiv(B, 16))
    S = max(16, 16 * (S // 16))
    G = pl.cdiv(B, S)
    Bp = G * S

    prep = _prepare_weights(params)

    # ---- pack the input: mod-4 row phases of the H-padded image, laid out as
    # [even-taps | pad | odd-taps | pad] in 256 lanes, one bf16 slab per step.
    xh = x_nchw[:, 0, :, :].astype(f32)                           # (B, 28, 28)
    eps_p = eps.astype(f32)
    if Bp != B:
        xh = jnp.concatenate([xh, jnp.zeros((Bp - B, 28, 28), f32)], axis=0)
        eps_p = jnp.concatenate([eps_p, jnp.zeros((Bp - B, L), f32)], axis=0)

    z1 = jnp.zeros((Bp, 1, 28), f32)
    xp0 = jnp.concatenate([z1, xh[:, 3::4, :]], axis=1)           # padded rows 4m   (Bp, 8, 28)
    xp1 = jnp.concatenate([xh[:, 0::4, :], z1], axis=1)           # padded rows 4m+1 (row 7 unused)
    xp2 = jnp.concatenate([xh[:, 1::4, :], z1], axis=1)           # padded rows 4m+2
    xp3 = jnp.concatenate([xh[:, 2::4, :], z1], axis=1)           # padded rows 4m+3
    xp0s = jnp.concatenate([xp0[:, 1:, :], z1], axis=1)           # xp0 shifted up one row
    zpad = jnp.zeros((Bp, 8, 44), f32)
    slab = jnp.concatenate([xp0, xp1, xp2, zpad,                  # even-row taps 0,1,2
                            xp2, xp3, xp0s, zpad], axis=-1)       # odd-row  taps 0,1,2
    slab = slab.astype(jnp.bfloat16)
    # -> per-step layout (8S, 256) with row index = r*S + s
    slab = slab.reshape(G, S, 8, 256).transpose(0, 2, 1, 3).reshape(G, 8 * S, 256)
    eps_g = eps_p.reshape(G, S, L)

    weights = [prep[k] for k in ("w1s", "b1", "w2", "b2", "w3", "b3",
                                 "wmulv", "bmulv", "wdec", "bdec",
                                 "wd1", "bd1", "m2", "bd2", "m3", "bd3")]

    def per_step(shape):
        nd = len(shape)
        return pl.BlockSpec((None,) + shape, lambda g: (g,) + (0,) * nd)

    def whole(arr):
        nd = arr.ndim
        return pl.BlockSpec(arr.shape, lambda g: (0,) * nd)

    grid_spec = pltpu.PrefetchScalarGridSpec(
        num_scalar_prefetch=0,
        grid=(G,),
        in_specs=[per_step((8 * S, 256)), per_step((S, L))] + [whole(w) for w in weights],
        out_specs=[per_step((S, 2 * L)), per_step((7 * S, 128))],
    )

    kernel = functools.partial(_vae_fused_kernel, S, L)
    stats, img = pl.pallas_call(
        kernel,
        grid_spec=grid_spec,
        out_shape=(jax.ShapeDtypeStruct((G, S, 2 * L), f32),
                   jax.ShapeDtypeStruct((G, 7 * S, 128), f32)),
        compiler_params=pltpu.CompilerParams(dimension_semantics=("parallel",)),
    )(slab, eps_g, *weights)

    stats = stats.reshape(Bp, 2 * L)[:B]
    mu, logvar = stats[:, :L], stats[:, L:]
    # rows come out phase-packed (r, [4r, 4r+1, 4r+2, 4r+3] along lanes) -> reshape.
    img = img.reshape(G, 7, S, 128).transpose(0, 2, 1, 3).reshape(Bp, 7, 128)[:B, :, :112]
    x_recon = img.reshape(B, 1, 28, 28)
    return x_recon, mu, logvar


# ----------------------------------------------------------------------------
# Pure-JAX/XLA reference of the same module (runtime cross-check)
# ----------------------------------------------------------------------------
def _ref_forward(params, x, eps):
    dn = ("NCHW", "OIHW", "NCHW")

    def conv(h, w, b, stride, pad):
        return jax.lax.conv_general_dilated(
            h, w, (stride, stride), [(pad, pad), (pad, pad)],
            dimension_numbers=dn) + b[None, :, None, None]

    def convT(h, w, b, stride, pad, outpad):
        k = w.shape[2]
        w_flip = jnp.transpose(jnp.flip(w, (2, 3)), (1, 0, 2, 3))
        lo, hi = k - 1 - pad, k - 1 - pad + outpad
        return jax.lax.conv_general_dilated(
            h, w_flip, (1, 1), [(lo, hi), (lo, hi)],
            lhs_dilation=(stride, stride), dimension_numbers=dn) + b[None, :, None, None]

    h = jax.nn.relu(conv(x, params["enc1_w"], params["enc1_b"], 2, 1))
    h = jax.nn.relu(conv(h, params["enc2_w"], params["enc2_b"], 2, 1))
    h = conv(h, params["enc3_w"], params["enc3_b"], 1, 0)
    feat = h.reshape(h.shape[0], 64)
    mu = feat @ params["fc_mu_w"].T + params["fc_mu_b"]
    logvar = feat @ params["fc_logvar_w"].T + params["fc_logvar_b"]
    z = mu + eps * jnp.exp(0.5 * logvar)
    d = (z @ params["fc_dec_w"].T + params["fc_dec_b"]).reshape(-1, 64, 1, 1)
    h = jax.nn.relu(convT(d, params["dec1_w"], params["dec1_b"], 1, 0, 0))
    h = jax.nn.relu(convT(h, params["dec2_w"], params["dec2_b"], 2, 1, 1))
    x_recon = jax.nn.sigmoid(convT(h, params["dec3_w"], params["dec3_b"], 2, 1, 1))
    return x_recon, mu, logvar


# ----------------------------------------------------------------------------
# Deterministic parameter init (shapes from the PyTorch __init__; img_size=28)
# ----------------------------------------------------------------------------
def init_params(key, latent_dim):
    ks = jax.random.split(key, 18)

    def u(k, shape, fan_in):
        bound = 1.0 / (fan_in ** 0.5)
        return jax.random.uniform(k, shape, jnp.float32, -bound, bound)

    out2 = 7  # ((28-1)//2+1 - 1)//2 + 1
    return {
        "enc1_w": u(ks[0], (16, 1, 3, 3), 1 * 9),   "enc1_b": u(ks[1], (16,), 1 * 9),
        "enc2_w": u(ks[2], (32, 16, 3, 3), 16 * 9), "enc2_b": u(ks[3], (32,), 16 * 9),
        "enc3_w": u(ks[4], (64, 32, out2, out2), 32 * out2 * out2),
        "enc3_b": u(ks[5], (64,), 32 * out2 * out2),
        "fc_mu_w": u(ks[6], (latent_dim, 64), 64),  "fc_mu_b": u(ks[7], (latent_dim,), 64),
        "fc_logvar_w": u(ks[8], (latent_dim, 64), 64),
        "fc_logvar_b": u(ks[9], (latent_dim,), 64),
        "fc_dec_w": u(ks[10], (64, latent_dim), latent_dim),
        "fc_dec_b": u(ks[11], (64,), latent_dim),
        "dec1_w": u(ks[12], (64, 32, out2, out2), 64 * out2 * out2),
        "dec1_b": u(ks[13], (32,), 64 * out2 * out2),
        "dec2_w": u(ks[14], (32, 16, 3, 3), 32 * 9), "dec2_b": u(ks[15], (16,), 32 * 9),
        "dec3_w": u(ks[16], (16, 1, 3, 3), 16 * 9),  "dec3_b": u(ks[17], (1,), 16 * 9),
    }


if __name__ == "__main__":
    key = jax.random.PRNGKey(0)
    kx, kp, ke = jax.random.split(key, 3)

    B, img_size, latent_dim = 24, 28, VAE_LATENT_DIM
    x = jax.random.uniform(kx, (B, 1, img_size, img_size), jnp.float32)
    params = init_params(kp, latent_dim)
    # TODO(synk): torch.randn_like inside reparameterize uses torch's global RNG;
    # eps is drawn from a JAX key and passed in (pltpu.prng_* could generate it
    # in-kernel and drop this input entirely).
    eps = jax.random.normal(ke, (B, latent_dim), jnp.float32)

    # S=16 -> grid length 2 (keeps both v7x TensorCores busy); exercises B-padding (24 -> 32).
    fwd = jax.jit(functools.partial(vae_forward, samples_per_step=16))
    x_recon, mu, logvar = fwd(params, x, eps)
    jax.block_until_ready((x_recon, mu, logvar))

    assert x_recon.shape == (B, 1, img_size, img_size)
    assert mu.shape == (B, latent_dim) and logvar.shape == (B, latent_dim)
    assert bool(jnp.all((x_recon >= 0.0) & (x_recon <= 1.0)))

    # Cross-check against a plain-XLA reference (bf16 conv operands -> loose tol).
    xr_ref, mu_ref, lv_ref = _ref_forward(params, x, eps)
    np.testing.assert_allclose(np.asarray(mu), np.asarray(mu_ref), rtol=5e-2, atol=5e-2)
    np.testing.assert_allclose(np.asarray(logvar), np.asarray(lv_ref), rtol=5e-2, atol=5e-2)
    np.testing.assert_allclose(np.asarray(x_recon), np.asarray(xr_ref), rtol=5e-2, atol=5e-2)

    print("KERNEL_OK")
</pallas_src>

<mosaic_0001>
module attributes {stable_mosaic.version = 11 : i64} {
  func.func @_vae_fused_kernel(%arg0: i32, %arg1: memref<1x128x256xbf16, #tpu.memory_space<vmem>>, %arg2: memref<1x16x16xf32, #tpu.memory_space<vmem>>, %arg3: memref<128x224xbf16, #tpu.memory_space<vmem>>, %arg4: memref<1x224xf32, #tpu.memory_space<vmem>>, %arg5: memref<3x224x224xbf16, #tpu.memory_space<vmem>>, %arg6: memref<1x224xf32, #tpu.memory_space<vmem>>, %arg7: memref<7x224x64xbf16, #tpu.memory_space<vmem>>, %arg8: memref<1x64xf32, #tpu.memory_space<vmem>>, %arg9: memref<64x32xf32, #tpu.memory_space<vmem>>, %arg10: memref<1x32xf32, #tpu.memory_space<vmem>>, %arg11: memref<16x64xf32, #tpu.memory_space<vmem>>, %arg12: memref<1x64xf32, #tpu.memory_space<vmem>>, %arg13: memref<7x64x224xbf16, #tpu.memory_space<vmem>>, %arg14: memref<1x224xf32, #tpu.memory_space<vmem>>, %arg15: memref<3x224x224xbf16, #tpu.memory_space<vmem>>, %arg16: memref<1x224xf32, #tpu.memory_space<vmem>>, %arg17: memref<3x224x28xbf16, #tpu.memory_space<vmem>>, %arg18: memref<1x28xf32, #tpu.memory_space<vmem>>, %arg19: memref<1x16x32xf32, #tpu.memory_space<vmem>>, %arg20: memref<1x112x128xf32, #tpu.memory_space<vmem>>) attributes {dimension_semantics = [#tpu.dimension_semantics<parallel>], iteration_bounds = array<i64: 2>, scalar_prefetch = 0 : i64, scratch_operands = 0 : i64, tpu.core_type = #tpu.core_type<tc>, window_params = [{transform_indices = @transform_0, window_bounds = array<i64: 1, 128, 256>}, {transform_indices = @transform_1, window_bounds = array<i64: 1, 16, 16>}, {pipeline_mode = #tpu.pipeline_mode<synchronous>, transform_indices = @transform_2, window_bounds = array<i64: 128, 224>}, {pipeline_mode = #tpu.pipeline_mode<synchronous>, transform_indices = @transform_3, window_bounds = array<i64: 1, 224>}, {pipeline_mode = #tpu.pipeline_mode<synchronous>, transform_indices = @transform_4, window_bounds = array<i64: 3, 224, 224>}, {pipeline_mode = #tpu.pipeline_mode<synchronous>, transform_indices = @transform_5, window_bounds = array<i64: 1, 224>}, {pipeline_mode = #tpu.pipeline_mode<synchronous>, transform_indices = @transform_6, window_bounds = array<i64: 7, 224, 64>}, {pipeline_mode = #tpu.pipeline_mode<synchronous>, transform_indices = @transform_7, window_bounds = array<i64: 1, 64>}, {pipeline_mode = #tpu.pipeline_mode<synchronous>, transform_indices = @transform_8, window_bounds = array<i64: 64, 32>}, {pipeline_mode = #tpu.pipeline_mode<synchronous>, transform_indices = @transform_9, window_bounds = array<i64: 1, 32>}, {pipeline_mode = #tpu.pipeline_mode<synchronous>, transform_indices = @transform_10, window_bounds = array<i64: 16, 64>}, {pipeline_mode = #tpu.pipeline_mode<synchronous>, transform_indices = @transform_11, window_bounds = array<i64: 1, 64>}, {pipeline_mode = #tpu.pipeline_mode<synchronous>, transform_indices = @transform_12, window_bounds = array<i64: 7, 64, 224>}, {pipeline_mode = #tpu.pipeline_mode<synchronous>, transform_indices = @transform_13, window_bounds = array<i64: 1, 224>}, {pipeline_mode = #tpu.pipeline_mode<synchronous>, transform_indices = @transform_14, window_bounds = array<i64: 3, 224, 224>}, {pipeline_mode = #tpu.pipeline_mode<synchronous>, transform_indices = @transform_15, window_bounds = array<i64: 1, 224>}, {pipeline_mode = #tpu.pipeline_mode<synchronous>, transform_indices = @transform_16, window_bounds = array<i64: 3, 224, 28>}, {pipeline_mode = #tpu.pipeline_mode<synchronous>, transform_indices = @transform_17, window_bounds = array<i64: 1, 28>}, {transform_indices = @transform_18, window_bounds = array<i64: 1, 16, 32>}, {transform_indices = @transform_19, window_bounds = array<i64: 1, 112, 128>}]} {
    %c0 = arith.constant 0 : index
    %c0_0 = arith.constant 0 : index
    %c0_1 = arith.constant 0 : index
    %0 = vector.load %arg1[%c0, %c0_0, %c0_1] : memref<1x128x256xbf16, #tpu.memory_space<vmem>>, vector<1x128x256xbf16>
    %1 = vector.shape_cast %0 : vector<1x128x256xbf16> to vector<128x256xbf16>
    %c0_2 = arith.constant 0 : index
    %c0_3 = arith.constant 0 : index
    %2 = vector.load %arg3[%c0_2, %c0_3] : memref<128x224xbf16, #tpu.memory_space<vmem>>, vector<128x224xbf16>
    %c0_4 = arith.constant 0 : index
    %c0_5 = arith.constant 0 : index
    %3 = vector.load %arg4[%c0_4, %c0_5] : memref<1x224xf32, #tpu.memory_space<vmem>>, vector<1x224xf32>
    %4 = vector.extract_strided_slice %1 {offsets = [0, 0], sizes = [112, 128], strides = [1, 1]} : vector<128x256xbf16> to vector<112x128xbf16>
    %cst = arith.constant dense<0.000000e+00> : vector<112x224xf32>
    %5 = tpu.matmul %4, %2, %cst {dimension_numbers = #tpu.dot_dimension_numbers<[1], [0], [0], [1], [0, 0, 1, 1], [], []>} : vector<112x128xbf16>, vector<128x224xbf16>, vector<112x224xf32> -> vector<112x224xf32>
    %6 = vector.broadcast %3 : vector<1x224xf32> to vector<112x224xf32>
    %7 = arith.addf %5, %6 : vector<112x224xf32>
    %cst_6 = arith.constant 0.000000e+00 : f32
    %8 = vector.broadcast %cst_6 : f32 to vector<112x224xf32>
    %9 = arith.maximumf %7, %8 : vector<112x224xf32>
    %10 = arith.truncf %9 : vector<112x224xf32> to vector<112x224xbf16>
    %11 = vector.extract_strided_slice %1 {offsets = [0, 128], sizes = [112, 128], strides = [1, 1]} : vector<128x256xbf16> to vector<112x128xbf16>
    %cst_7 = arith.constant dense<0.000000e+00> : vector<112x224xf32>
    %12 = tpu.matmul %11, %2, %cst_7 {dimension_numbers = #tpu.dot_dimension_numbers<[1], [0], [0], [1], [0, 0, 1, 1], [], []>} : vector<112x128xbf16>, vector<128x224xbf16>, vector<112x224xf32> -> vector<112x224xf32>
    %13 = vector.broadcast %3 : vector<1x224xf32> to vector<112x224xf32>
    %14 = arith.addf %12, %13 : vector<112x224xf32>
    %cst_8 = arith.constant 0.000000e+00 : f32
    %15 = vector.broadcast %cst_8 : f32 to vector<112x224xf32>
    %16 = arith.maximumf %14, %15 : vector<112x224xf32>
    %17 = arith.truncf %16 : vector<112x224xf32> to vector<112x224xbf16>
    %cst_9 = arith.constant 0.000000e+00 : bf16
    %18 = vector.broadcast %cst_9 : bf16 to vector<16x224xbf16>
    %19 = vector.extract_strided_slice %17 {offsets = [0, 0], sizes = [96, 224], strides = [1, 1]} : vector<112x224xbf16> to vector<96x224xbf16>
    %20 = tpu.concatenate %18, %19 in 0 : vector<16x224xbf16>, vector<96x224xbf16> -> vector<112x224xbf16>
    %c0_10 = arith.constant 0 : index
    %c0_11 = arith.constant 0 : index
    %c0_12 = arith.constant 0 : index
    %21 = vector.load %arg5[%c0_10, %c0_11, %c0_12] : memref<3x224x224xbf16, #tpu.memory_space<vmem>>, vector<1x224x224xbf16>
    %22 = vector.shape_cast %21 : vector<1x224x224xbf16> to vector<224x224xbf16>
    %cst_13 = arith.constant dense<0.000000e+00> : vector<112x224xf32>
    %23 = tpu.matmul %20, %22, %cst_13 {dimension_numbers = #tpu.dot_dimension_numbers<[1], [0], [0], [1], [0, 0, 1, 1], [], []>} : vector<112x224xbf16>, vector<224x224xbf16>, vector<112x224xf32> -> vector<112x224xf32>
    %c1 = arith.constant 1 : index
    %c0_14 = arith.constant 0 : index
    %c0_15 = arith.constant 0 : index
    %24 = vector.load %arg5[%c1, %c0_14, %c0_15] : memref<3x224x224xbf16, #tpu.memory_space<vmem>>, vector<1x224x224xbf16>
    %25 = vector.shape_cast %24 : vector<1x224x224xbf16> to vector<224x224xbf16>
    %cst_16 = arith.constant dense<0.000000e+00> : vector<112x224xf32>
    %26 = tpu.matmul %10, %25, %cst_16 {dimension_numbers = #tpu.dot_dimension_numbers<[1], [0], [0], [1], [0, 0, 1, 1], [], []>} : vector<112x224xbf16>, vector<224x224xbf16>, vector<112x224xf32> -> vector<112x224xf32>
    %27 = arith.addf %23, %26 : vector<112x224xf32>
    %c2 = arith.constant 2 : index
    %c0_17 = arith.constant 0 : index
    %c0_18 = arith.constant 0 : index
    %28 = vector.load %arg5[%c2, %c0_17, %c0_18] : memref<3x224x224xbf16, #tpu.memory_space<vmem>>, vector<1x224x224xbf16>
    %29 = vector.shape_cast %28 : vector<1x224x224xbf16> to vector<224x224xbf16>
    %cst_19 = arith.constant dense<0.000000e+00> : vector<112x224xf32>
    %30 = tpu.matmul %17, %29, %cst_19 {dimension_numbers = #tpu.dot_dimension_numbers<[1], [0], [0], [1], [0, 0, 1, 1], [], []>} : vector<112x224xbf16>, vector<224x224xbf16>, vector<112x224xf32> -> vector<112x224xf32>
    %31 = arith.addf %27, %30 : vector<112x224xf32>
    %c0_20 = arith.constant 0 : index
    %c0_21 = arith.constant 0 : index
    %32 = vector.load %arg6[%c0_20, %c0_21] : memref<1x224xf32, #tpu.memory_space<vmem>>, vector<1x224xf32>
    %33 = vector.broadcast %32 : vector<1x224xf32> to vector<112x224xf32>
    %34 = arith.addf %31, %33 : vector<112x224xf32>
    %cst_22 = arith.constant 0.000000e+00 : f32
    %35 = vector.broadcast %cst_22 : f32 to vector<112x224xf32>
    %36 = arith.maximumf %34, %35 : vector<112x224xf32>
    %37 = arith.truncf %36 : vector<112x224xf32> to vector<112x224xbf16>
    %38 = vector.extract_strided_slice %37 {offsets = [0, 0], sizes = [16, 224], strides = [1, 1]} : vector<112x224xbf16> to vector<16x224xbf16>
    %c0_23 = arith.constant 0 : index
    %c0_24 = arith.constant 0 : index
    %c0_25 = arith.constant 0 : index
    %39 = vector.load %arg7[%c0_23, %c0_24, %c0_25] : memref<7x224x64xbf16, #tpu.memory_space<vmem>>, vector<1x224x64xbf16>
    %40 = vector.shape_cast %39 : vector<1x224x64xbf16> to vector<224x64xbf16>
    %cst_26 = arith.constant dense<0.000000e+00> : vector<16x64xf32>
    %41 = tpu.matmul %38, %40, %cst_26 {dimension_numbers = #tpu.dot_dimension_numbers<[1], [0], [0], [1], [0, 0, 1, 1], [], []>} : vector<16x224xbf16>, vector<224x64xbf16>, vector<16x64xf32> -> vector<16x64xf32>
    %42 = vector.extract_strided_slice %37 {offsets = [16, 0], sizes = [16, 224], strides = [1, 1]} : vector<112x224xbf16> to vector<16x224xbf16>
    %c1_27 = arith.constant 1 : index
    %c0_28 = arith.constant 0 : index
    %c0_29 = arith.constant 0 : index
    %43 = vector.load %arg7[%c1_27, %c0_28, %c0_29] : memref<7x224x64xbf16, #tpu.memory_space<vmem>>, vector<1x224x64xbf16>
    %44 = vector.shape_cast %43 : vector<1x224x64xbf16> to vector<224x64xbf16>
    %cst_30 = arith.constant dense<0.000000e+00> : vector<16x64xf32>
    %45 = tpu.matmul %42, %44, %cst_30 {dimension_numbers = #tpu.dot_dimension_numbers<[1], [0], [0], [1], [0, 0, 1, 1], [], []>} : vector<16x224xbf16>, vector<224x64xbf16>, vector<16x64xf32> -> vector<16x64xf32>
    %46 = arith.addf %41, %45 : vector<16x64xf32>
    %47 = vector.extract_strided_slice %37 {offsets = [32, 0], sizes = [16, 224], strides = [1, 1]} : vector<112x224xbf16> to vector<16x224xbf16>
    %c2_31 = arith.constant 2 : index
    %c0_32 = arith.constant 0 : index
    %c0_33 = arith.constant 0 : index
    %48 = vector.load %arg7[%c2_31, %c0_32, %c0_33] : memref<7x224x64xbf16, #tpu.memory_space<vmem>>, vector<1x224x64xbf16>
    %49 = vector.shape_cast %48 : vector<1x224x64xbf16> to vector<224x64xbf16>
    %cst_34 = arith.constant dense<0.000000e+00> : vector<16x64xf32>
    %50 = tpu.matmul %47, %49, %cst_34 {dimension_numbers = #tpu.dot_dimension_numbers<[1], [0], [0], [1], [0, 0, 1, 1], [], []>} : vector<16x224xbf16>, vector<224x64xbf16>, vector<16x64xf32> -> vector<16x64xf32>
    %51 = arith.addf %46, %50 : vector<16x64xf32>
    %52 = vector.extract_strided_slice %37 {offsets = [48, 0], sizes = [16, 224], strides = [1, 1]} : vector<112x224xbf16> to vector<16x224xbf16>
    %c3 = arith.constant 3 : index
    %c0_35 = arith.constant 0 : index
    %c0_36 = arith.constant 0 : index
    %53 = vector.load %arg7[%c3, %c0_35, %c0_36] : memref<7x224x64xbf16, #tpu.memory_space<vmem>>, vector<1x224x64xbf16>
    %54 = vector.shape_cast %53 : vector<1x224x64xbf16> to vector<224x64xbf16>
    %cst_37 = arith.constant dense<0.000000e+00> : vector<16x64xf32>
    %55 = tpu.matmul %52, %54, %cst_37 {dimension_numbers = #tpu.dot_dimension_numbers<[1], [0], [0], [1], [0, 0, 1, 1], [], []>} : vector<16x224xbf16>, vector<224x64xbf16>, vector<16x64xf32> -> vector<16x64xf32>
    %56 = arith.addf %51, %55 : vector<16x64xf32>
    %57 = vector.extract_strided_slice %37 {offsets = [64, 0], sizes = [16, 224], strides = [1, 1]} : vector<112x224xbf16> to vector<16x224xbf16>
    %c4 = arith.constant 4 : index
    %c0_38 = arith.constant 0 : index
    %c0_39 = arith.constant 0 : index
    %58 = vector.load %arg7[%c4, %c0_38, %c0_39] : memref<7x224x64xbf16, #tpu.memory_space<vmem>>, vector<1x224x64xbf16>
    %59 = vector.shape_cast %58 : vector<1x224x64xbf16> to vector<224x64xbf16>
    %cst_40 = arith.constant dense<0.000000e+00> : vector<16x64xf32>
    %60 = tpu.matmul %57, %59, %cst_40 {dimension_numbers = #tpu.dot_dimension_numbers<[1], [0], [0], [1], [0, 0, 1, 1], [], []>} : vector<16x224xbf16>, vector<224x64xbf16>, vector<16x64xf32> -> vector<16x64xf32>
    %61 = arith.addf %56, %60 : vector<16x64xf32>
    %62 = vector.extract_strided_slice %37 {offsets = [80, 0], sizes = [16, 224], strides = [1, 1]} : vector<112x224xbf16> to vector<16x224xbf16>
    %c5 = arith.constant 5 : index
    %c0_41 = arith.constant 0 : index
    %c0_42 = arith.constant 0 : index
    %63 = vector.load %arg7[%c5, %c0_41, %c0_42] : memref<7x224x64xbf16, #tpu.memory_space<vmem>>, vector<1x224x64xbf16>
    %64 = vector.shape_cast %63 : vector<1x224x64xbf16> to vector<224x64xbf16>
    %cst_43 = arith.constant dense<0.000000e+00> : vector<16x64xf32>
    %65 = tpu.matmul %62, %64, %cst_43 {dimension_numbers = #tpu.dot_dimension_numbers<[1], [0], [0], [1], [0, 0, 1, 1], [], []>} : vector<16x224xbf16>, vector<224x64xbf16>, vector<16x64xf32> -> vector<16x64xf32>
    %66 = arith.addf %61, %65 : vector<16x64xf32>
    %67 = vector.extract_strided_slice %37 {offsets = [96, 0], sizes = [16, 224], strides = [1, 1]} : vector<112x224xbf16> to vector<16x224xbf16>
    %c6 = arith.constant 6 : index
    %c0_44 = arith.constant 0 : index
    %c0_45 = arith.constant 0 : index
    %68 = vector.load %arg7[%c6, %c0_44, %c0_45] : memref<7x224x64xbf16, #tpu.memory_space<vmem>>, vector<1x224x64xbf16>
    %69 = vector.shape_cast %68 : vector<1x224x64xbf16> to vector<224x64xbf16>
    %cst_46 = arith.constant dense<0.000000e+00> : vector<16x64xf32>
    %70 = tpu.matmul %67, %69, %cst_46 {dimension_numbers = #tpu.dot_dimension_numbers<[1], [0], [0], [1], [0, 0, 1, 1], [], []>} : vector<16x224xbf16>, vector<224x64xbf16>, vector<16x64xf32> -> vector<16x64xf32>
    %71 = arith.addf %66, %70 : vector<16x64xf32>
    %c0_47 = arith.constant 0 : index
    %c0_48 = arith.constant 0 : index
    %72 = vector.load %arg8[%c0_47, %c0_48] : memref<1x64xf32, #tpu.memory_space<vmem>>, vector<1x64xf32>
    %73 = vector.broadcast %72 : vector<1x64xf32> to vector<16x64xf32>
    %74 = arith.addf %71, %73 : vector<16x64xf32>
    %c0_49 = arith.constant 0 : index
    %c0_50 = arith.constant 0 : index
    %75 = vector.load %arg9[%c0_49, %c0_50] : memref<64x32xf32, #tpu.memory_space<vmem>>, vector<64x32xf32>
    %cst_51 = arith.constant dense<0.000000e+00> : vector<16x32xf32>
    %76 = tpu.matmul %74, %75, %cst_51 {dimension_numbers = #tpu.dot_dimension_numbers<[1], [0], [0], [1], [0, 0, 1, 1], [], []>} : vector<16x64xf32>, vector<64x32xf32>, vector<16x32xf32> -> vector<16x32xf32>
    %c0_52 = arith.constant 0 : index
    %c0_53 = arith.constant 0 : index
    %77 = vector.load %arg10[%c0_52, %c0_53] : memref<1x32xf32, #tpu.memory_space<vmem>>, vector<1x32xf32>
    %78 = vector.broadcast %77 : vector<1x32xf32> to vector<16x32xf32>
    %79 = arith.addf %76, %78 : vector<16x32xf32>
    %c0_54 = arith.constant 0 : index
    %c0_55 = arith.constant 0 : index
    %c0_56 = arith.constant 0 : index
    %80 = vector.load %arg19[%c0_54, %c0_55, %c0_56] : memref<1x16x32xf32, #tpu.memory_space<vmem>>, vector<1x16x32xf32>
    %81 = vector.shape_cast %80 : vector<1x16x32xf32> to vector<16x32xf32>
    %82 = vector.shape_cast %79 : vector<16x32xf32> to vector<1x16x32xf32>
    tpu.vector_store %arg19[%c0_54, %c0_55, %c0_56], %82 {strides = array<i32>} : memref<1x16x32xf32, #tpu.memory_space<vmem>>, vector<1x16x32xf32>,
    %83 = vector.extract_strided_slice %79 {offsets = [0, 0], sizes = [16, 16], strides = [1, 1]} : vector<16x32xf32> to vector<16x16xf32>
    %84 = vector.extract_strided_slice %79 {offsets = [0, 16], sizes = [16, 16], strides = [1, 1]} : vector<16x32xf32> to vector<16x16xf32>
    %c0_57 = arith.constant 0 : index
    %c0_58 = arith.constant 0 : index
    %c0_59 = arith.constant 0 : index
    %85 = vector.load %arg2[%c0_57, %c0_58, %c0_59] : memref<1x16x16xf32, #tpu.memory_space<vmem>>, vector<1x16x16xf32>
    %86 = vector.shape_cast %85 : vector<1x16x16xf32> to vector<16x16xf32>
    %cst_60 = arith.constant 5.000000e-01 : f32
    %87 = vector.broadcast %cst_60 : f32 to vector<16x16xf32>
    %88 = arith.mulf %87, %84 : vector<16x16xf32>
    %89 = math.exp %88 : vector<16x16xf32>
    %90 = arith.mulf %86, %89 : vector<16x16xf32>
    %91 = arith.addf %83, %90 : vector<16x16xf32>
    %c0_61 = arith.constant 0 : index
    %c0_62 = arith.constant 0 : index
    %92 = vector.load %arg11[%c0_61, %c0_62] : memref<16x64xf32, #tpu.memory_space<vmem>>, vector<16x64xf32>
    %cst_63 = arith.constant dense<0.000000e+00> : vector<16x64xf32>
    %93 = tpu.matmul %91, %92, %cst_63 {dimension_numbers = #tpu.dot_dimension_numbers<[1], [0], [0], [1], [0, 0, 1, 1], [], []>} : vector<16x16xf32>, vector<16x64xf32>, vector<16x64xf32> -> vector<16x64xf32>
    %c0_64 = arith.constant 0 : index
    %c0_65 = arith.constant 0 : index
    %94 = vector.load %arg12[%c0_64, %c0_65] : memref<1x64xf32, #tpu.memory_space<vmem>>, vector<1x64xf32>
    %95 = vector.broadcast %94 : vector<1x64xf32> to vector<16x64xf32>
    %96 = arith.addf %93, %95 : vector<16x64xf32>
    %97 = arith.truncf %96 : vector<16x64xf32> to vector<16x64xbf16>
    %c0_66 = arith.constant 0 : index
    %c0_67 = arith.constant 0 : index
    %98 = vector.load %arg14[%c0_66, %c0_67] : memref<1x224xf32, #tpu.memory_space<vmem>>, vector<1x224xf32>
    %c0_68 = arith.constant 0 : index
    %c0_69 = arith.constant 0 : index
    %c0_70 = arith.constant 0 : index
    %99 = vector.load %arg13[%c0_68, %c0_69, %c0_70] : memref<7x64x224xbf16, #tpu.memory_space<vmem>>, vector<1x64x224xbf16>
    %100 = vector.shape_cast %99 : vector<1x64x224xbf16> to vector<64x224xbf16>
    %cst_71 = arith.constant dense<0.000000e+00> : vector<16x224xf32>
    %101 = tpu.matmul %97, %100, %cst_71 {dimension_numbers = #tpu.dot_dimension_numbers<[1], [0], [0], [1], [0, 0, 1, 1], [], []>} : vector<16x64xbf16>, vector<64x224xbf16>, vector<16x224xf32> -> vector<16x224xf32>
    %102 = vector.broadcast %98 : vector<1x224xf32> to vector<16x224xf32>
    %103 = arith.addf %101, %102 : vector<16x224xf32>
    %cst_72 = arith.constant 0.000000e+00 : f32
    %104 = vector.broadcast %cst_72 : f32 to vector<16x224xf32>
    %105 = arith.maximumf %103, %104 : vector<16x224xf32>
    %c1_73 = arith.constant 1 : index
    %c0_74 = arith.constant 0 : index
    %c0_75 = arith.constant 0 : index
    %106 = vector.load %arg13[%c1_73, %c0_74, %c0_75] : memref<7x64x224xbf16, #tpu.memory_space<vmem>>, vector<1x64x224xbf16>
    %107 = vector.shape_cast %106 : vector<1x64x224xbf16> to vector<64x224xbf16>
    %cst_76 = arith.constant dense<0.000000e+00> : vector<16x224xf32>
    %108 = tpu.matmul %97, %107, %cst_76 {dimension_numbers = #tpu.dot_dimension_numbers<[1], [0], [0], [1], [0, 0, 1, 1], [], []>} : vector<16x64xbf16>, vector<64x224xbf16>, vector<16x224xf32> -> vector<16x224xf32>
    %109 = vector.broadcast %98 : vector<1x224xf32> to vector<16x224xf32>
    %110 = arith.addf %108, %109 : vector<16x224xf32>
    %cst_77 = arith.constant 0.000000e+00 : f32
    %111 = vector.broadcast %cst_77 : f32 to vector<16x224xf32>
    %112 = arith.maximumf %110, %111 : vector<16x224xf32>
    %c2_78 = arith.constant 2 : index
    %c0_79 = arith.constant 0 : index
    %c0_80 = arith.constant 0 : index
    %113 = vector.load %arg13[%c2_78, %c0_79, %c0_80] : memref<7x64x224xbf16, #tpu.memory_space<vmem>>, vector<1x64x224xbf16>
    %114 = vector.shape_cast %113 : vector<1x64x224xbf16> to vector<64x224xbf16>
    %cst_81 = arith.constant dense<0.000000e+00> : vector<16x224xf32>
    %115 = tpu.matmul %97, %114, %cst_81 {dimension_numbers = #tpu.dot_dimension_numbers<[1], [0], [0], [1], [0, 0, 1, 1], [], []>} : vector<16x64xbf16>, vector<64x224xbf16>, vector<16x224xf32> -> vector<16x224xf32>
    %116 = vector.broadcast %98 : vector<1x224xf32> to vector<16x224xf32>
    %117 = arith.addf %115, %116 : vector<16x224xf32>
    %cst_82 = arith.constant 0.000000e+00 : f32
    %118 = vector.broadcast %cst_82 : f32 to vector<16x224xf32>
    %119 = arith.maximumf %117, %118 : vector<16x224xf32>
    %c3_83 = arith.constant 3 : index
    %c0_84 = arith.constant 0 : index
    %c0_85 = arith.constant 0 : index
    %120 = vector.load %arg13[%c3_83, %c0_84, %c0_85] : memref<7x64x224xbf16, #tpu.memory_space<vmem>>, vector<1x64x224xbf16>
    %121 = vector.shape_cast %120 : vector<1x64x224xbf16> to vector<64x224xbf16>
    %cst_86 = arith.constant dense<0.000000e+00> : vector<16x224xf32>
    %122 = tpu.matmul %97, %121, %cst_86 {dimension_numbers = #tpu.dot_dimension_numbers<[1], [0], [0], [1], [0, 0, 1, 1], [], []>} : vector<16x64xbf16>, vector<64x224xbf16>, vector<16x224xf32> -> vector<16x224xf32>
    %123 = vector.broadcast %98 : vector<1x224xf32> to vector<16x224xf32>
    %124 = arith.addf %122, %123 : vector<16x224xf32>
    %cst_87 = arith.constant 0.000000e+00 : f32
    %125 = vector.broadcast %cst_87 : f32 to vector<16x224xf32>
    %126 = arith.maximumf %124, %125 : vector<16x224xf32>
    %c4_88 = arith.constant 4 : index
    %c0_89 = arith.constant 0 : index
    %c0_90 = arith.constant 0 : index
    %127 = vector.load %arg13[%c4_88, %c0_89, %c0_90] : memref<7x64x224xbf16, #tpu.memory_space<vmem>>, vector<1x64x224xbf16>
    %128 = vector.shape_cast %127 : vector<1x64x224xbf16> to vector<64x224xbf16>
    %cst_91 = arith.constant dense<0.000000e+00> : vector<16x224xf32>
    %129 = tpu.matmul %97, %128, %cst_91 {dimension_numbers = #tpu.dot_dimension_numbers<[1], [0], [0], [1], [0, 0, 1, 1], [], []>} : vector<16x64xbf16>, vector<64x224xbf16>, vector<16x224xf32> -> vector<16x224xf32>
    %130 = vector.broadcast %98 : vector<1x224xf32> to vector<16x224xf32>
    %131 = arith.addf %129, %130 : vector<16x224xf32>
    %cst_92 = arith.constant 0.000000e+00 : f32
    %132 = vector.broadcast %cst_92 : f32 to vector<16x224xf32>
    %133 = arith.maximumf %131, %132 : vector<16x224xf32>
    %c5_93 = arith.constant 5 : index
    %c0_94 = arith.constant 0 : index
    %c0_95 = arith.constant 0 : index
    %134 = vector.load %arg13[%c5_93, %c0_94, %c0_95] : memref<7x64x224xbf16, #tpu.memory_space<vmem>>, vector<1x64x224xbf16>
    %135 = vector.shape_cast %134 : vector<1x64x224xbf16> to vector<64x224xbf16>
    %cst_96 = arith.constant dense<0.000000e+00> : vector<16x224xf32>
    %136 = tpu.matmul %97, %135, %cst_96 {dimension_numbers = #tpu.dot_dimension_numbers<[1], [0], [0], [1], [0, 0, 1, 1], [], []>} : vector<16x64xbf16>, vector<64x224xbf16>, vector<16x224xf32> -> vector<16x224xf32>
    %137 = vector.broadcast %98 : vector<1x224xf32> to vector<16x224xf32>
    %138 = arith.addf %136, %137 : vector<16x224xf32>
    %cst_97 = arith.constant 0.000000e+00 : f32
    %139 = vector.broadcast %cst_97 : f32 to vector<16x224xf32>
    %140 = arith.maximumf %138, %139 : vector<16x224xf32>
    %c6_98 = arith.constant 6 : index
    %c0_99 = arith.constant 0 : index
    %c0_100 = arith.constant 0 : index
    %141 = vector.load %arg13[%c6_98, %c0_99, %c0_100] : memref<7x64x224xbf16, #tpu.memory_space<vmem>>, vector<1x64x224xbf16>
    %142 = vector.shape_cast %141 : vector<1x64x224xbf16> to vector<64x224xbf16>
    %cst_101 = arith.constant dense<0.000000e+00> : vector<16x224xf32>
    %143 = tpu.matmul %97, %142, %cst_101 {dimension_numbers = #tpu.dot_dimension_numbers<[1], [0], [0], [1], [0, 0, 1, 1], [], []>} : vector<16x64xbf16>, vector<64x224xbf16>, vector<16x224xf32> -> vector<16x224xf32>
    %144 = vector.broadcast %98 : vector<1x224xf32> to vector<16x224xf32>
    %145 = arith.addf %143, %144 : vector<16x224xf32>
    %cst_102 = arith.constant 0.000000e+00 : f32
    %146 = vector.broadcast %cst_102 : f32 to vector<16x224xf32>
    %147 = arith.maximumf %145, %146 : vector<16x224xf32>
    %148 = tpu.concatenate %105, %112, %119, %126, %133, %140, %147 in 0 : vector<16x224xf32>, vector<16x224xf32>, vector<16x224xf32>, vector<16x224xf32>, vector<16x224xf32>, vector<16x224xf32>, vector<16x224xf32> -> vector<112x224xf32>
    %149 = arith.truncf %148 : vector<112x224xf32> to vector<112x224xbf16>
    %c0_103 = arith.constant 0 : index
    %c0_104 = arith.constant 0 : index
    %150 = vector.load %arg16[%c0_103, %c0_104] : memref<1x224xf32, #tpu.memory_space<vmem>>, vector<1x224xf32>
    %c0_105 = arith.constant 0 : index
    %c0_106 = arith.constant 0 : index
    %c0_107 = arith.constant 0 : index
    %151 = vector.load %arg15[%c0_105, %c0_106, %c0_107] : memref<3x224x224xbf16, #tpu.memory_space<vmem>>, vector<1x224x224xbf16>
    %152 = vector.shape_cast %151 : vector<1x224x224xbf16> to vector<224x224xbf16>
    %cst_108 = arith.constant dense<0.000000e+00> : vector<112x224xf32>
    %153 = tpu.matmul %149, %152, %cst_108 {dimension_numbers = #tpu.dot_dimension_numbers<[1], [0], [0], [1], [0, 0, 1, 1], [], []>} : vector<112x224xbf16>, vector<224x224xbf16>, vector<112x224xf32> -> vector<112x224xf32>
    %154 = vector.broadcast %150 : vector<1x224xf32> to vector<112x224xf32>
    %155 = arith.addf %153, %154 : vector<112x224xf32>
    %cst_109 = arith.constant 0.000000e+00 : f32
    %156 = vector.broadcast %cst_109 : f32 to vector<112x224xf32>
    %157 = arith.maximumf %155, %156 : vector<112x224xf32>
    %158 = arith.truncf %157 : vector<112x224xf32> to vector<112x224xbf16>
    %159 = vector.extract_strided_slice %149 {offsets = [16, 0], sizes = [96, 224], strides = [1, 1]} : vector<112x224xbf16> to vector<96x224xbf16>
    %cst_110 = arith.constant 0.000000e+00 : bf16
    %160 = vector.broadcast %cst_110 : bf16 to vector<16x224xbf16>
    %161 = tpu.concatenate %159, %160 in 0 : vector<96x224xbf16>, vector<16x224xbf16> -> vector<112x224xbf16>
    %c1_111 = arith.constant 1 : index
    %c0_112 = arith.constant 0 : index
    %c0_113 = arith.constant 0 : index
    %162 = vector.load %arg15[%c1_111, %c0_112, %c0_113] : memref<3x224x224xbf16, #tpu.memory_space<vmem>>, vector<1x224x224xbf16>
    %163 = vector.shape_cast %162 : vector<1x224x224xbf16> to vector<224x224xbf16>
    %cst_114 = arith.constant dense<0.000000e+00> : vector<112x224xf32>
    %164 = tpu.matmul %161, %163, %cst_114 {dimension_numbers = #tpu.dot_dimension_numbers<[1], [0], [0], [1], [0, 0, 1, 1], [], []>} : vector<112x224xbf16>, vector<224x224xbf16>, vector<112x224xf32> -> vector<112x224xf32>
    %c2_115 = arith.constant 2 : index
    %c0_116 = arith.constant 0 : index
    %c0_117 = arith.constant 0 : index
    %165 = vector.load %arg15[%c2_115, %c0_116, %c0_117] : memref<3x224x224xbf16, #tpu.memory_space<vmem>>, vector<1x224x224xbf16>
    %166 = vector.shape_cast %165 : vector<1x224x224xbf16> to vector<224x224xbf16>
    %cst_118 = arith.constant dense<0.000000e+00> : vector<112x224xf32>
    %167 = tpu.matmul %149, %166, %cst_118 {dimension_numbers = #tpu.dot_dimension_numbers<[1], [0], [0], [1], [0, 0, 1, 1], [], []>} : vector<112x224xbf16>, vector<224x224xbf16>, vector<112x224xf32> -> vector<112x224xf32>
    %168 = arith.addf %164, %167 : vector<112x224xf32>
    %169 = vector.broadcast %150 : vector<1x224xf32> to vector<112x224xf32>
    %170 = arith.addf %168, %169 : vector<112x224xf32>
    %cst_119 = arith.constant 0.000000e+00 : f32
    %171 = vector.broadcast %cst_119 : f32 to vector<112x224xf32>
    %172 = arith.maximumf %170, %171 : vector<112x224xf32>
    %173 = arith.truncf %172 : vector<112x224xf32> to vector<112x224xbf16>
    %c0_120 = arith.constant 0 : index
    %c0_121 = arith.constant 0 : index
    %174 = vector.load %arg18[%c0_120, %c0_121] : memref<1x28xf32, #tpu.memory_space<vmem>>, vector<1x28xf32>
    %c0_122 = arith.constant 0 : index
    %c0_123 = arith.constant 0 : index
    %c0_124 = arith.constant 0 : index
    %175 = vector.load %arg17[%c0_122, %c0_123, %c0_124] : memref<3x224x28xbf16, #tpu.memory_space<vmem>>, vector<1x224x28xbf16>
    %176 = vector.shape_cast %175 : vector<1x224x28xbf16> to vector<224x28xbf16>
    %cst_125 = arith.constant dense<0.000000e+00> : vector<112x28xf32>
    %177 = tpu.matmul %158, %176, %cst_125 {dimension_numbers = #tpu.dot_dimension_numbers<[1], [0], [0], [1], [0, 0, 1, 1], [], []>} : vector<112x224xbf16>, vector<224x28xbf16>, vector<112x28xf32> -> vector<112x28xf32>
    %178 = vector.broadcast %174 : vector<1x28xf32> to vector<112x28xf32>
    %179 = arith.addf %177, %178 : vector<112x28xf32>
    %c1_126 = arith.constant 1 : index
    %c0_127 = arith.constant 0 : index
    %c0_128 = arith.constant 0 : index
    %180 = vector.load %arg17[%c1_126, %c0_127, %c0_128] : memref<3x224x28xbf16, #tpu.memory_space<vmem>>, vector<1x224x28xbf16>
    %181 = vector.shape_cast %180 : vector<1x224x28xbf16> to vector<224x28xbf16>
    %cst_129 = arith.constant dense<0.000000e+00> : vector<112x28xf32>
    %182 = tpu.matmul %173, %181, %cst_129 {dimension_numbers = #tpu.dot_dimension_numbers<[1], [0], [0], [1], [0, 0, 1, 1], [], []>} : vector<112x224xbf16>, vector<224x28xbf16>, vector<112x28xf32> -> vector<112x28xf32>
    %c2_130 = arith.constant 2 : index
    %c0_131 = arith.constant 0 : index
    %c0_132 = arith.constant 0 : index
    %183 = vector.load %arg17[%c2_130, %c0_131, %c0_132] : memref<3x224x28xbf16, #tpu.memory_space<vmem>>, vector<1x224x28xbf16>
    %184 = vector.shape_cast %183 : vector<1x224x28xbf16> to vector<224x28xbf16>
    %cst_133 = arith.constant dense<0.000000e+00> : vector<112x28xf32>
    %185 = tpu.matmul %158, %184, %cst_133 {dimension_numbers = #tpu.dot_dimension_numbers<[1], [0], [0], [1], [0, 0, 1, 1], [], []>} : vector<112x224xbf16>, vector<224x28xbf16>, vector<112x28xf32> -> vector<112x28xf32>
    %186 = arith.addf %182, %185 : vector<112x28xf32>
    %187 = vector.broadcast %174 : vector<1x28xf32> to vector<112x28xf32>
    %188 = arith.addf %186, %187 : vector<112x28xf32>
    %c0_134 = arith.constant 0 : index
    %c0_135 = arith.constant 0 : index
    %c0_136 = arith.constant 0 : index
    %189 = vector.load %arg17[%c0_134, %c0_135, %c0_136] : memref<3x224x28xbf16, #tpu.memory_space<vmem>>, vector<1x224x28xbf16>
    %190 = vector.shape_cast %189 : vector<1x224x28xbf16> to vector<224x28xbf16>
    %cst_137 = arith.constant dense<0.000000e+00> : vector<112x28xf32>
    %191 = tpu.matmul %173, %190, %cst_137 {dimension_numbers = #tpu.dot_dimension_numbers<[1], [0], [0], [1], [0, 0, 1, 1], [], []>} : vector<112x224xbf16>, vector<224x28xbf16>, vector<112x28xf32> -> vector<112x28xf32>
    %192 = vector.broadcast %174 : vector<1x28xf32> to vector<112x28xf32>
    %193 = arith.addf %191, %192 : vector<112x28xf32>
    %194 = vector.extract_strided_slice %158 {offsets = [16, 0], sizes = [96, 224], strides = [1, 1]} : vector<112x224xbf16> to vector<96x224xbf16>
    %cst_138 = arith.constant 0.000000e+00 : bf16
    %195 = vector.broadcast %cst_138 : bf16 to vector<16x224xbf16>
    %196 = tpu.concatenate %194, %195 in 0 : vector<96x224xbf16>, vector<16x224xbf16> -> vector<112x224xbf16>
    %c1_139 = arith.constant 1 : index
    %c0_140 = arith.constant 0 : index
    %c0_141 = arith.constant 0 : index
    %197 = vector.load %arg17[%c1_139, %c0_140, %c0_141] : memref<3x224x28xbf16, #tpu.memory_space<vmem>>, vector<1x224x28xbf16>
    %198 = vector.shape_cast %197 : vector<1x224x28xbf16> to vector<224x28xbf16>
    %cst_142 = arith.constant dense<0.000000e+00> : vector<112x28xf32>
    %199 = tpu.matmul %196, %198, %cst_142 {dimension_numbers = #tpu.dot_dimension_numbers<[1], [0], [0], [1], [0, 0, 1, 1], [], []>} : vector<112x224xbf16>, vector<224x28xbf16>, vector<112x28xf32> -> vector<112x28xf32>
    %c2_143 = arith.constant 2 : index
    %c0_144 = arith.constant 0 : index
    %c0_145 = arith.constant 0 : index
    %200 = vector.load %arg17[%c2_143, %c0_144, %c0_145] : memref<3x224x28xbf16, #tpu.memory_space<vmem>>, vector<1x224x28xbf16>
    %201 = vector.shape_cast %200 : vector<1x224x28xbf16> to vector<224x28xbf16>
    %cst_146 = arith.constant dense<0.000000e+00> : vector<112x28xf32>
    %202 = tpu.matmul %173, %201, %cst_146 {dimension_numbers = #tpu.dot_dimension_numbers<[1], [0], [0], [1], [0, 0, 1, 1], [], []>} : vector<112x224xbf16>, vector<224x28xbf16>, vector<112x28xf32> -> vector<112x28xf32>
    %203 = arith.addf %199, %202 : vector<112x28xf32>
    %204 = vector.broadcast %174 : vector<1x28xf32> to vector<112x28xf32>
    %205 = arith.addf %203, %204 : vector<112x28xf32>
    %206 = arith.negf %179 : vector<112x28xf32>
    %207 = math.exp %206 : vector<112x28xf32>
    %cst_147 = arith.constant 1.000000e+00 : f32
    %208 = vector.broadcast %cst_147 : f32 to vector<112x28xf32>
    %209 = arith.addf %208, %207 : vector<112x28xf32>
    %210 = arith.divf %208, %209 : vector<112x28xf32>
    %211 = arith.negf %188 : vector<112x28xf32>
    %212 = math.exp %211 : vector<112x28xf32>
    %cst_148 = arith.constant 1.000000e+00 : f32
    %213 = vector.broadcast %cst_148 : f32 to vector<112x28xf32>
    %214 = arith.addf %213, %212 : vector<112x28xf32>
    %215 = arith.divf %213, %214 : vector<112x28xf32>
    %216 = arith.negf %193 : vector<112x28xf32>
    %217 = math.exp %216 : vector<112x28xf32>
    %cst_149 = arith.constant 1.000000e+00 : f32
    %218 = vector.broadcast %cst_149 : f32 to vector<112x28xf32>
    %219 = arith.addf %218, %217 : vector<112x28xf32>
    %220 = arith.divf %218, %219 : vector<112x28xf32>
    %221 = arith.negf %205 : vector<112x28xf32>
    %222 = math.exp %221 : vector<112x28xf32>
    %cst_150 = arith.constant 1.000000e+00 : f32
    %223 = vector.broadcast %cst_150 : f32 to vector<112x28xf32>
    %224 = arith.addf %223, %222 : vector<112x28xf32>
    %225 = arith.divf %223, %224 : vector<112x28xf32>
    %cst_151 = arith.constant 0.000000e+00 : f32
    %226 = vector.broadcast %cst_151 : f32 to vector<112x16xf32>
    %227 = tpu.concatenate %210, %215, %220, %225, %226 in 1 : vector<112x28xf32>, vector<112x28xf32>, vector<112x28xf32>, vector<112x28xf32>, vector<112x16xf32> -> vector<112x128xf32>
    %c0_152 = arith.constant 0 : index
    %c0_153 = arith.constant 0 : index
    %c0_154 = arith.constant 0 : index
    %228 = vector.load %arg20[%c0_152, %c0_153, %c0_154] : memref<1x112x128xf32, #tpu.memory_space<vmem>>, vector<1x112x128xf32>
    %229 = vector.shape_cast %228 : vector<1x112x128xf32> to vector<112x128xf32>
    %230 = vector.shape_cast %227 : vector<112x128xf32> to vector<1x112x128xf32>
    tpu.vector_store %arg20[%c0_152, %c0_153, %c0_154], %230 {strides = array<i32>} : memref<1x112x128xf32, #tpu.memory_space<vmem>>, vector<1x112x128xf32>,
    return
  }
  func.func @transform_0(%arg0: i32) -> (i32, i32, i32) {
    %c0_i32 = arith.constant 0 : i32
    %c0_i32_0 = arith.constant 0 : i32
    %c0_i32_1 = arith.constant 0 : i32
    return %arg0, %c0_i32, %c0_i32_0 : i32, i32, i32
  }
  func.func @transform_1(%arg0: i32) -> (i32, i32, i32) {
    %c0_i32 = arith.constant 0 : i32
    %c0_i32_0 = arith.constant 0 : i32
    %c0_i32_1 = arith.constant 0 : i32
    return %arg0, %c0_i32, %c0_i32_0 : i32, i32, i32
  }
  func.func @transform_2(%arg0: i32) -> (i32, i32) {
    %c0_i32 = arith.constant 0 : i32
    %c0_i32_0 = arith.constant 0 : i32
    %c0_i32_1 = arith.constant 0 : i32
    return %c0_i32, %c0_i32_0 : i32, i32
  }
  func.func @transform_3(%arg0: i32) -> (i32, i32) {
    %c0_i32 = arith.constant 0 : i32
    %c0_i32_0 = arith.constant 0 : i32
    %c0_i32_1 = arith.constant 0 : i32
    return %c0_i32, %c0_i32_0 : i32, i32
  }
  func.func @transform_4(%arg0: i32) -> (i32, i32, i32) {
    %c0_i32 = arith.constant 0 : i32
    %c0_i32_0 = arith.constant 0 : i32
    %c0_i32_1 = arith.constant 0 : i32
    %c0_i32_2 = arith.constant 0 : i32
    return %c0_i32, %c0_i32_0, %c0_i32_1 : i32, i32, i32
  }
  func.func @transform_5(%arg0: i32) -> (i32, i32) {
    %c0_i32 = arith.constant 0 : i32
    %c0_i32_0 = arith.constant 0 : i32
    %c0_i32_1 = arith.constant 0 : i32
    return %c0_i32, %c0_i32_0 : i32, i32
  }
  func.func @transform_6(%arg0: i32) -> (i32, i32, i32) {
    %c0_i32 = arith.constant 0 : i32
    %c0_i32_0 = arith.constant 0 : i32
    %c0_i32_1 = arith.constant 0 : i32
    %c0_i32_2 = arith.constant 0 : i32
    return %c0_i32, %c0_i32_0, %c0_i32_1 : i32, i32, i32
  }
  func.func @transform_7(%arg0: i32) -> (i32, i32) {
    %c0_i32 = arith.constant 0 : i32
    %c0_i32_0 = arith.constant 0 : i32
    %c0_i32_1 = arith.constant 0 : i32
    return %c0_i32, %c0_i32_0 : i32, i32
  }
  func.func @transform_8(%arg0: i32) -> (i32, i32) {
    %c0_i32 = arith.constant 0 : i32
    %c0_i32_0 = arith.constant 0 : i32
    %c0_i32_1 = arith.constant 0 : i32
    return %c0_i32, %c0_i32_0 : i32, i32
  }
  func.func @transform_9(%arg0: i32) -> (i32, i32) {
    %c0_i32 = arith.constant 0 : i32
    %c0_i32_0 = arith.constant 0 : i32
    %c0_i32_1 = arith.constant 0 : i32
    return %c0_i32, %c0_i32_0 : i32, i32
  }
  func.func @transform_10(%arg0: i32) -> (i32, i32) {
    %c0_i32 = arith.constant 0 : i32
    %c0_i32_0 = arith.constant 0 : i32
    %c0_i32_1 = arith.constant 0 : i32
    return %c0_i32, %c0_i32_0 : i32, i32
  }
  func.func @transform_11(%arg0: i32) -> (i32, i32) {
    %c0_i32 = arith.constant 0 : i32
    %c0_i32_0 = arith.constant 0 : i32
    %c0_i32_1 = arith.constant 0 : i32
    return %c0_i32, %c0_i32_0 : i32, i32
  }
  func.func @transform_12(%arg0: i32) -> (i32, i32, i32) {
    %c0_i32 = arith.constant 0 : i32
    %c0_i32_0 = arith.constant 0 : i32
    %c0_i32_1 = arith.constant 0 : i32
    %c0_i32_2 = arith.constant 0 : i32
    return %c0_i32, %c0_i32_0, %c0_i32_1 : i32, i32, i32
  }
  func.func @transform_13(%arg0: i32) -> (i32, i32) {
    %c0_i32 = arith.constant 0 : i32
    %c0_i32_0 = arith.constant 0 : i32
    %c0_i32_1 = arith.constant 0 : i32
    return %c0_i32, %c0_i32_0 : i32, i32
  }
  func.func @transform_14(%arg0: i32) -> (i32, i32, i32) {
    %c0_i32 = arith.constant 0 : i32
    %c0_i32_0 = arith.constant 0 : i32
    %c0_i32_1 = arith.constant 0 : i32
    %c0_i32_2 = arith.constant 0 : i32
    return %c0_i32, %c0_i32_0, %c0_i32_1 : i32, i32, i32
  }
  func.func @transform_15(%arg0: i32) -> (i32, i32) {
    %c0_i32 = arith.constant 0 : i32
    %c0_i32_0 = arith.constant 0 : i32
    %c0_i32_1 = arith.constant 0 : i32
    return %c0_i32, %c0_i32_0 : i32, i32
  }
  func.func @transform_16(%arg0: i32) -> (i32, i32, i32) {
    %c0_i32 = arith.constant 0 : i32
    %c0_i32_0 = arith.constant 0 : i32
    %c0_i32_1 = arith.constant 0 : i32
    %c0_i32_2 = arith.constant 0 : i32
    return %c0_i32, %c0_i32_0, %c0_i32_1 : i32, i32, i32
  }
  func.func @transform_17(%arg0: i32) -> (i32, i32) {
    %c0_i32 = arith.constant 0 : i32
    %c0_i32_0 = arith.constant 0 : i32
    %c0_i32_1 = arith.constant 0 : i32
    return %c0_i32, %c0_i32_0 : i32, i32
  }
  func.func @transform_18(%arg0: i32) -> (i32, i32, i32) {
    %c0_i32 = arith.constant 0 : i32
    %c0_i32_0 = arith.constant 0 : i32
    %c0_i32_1 = arith.constant 0 : i32
    return %arg0, %c0_i32, %c0_i32_0 : i32, i32, i32
  }
  func.func @transform_19(%arg0: i32) -> (i32, i32, i32) {
    %c0_i32 = arith.constant 0 : i32
    %c0_i32_0 = arith.constant 0 : i32
    %c0_i32_1 = arith.constant 0 : i32
    return %arg0, %c0_i32, %c0_i32_0 : i32, i32, i32
  }
}

</mosaic_0001>

<bundles_post_ra>
// kernel: tile.28
= control target key start
LH: loop header
LB: loop body
LE: loop exit
PB: predicated region body
PF: predicated region fallthrough
CT: control target
= control target key end

     0   :  { %s28_s0 = inlined_call_operand.vmem [shape: f32[16], index: 0, kind: input, shape index: {}]   ;;  %s29_s1 = inlined_call_operand.vmem [shape: f32[14,16], index: 1, kind: output, shape index: {}]  }
   0x1   :  { %v4_v0 = vld [vmem:[%s28_s0] ss:$0 sm:$0xff] }
   0x2   :  { %5 = vst [vmem:[%s29_s1] sm:$0xff] %v4_v0  ;;  %8 = vst [vmem:[%s29_s1 + $0x8] sm:$0xff] %v4_v0 }

// kernel: tile.29
= control target key start
LH: loop header
LB: loop body
LE: loop exit
PB: predicated region body
PF: predicated region fallthrough
CT: control target
= control target key end

     0   :  { %s19_s8 = smov 3  ;;  %s82_s9 = smov 112   ;;  %vm4_vm0 = vcmask 130048   ;;  %vm10_vm1 = vcmask 1048448   ;;  %vm16_vm2 = vcmask 917248   ;;  %vm23_vm3 = vcmask 786048   ;;  %s129_s0 = inlined_call_operand.vmem [shape: f32[14,16], index: 0, kind: input, shape index: {}]   ;;  %s130_s1 = inlined_call_operand.vmem [shape: f32[1,224], index: 1, kind: output, shape index: {}]  }
   0x1   :  { %v67_v0 = vld [vmem:[%s129_s0 + $0x7] sm:$0x1]   ;;  %v69_v1 = vld [vmem:[%s129_s0 + $0x5] ss:$8 sm:%s19_s8]   ;;  %s83_s12 = smov 80   ;;  %s26_s15 = smov 3 }
   0x2   :  { %8 = vrot.lane.b32.xlu0 %v67_v0, %s82_s9  ;;  %21 = vrot.lane.b32.xlu1 %v69_v1, %s83_s12  ;;  %v68_v2 = vld [vmem:[%s129_s0 + $0x6] sm:$0x1]   ;;  %s33_s18 = smov 3  ;;  %s40_s19 = smov 3  ;;  %vm30_vm4 = vcmask 654848   ;;  %vm37_vm5 = vcmask 523648  }
   0x3   :  { %v70_v3 = vld [vmem:[%s129_s0 + $0x4] ss:$8 sm:%s26_s15]   ;;  %s84_s20 = smov 96   ;;  %s85_s21 = smov 64   ;;  %v71_v4 = vld [vmem:[%s129_s0 + $0x3] ss:$8 sm:%s33_s18]  }
   0x4   :  { %s2_s24 = smov 3  ;;  %v72_v5 = vld [vmem:[%s129_s0 + $0x2] ss:$8 sm:%s40_s19]   ;;  %s47_s27 = smov 3  ;;  %vm44_vm6 = vcmask 392448   ;;  %vm51_vm7 = vcmask 261248  }
   0x5   :  { %v3_v6 = vld [vmem:[%s129_s0] ss:$8 sm:%s2_s24]   ;;  %s86_s30 = smov 48   ;;  %s87_s2 = smov 32   ;;  %v73_v7 = vld [vmem:[%s129_s0 + $0x1] ss:$8 sm:%s47_s27]  }
   0x6   :  { %14 = vrot.lane.b32.xlu0 %v68_v2, %s84_s20  ;;  %28 = vrot.lane.b32.xlu1 %v70_v3, %s85_s21  ;;  %5 = vst.msk [vmem:[#allocation0] ss:$8 sm:$0x3] %vm4_vm0, %v3_v6   ;;  %s88_s0 = smov 16  }
   0xa   :  { %35 = vrot.lane.b32.xlu0 %v71_v4, %s86_s30  ;;  %42 = vrot.lane.b32.xlu1 %v72_v5, %s87_s2 }
   0xe   :  { %49 = vrot.lane.b32.xlu0 %v73_v7, %s88_s0 }
  0x74   :  { %v9_v8 = vpop.permute.xlu0 %8   ;;  %v22_v9 = vpop.permute.xlu1 %21  }
  0x75   :  { %11 = vst.msk [vmem:[#allocation0] sm:$0x1] %vm10_vm1, %v9_v8  }
  0x78   :  { %v15_v10 = vpop.permute.xlu0 %14   ;;  %v29_v11 = vpop.permute.xlu1 %28  }
  0x79   :  { %17 = vst.msk [vmem:[#allocation0] sm:$0x1] %vm16_vm2, %v15_v10  }
  0x7a   :  { %24 = vst.msk [vmem:[#allocation0] ss:$8 sm:$0x3] %vm23_vm3, %v22_v9  }
  0x7b   :  { %31 = vst.msk [vmem:[#allocation0] ss:$8 sm:$0x3] %vm30_vm4, %v29_v11  }
  0x7c   :  { %v36_v12 = vpop.permute.xlu0 %35   ;;  %v43_v13 = vpop.permute.xlu1 %42  }
  0x7d   :  { %38 = vst.msk [vmem:[#allocation0] ss:$8 sm:$0x3] %vm37_vm5, %v36_v12  }
  0x7e   :  { %45 = vst.msk [vmem:[#allocation0] ss:$8 sm:$0x3] %vm44_vm6, %v43_v13  }
  0x80   :  { %v50_v14 = vpop.permute.xlu0 %49  }
  0x81   :  { %52 = vst.msk [vmem:[#allocation0] ss:$8 sm:$0x3] %vm51_vm7, %v50_v14  }
  0x88   :  { %v57_v15 = vld [vmem:[#allocation0] sm:$0x1]  ;;  %v62_v16 = vld [vmem:[#allocation0 + $0x8] sm:$0x1] }
  0x89   :  { %60 = vst [vmem:[%s130_s1] sm:$0x1] %v57_v15  ;;  %74 = vst [vmem:[%s130_s1 + $0x1] sm:$0x1] %v62_v16 }

// kernel: tile.33
= control target key start
LH: loop header
LB: loop body
LE: loop exit
PB: predicated region body
PF: predicated region fallthrough
CT: control target
= control target key end

     0   :  { %s22_s0 = inlined_call_operand.vmem [shape: f32[32], index: 0, kind: input, shape index: {}]   ;;  %s23_s1 = inlined_call_operand.vmem [shape: f32[7,32], index: 1, kind: output, shape index: {}]  }
   0x1   :  { %v4_v0 = vld [vmem:[%s22_s0] ss:$0 sm:$0xff] }
   0x2   :  { %5 = vst [vmem:[%s23_s1] sm:$0xff] %v4_v0 }

// kernel: tile.34
= control target key start
LH: loop header
LB: loop body
LE: loop exit
PB: predicated region body
PF: predicated region fallthrough
CT: control target
= control target key end

     0   :  { %s13_s8 = smov 3  ;;  %s47_s9 = smov 96   ;;  %vm4_vm0 = vcmask 261120   ;;  %vm10_vm1 = vcmask 1048320   ;;  %vm17_vm2 = vcmask 785920   ;;  %vm24_vm3 = vcmask 523520   ;;  %s78_s0 = inlined_call_operand.vmem [shape: f32[7,32], index: 0, kind: input, shape index: {}]   ;;  %s79_s1 = inlined_call_operand.vmem [shape: f32[1,224], index: 1, kind: output, shape index: {}]  }
   0x1   :  { %v40_v0 = vld [vmem:[%s78_s0 + $0x3] sm:$0x1]   ;;  %s20_s10 = smov 3  ;;  %v41_v1 = vld [vmem:[%s78_s0 + $0x2] ss:$4 sm:%s13_s8]   ;;  %s2_s15 = smov 3 }
   0x2   :  { %8 = vrot.lane.b32.xlu0 %v40_v0, %s47_s9  ;;  %v42_v2 = vld [vmem:[%s78_s0 + $0x1] ss:$4 sm:%s20_s10]   ;;  %s48_s16 = smov 32  }
   0x3   :  { %22 = vrot.lane.b32.xlu1 %v42_v2, %s48_s16  ;;  %v3_v3 = vld [vmem:[%s78_s0] ss:$4 sm:%s2_s15]   ;;  %s49_s0 = smov 64  }
   0x4   :  { %5 = vst.msk [vmem:[#allocation0] ss:$8 sm:$0x3] %vm4_vm0, %v3_v3  }
   0x6   :  { %15 = vrot.lane.b32.xlu0 %v41_v1, %s49_s0 }
  0x74   :  { %v9_v4 = vpop.permute.xlu0 %8  }
  0x75   :  { %11 = vst.msk [vmem:[#allocation0] sm:$0x1] %vm10_vm1, %v9_v4   ;;  %v23_v5 = vpop.permute.xlu1 %22  }
  0x78   :  { %v16_v6 = vpop.permute.xlu0 %15  }
  0x79   :  { %18 = vst.msk [vmem:[#allocation0] ss:$8 sm:$0x3] %vm17_vm2, %v16_v6  }
  0x7a   :  { %25 = vst.msk [vmem:[#allocation0] ss:$8 sm:$0x3] %vm24_vm3, %v23_v5  }
  0x81   :  { %v30_v7 = vld [vmem:[#allocation0] sm:$0x1]  ;;  %v35_v8 = vld [vmem:[#allocation0 + $0x8] sm:$0x1] }
  0x82   :  { %33 = vst [vmem:[%s79_s1] sm:$0x1] %v30_v7  ;;  %43 = vst [vmem:[%s79_s1 + $0x1] sm:$0x1] %v35_v8 }

// kernel: vae_forward.1
= control target key start
LH: loop header
LB: loop body
LE: loop exit
PB: predicated region body
PF: predicated region fallthrough
CT: control target
= control target key end

     0   :  { %s11290_s0 = inlined_call_operand.vmem [shape: bf16[2,128,256], index: 0, kind: input, shape index: {}]   ;;  %s11291_s1 = inlined_call_operand.vmem [shape: f32[2,16,16], index: 1, kind: input, shape index: {}]   ;;  %s11292_s2 = inlined_call_operand.vmem [shape: bf16[128,224], index: 2, kind: input, shape index: {}]   ;;  %s11293_s3 = inlined_call_operand.vmem [shape: f32[1,224], index: 3, kind: input, shape index: {}]   ;;  %s11294_s4 = inlined_call_operand.vmem [shape: bf16[3,224,224], index: 4, kind: input, shape index: {}]   ;;  %s11295_s5 = inlined_call_operand.vmem [shape: f32[1,224], index: 5, kind: input, shape index: {}]   ;;  %s11296_s6 = inlined_call_operand.vmem [shape: bf16[7,224,64], index: 6, kind: input, shape index: {}]   ;;  %s11297_s7 = inlined_call_operand.vmem [shape: f32[1,64], index: 7, kind: input, shape index: {}]   ;;  %s11298_s8 = inlined_call_operand.vmem [shape: f32[64,32], index: 8, kind: input, shape index: {}]   ;;  %s11299_s9 = inlined_call_operand.vmem [shape: f32[1,32], index: 9, kind: input, shape index: {}]   ;;  %s11300_s10 = inlined_call_operand.vmem [shape: f32[16,64], index: 10, kind: input, shape index: {}]   ;;  %s11301_s11 = inlined_call_operand.vmem [shape: f32[1,64], index: 11, kind: input, shape index: {}]   ;;  %s11302_s12 = inlined_call_operand.vmem [shape: bf16[7,64,224], index: 12, kind: input, shape index: {}]   ;;  %s11303_s13 = inlined_call_operand.vmem [shape: f32[1,224], index: 13, kind: input, shape index: {}]   ;;  %s11304_s14 = inlined_call_operand.vmem [shape: bf16[3,224,224], index: 14, kind: input, shape index: {}]   ;;  %s11305_s15 = inlined_call_operand.vmem [shape: f32[1,224], index: 15, kind: input, shape index: {}]   ;;  %s11306_s16 = inlined_call_operand.vmem [shape: bf16[3,224,28], index: 16, kind: input, shape index: {}]   ;;  %s11307_s17 = inlined_call_operand.vmem [shape: f32[1,28], index: 17, kind: input, shape index: {}]   ;;  %s11308_s18 = inlined_call_operand.vmem [shape: f32[2,16,32], index: 18, kind: output, shape index: {0}]   ;;  %s11309_s19 = inlined_call_operand.vmem [shape: f32[2,112,128], index: 19, kind: output, shape index: {1}]  }
   0x1   :  { %11320 = sst [smem:[#allocation9_spill]] %s11290_s0  ;;  %s8605_s0 = smov 0  }
   0x2   :  { %11321 = sst [smem:[#allocation10_spill]] %s11291_s1 }
   0x3   :  { %11322 = sst [smem:[#allocation11_spill]] %s11292_s2 }
   0x4   :  { %11323 = sst [smem:[#allocation12_spill]] %s11293_s3 }
   0x5 LB: > { %s6706_s30 = sadd.s32 4294967295, %s8498_s0   ;;  %p6710_p0 = scmp.ge.s32.totalorder %s8498_s0, 1  ;;  %s8498_s0 = sphi %s8605_s0, %s30_s0  }
   0x6   : > { %p550_p1 = scmp.lt.s32.totalorder %s8498_s0, 3 }
   0x8   : > { %p551_p2 = pnand %p6710_p0, %p550_p1 }
   0xa   : > { %554 = sbr.rel (%p551_p2) target bundleno = 2388 (0x954), region = 92 }
   0xf   : > { %s11324_s1 = sld [smem:[#allocation11_spill]]  ;;  %p616_p3 = scmp.lt.s32.totalorder %s6706_s30, 1  ;;  %v11312_v2 = vmov 0   ;;  %v7789_v17 = vld [vmem:[%s11294_s4 + $0x154] ss:$8 sps:$4 sm:$0xff]   ;;  %vm1316_vm0 = vcmask 785408  }
  0x10   : > { %833 = vmatprep.mubr.bf16.mxu0 %v11312_v2  ;;  %1006 = vmatprep.mubr.bf16.mxu1 %v11312_v2  ;;  %s11325_s24 = sld [smem:[#allocation9_spill]]  ;;  %v7792_v18 = vld [vmem:[%s11294_s4 + $0x74] ss:$8 sps:$4 sm:$0xff]   ;;  %v7787_v21 = vld [vmem:[%s11294_s4 + $0x150] ss:$8 sps:$4 sm:$0xff]   ;;  %vm3222_vm1 = vcmask 523264  }
  0x11   : > { %s11344_s30 = smov (!%p616_p3, %s6706_s30), 1  ;;  %v7790_v22 = vld [vmem:[%s11294_s4 + $0x70] ss:$8 sps:$4 sm:$0xff]   ;;  %v7795_v23 = vld [vmem:[%s11294_s4 + $0x144] ss:$8 sps:$4 sm:$0xff]   ;;  %s11326_s3 = sld [smem:[#allocation12_spill]] }
  0x12   : > { %s7657_s28 = sshll.u32 %s11344_s30, 7  ;;  %v7798_v24 = vld [vmem:[%s11294_s4 + $0x64] ss:$8 sps:$4 sm:$0xff]   ;;  %v7793_v25 = vld [vmem:[%s11294_s4 + $0x140] ss:$8 sps:$4 sm:$0xff]   ;;  %s7658_s2 = sshll.u32 %s11344_s30, 4 }
  0x13   : > { %v7796_v26 = vld [vmem:[%s11294_s4 + $0x60] ss:$8 sps:$4 sm:$0xff]   ;;  %v7801_v27 = vld [vmem:[%s11294_s4 + $0x134] ss:$8 sps:$4 sm:$0xff]   ;;  %v7799_v31 = vld [vmem:[%s11294_s4 + $0x130] ss:$8 sps:$4 sm:$0xff]   ;;  %s630_s27 = scalar_lea.vmem %s11308_s18, %s7658_s2 }
  0x14   : > { %v7804_v28 = vld [vmem:[%s11294_s4 + $0x54] ss:$8 sps:$4 sm:$0xff]   ;;  %v7802_v32 = vld [vmem:[%s11294_s4 + $0x50] ss:$8 sps:$4 sm:$0xff]   ;;  %v7807_v33 = vld [vmem:[%s11294_s4 + $0x124] ss:$8 sps:$4 sm:$0xff]  }
  0x15   : > { %v7742_v0 = vld [vmem:[%s11324_s1 + $0x74] ss:$8 sps:$4 sm:$0xff]   ;;  %v7744_v1 = vld [vmem:[%s11324_s1 + $0x70] ss:$8 sps:$4 sm:$0xff]   ;;  %v7745_v3 = vld [vmem:[%s11324_s1 + $0x64] ss:$8 sps:$4 sm:$0xff]  }
  0x16   : > { %801 = vmatprep.subr.bf16.mxu0 %v7742_v0  ;;  %974 = vmatprep.subr.bf16.mxu1 %v7742_v0  ;;  %v7747_v4 = vld [vmem:[%s11324_s1 + $0x60] ss:$8 sps:$4 sm:$0xff]   ;;  %v7748_v5 = vld [vmem:[%s11324_s1 + $0x54] ss:$8 sps:$4 sm:$0xff]   ;;  %v7750_v6 = vld [vmem:[%s11324_s1 + $0x50] ss:$8 sps:$4 sm:$0xff]   ;;  %s8642_s25 = scalar_lea.vmem %s11325_s24, %s7657_s28 }
  0x17   : > { %802 = vmatpush1.bf16.msra.mxu0 %v7744_v1  ;;  %975 = vmatpush1.bf16.msra.mxu1 %v7744_v1  ;;  %v7751_v7 = vld [vmem:[%s11324_s1 + $0x44] ss:$8 sps:$4 sm:$0xff]   ;;  %v7753_v8 = vld [vmem:[%s11324_s1 + $0x40] ss:$8 sps:$4 sm:$0xff]   ;;  %v7754_v9 = vld [vmem:[%s11324_s1 + $0x34] ss:$8 sps:$4 sm:$0xff]  }
  0x18   : > { %803 = vmatprep.subr.bf16.mxu0 %v7745_v3  ;;  %976 = vmatprep.subr.bf16.mxu1 %v7745_v3  ;;  %v7756_v10 = vld [vmem:[%s11324_s1 + $0x30] ss:$8 sps:$4 sm:$0xff]   ;;  %v7757_v11 = vld [vmem:[%s11324_s1 + $0x24] ss:$8 sps:$4 sm:$0xff]   ;;  %v7759_v12 = vld [vmem:[%s11324_s1 + $0x20] ss:$8 sps:$4 sm:$0xff]  }
  0x19   : > { %v7760_v13 = vld [vmem:[%s11324_s1 + $0x14] ss:$8 sps:$4 sm:$0xff]   ;;  %v7762_v14 = vld [vmem:[%s11324_s1 + $0x10] ss:$8 sps:$4 sm:$0xff]   ;;  %v7763_v15 = vld [vmem:[%s11324_s1 + $0x4] ss:$8 sps:$4 sm:$0xff]  }
  0x1a   : > { %v7765_v16 = vld [vmem:[%s11324_s1] ss:$8 sps:$4 sm:$0xff]   ;;  %v7770_v20 = vld [vmem:[%s8642_s25 + $0x4] ss:$8 sps:$4 sm:$0xff]   ;;  %v7768_v29 = vld [vmem:[%s8642_s25 + $0x10] ss:$8 sps:$4 sm:$0xff]  }
  0x1b   : > { %804 = vmatpush1.bf16.msra.mxu0 %v7747_v4  ;;  %977 = vmatpush1.bf16.msra.mxu1 %v7747_v4  ;;  %v7766_v19 = vld [vmem:[%s8642_s25] ss:$8 sps:$4 sm:$0xff]   ;;  %v7773_v30 = vld [vmem:[%s8642_s25 + $0x14] ss:$8 sps:$4 sm:$0xff]   ;;  %v7810_v34 = vld [vmem:[%s11294_s4 + $0x44] ss:$8 sps:$4 sm:$0xff]  }
  0x1c   : > { %805 = vmatprep.subr.bf16.mxu0 %v7748_v5  ;;  %978 = vmatprep.subr.bf16.mxu1 %v7748_v5  ;;  %v7805_v35 = vld [vmem:[%s11294_s4 + $0x120] ss:$8 sps:$4 sm:$0xff]   ;;  %v7813_v37 = vld [vmem:[%s11294_s4 + $0x114] ss:$8 sps:$4 sm:$0xff]   ;;  %v7776_v40 = vld [vmem:[%s8642_s25 + $0x24] ss:$8 sps:$4 sm:$0xff]  }
  0x1d   : > { %v7808_v36 = vld [vmem:[%s11294_s4 + $0x40] ss:$8 sps:$4 sm:$0xff]   ;;  %v7816_v38 = vld [vmem:[%s11294_s4 + $0x34] ss:$8 sps:$4 sm:$0xff]   ;;  %v7811_v41 = vld [vmem:[%s11294_s4 + $0x110] ss:$8 sps:$4 sm:$0xff]  }
  0x1e   : > { %v7771_v39 = vld [vmem:[%s8642_s25 + $0x20] ss:$8 sps:$4 sm:$0xff]   ;;  %v7814_v42 = vld [vmem:[%s11294_s4 + $0x30] ss:$8 sps:$4 sm:$0xff]   ;;  %v7819_v43 = vld [vmem:[%s11294_s4 + $0x104] ss:$8 sps:$4 sm:$0xff]  }
  0x1f   : > { %806 = vmatpush1.bf16.msra.mxu0 %v7750_v6  ;;  %979 = vmatpush1.bf16.msra.mxu1 %v7750_v6  ;;  %v7822_v44 = vld [vmem:[%s11294_s4 + $0x24] ss:$8 sps:$4 sm:$0xff]   ;;  %v7817_v45 = vld [vmem:[%s11294_s4 + $0x100] ss:$8 sps:$4 sm:$0xff]   ;;  %v7825_v47 = vld [vmem:[%s11294_s4 + $0xf4] ss:$8 sps:$4 sm:$0xff]  }
  0x20   : > { %807 = vmatprep.subr.bf16.mxu0 %v7751_v7  ;;  %980 = vmatprep.subr.bf16.mxu1 %v7751_v7  ;;  %v7820_v46 = vld [vmem:[%s11294_s4 + $0x20] ss:$8 sps:$4 sm:$0xff]   ;;  %v7828_v48 = vld [vmem:[%s11294_s4 + $0x14] ss:$8 sps:$4 sm:$0xff]   ;;  %v7774_v49 = vld [vmem:[%s8642_s25 + $0x30] ss:$8 sps:$4 sm:$0xff]  }
  0x21   : > { %v7779_v50 = vld [vmem:[%s8642_s25 + $0x34] ss:$8 sps:$4 sm:$0xff]   ;;  %v7823_v51 = vld [vmem:[%s11294_s4 + $0xf0] ss:$8 sps:$4 sm:$0xff]   ;;  %v7831_v53 = vld [vmem:[%s11294_s4 + $0xe4] ss:$8 sps:$4 sm:$0xff]  }
  0x22   : > { %v7826_v52 = vld [vmem:[%s11294_s4 + $0x10] ss:$8 sps:$4 sm:$0xff]   ;;  %v7834_v54 = vld [vmem:[%s11294_s4 + $0x4] ss:$8 sps:$4 sm:$0xff]   ;;  %v7829_v55 = vld [vmem:[%s11294_s4 + $0xe0] ss:$8 sps:$4 sm:$0xff]  }
  0x23   : > { %808 = vmatpush1.bf16.msra.mxu0 %v7753_v8  ;;  %981 = vmatpush1.bf16.msra.mxu1 %v7753_v8  ;;  %v7832_v56 = vld [vmem:[%s11294_s4] ss:$8 sps:$4 sm:$0xff]   ;;  %v7837_v57 = vld [vmem:[%s11294_s4 + $0x1b4] ss:$8 sps:$4 sm:$0xff]   ;;  %v7782_v60 = vld [vmem:[%s8642_s25 + $0x44] ss:$8 sps:$4 sm:$0xff]  }
  0x24   : > { %809 = vmatprep.subr.bf16.mxu0 %v7754_v9  ;;  %982 = vmatprep.subr.bf16.mxu1 %v7754_v9  ;;  %v7840_v58 = vld [vmem:[%s11294_s4 + $0xd4] ss:$8 sps:$4 sm:$0xff]   ;;  %v7777_v59 = vld [vmem:[%s8642_s25 + $0x40] ss:$8 sps:$4 sm:$0xff]   ;;  %v7835_v61 = vld [vmem:[%s11294_s4 + $0x1b0] ss:$8 sps:$4 sm:$0xff]  }
  0x25   : > { %v7838_v62 = vld [vmem:[%s11294_s4 + $0xd0] ss:$8 sps:$4 sm:$0xff]   ;;  %v7843_v63 = vld [vmem:[%s11294_s4 + $0x1a4] ss:$8 sps:$4 sm:$0xff]   ;;  %v7841_v1 = vld [vmem:[%s11294_s4 + $0x1a0] ss:$8 sps:$4 sm:$0xff]  }
  0x26   : > { %v7846_v0 = vld [vmem:[%s11294_s4 + $0xc4] ss:$8 sps:$4 sm:$0xff]   ;;  %v7844_v3 = vld [vmem:[%s11294_s4 + $0xc0] ss:$8 sps:$4 sm:$0xff]   ;;  %v7849_v4 = vld [vmem:[%s11294_s4 + $0x194] ss:$8 sps:$4 sm:$0xff]  }
  0x27   : > { %810 = vmatpush1.bf16.msra.mxu0 %v7756_v10  ;;  %983 = vmatpush1.bf16.msra.mxu1 %v7756_v10  ;;  %v7852_v5 = vld [vmem:[%s11294_s4 + $0xb4] ss:$8 sps:$4 sm:$0xff]   ;;  %v7780_v6 = vld [vmem:[%s8642_s25 + $0x50] ss:$8 sps:$4 sm:$0xff]   ;;  %v7783_v10 = vld [vmem:[%s8642_s25 + $0x60] ss:$8 sps:$4 sm:$0xff]  }
  0x28   : > { %811 = vmatprep.subr.bf16.mxu0 %v7757_v11  ;;  %984 = vmatprep.subr.bf16.mxu1 %v7757_v11  ;;  %v7785_v7 = vld [vmem:[%s8642_s25 + $0x54] ss:$8 sps:$4 sm:$0xff]   ;;  %v7847_v8 = vld [vmem:[%s11294_s4 + $0x190] ss:$8 sps:$4 sm:$0xff]   ;;  %v7786_v11 = vld [vmem:[%s8642_s25 + $0x64] ss:$8 sps:$4 sm:$0xff]  }
  0x29   : > { %v7850_v9 = vld [vmem:[%s11294_s4 + $0xb0] ss:$8 sps:$4 sm:$0xff]   ;;  %vm3304_vm2 = vcmask 261120   ;;  %s8501_s29 = smov 112   ;;  %vm3336_vm3 = vcmask 130048   ;;  %vm6532_vm4 = vcmask 228352  }
  0x2a   : > { %vm6547_vm5 = vcmask 457728   ;;  %s7728_s20 = smul.u32 112, %s11344_s30  ;;  %vm6562_vm6 = vcmask 687104   ;;  %vm6577_vm7 = vcmask 916480  }
  0x2b   : > { %812 = vmatpush1.bf16.msra.mxu0 %v7759_v12  ;;  %985 = vmatpush1.bf16.msra.mxu1 %v7759_v12  ;;  %v7855_v12 = vld [vmem:[%s11294_s4 + $0x184] ss:$8 sps:$4 sm:$0xff]  }
  0x2c   : > { %813 = vmatprep.subr.bf16.mxu0 %v7760_v13  ;;  %986 = vmatprep.subr.bf16.mxu1 %v7760_v13  ;;  %v7858_v13 = vld [vmem:[%s11294_s4 + $0xa4] ss:$8 sps:$4 sm:$0xff]   ;;  %s11205_s21 = scalar_lea.vmem %s11309_s19, %s7728_s20 }
  0x2f   : > { %814 = vmatpush1.bf16.msra.mxu0 %v7762_v14  ;;  %987 = vmatpush1.bf16.msra.mxu1 %v7762_v14  ;;  %v7853_v14 = vld [vmem:[%s11294_s4 + $0x180] ss:$8 sps:$4 sm:$0xff]  }
  0x30   : > { %815 = vmatprep.subr.bf16.mxu0 %v7763_v15  ;;  %988 = vmatprep.subr.bf16.mxu1 %v7763_v15  ;;  %v7856_v15 = vld [vmem:[%s11294_s4 + $0xa0] ss:$8 sps:$4 sm:$0xff]  }
  0x33   : > { %816 = vmatpush1.bf16.msra.mxu0 %v7765_v16  ;;  %989 = vmatpush1.bf16.msra.mxu1 %v7765_v16  ;;  %v7861_v16 = vld [vmem:[%s11294_s4 + $0x174] ss:$8 sps:$4 sm:$0xff]  }
  0x34   : > { %1338 = vmatprep.subr.bf16.mxu0 %v7789_v17  ;;  %1602 = vmatprep.subr.bf16.mxu1 %v7792_v18  ;;  %v7864_v17 = vld [vmem:[%s11294_s4 + $0x94] ss:$8 sps:$4 sm:$0xff]   ;;  %v7859_v18 = vld [vmem:[%s11294_s4 + $0x170] ss:$8 sps:$4 sm:$0xff]  }
  0x36   : > { %834 = vmatmul.mubr.bf16.vlgmr.msra.gmra.mxu0 %v7766_v19  ;;  %1007 = vmatmul.mubr.bf16.vlgmr.msra.gmra.mxu1 %v7770_v20  ;;  %v7862_v19 = vld [vmem:[%s11294_s4 + $0x90] ss:$8 sps:$4 sm:$0xff]   ;;  %v7867_v20 = vld [vmem:[%s11294_s4 + $0x164] ss:$8 sps:$4 sm:$0xff]  }
  0x37   : > { %843 = vmatprep.mubr.bf16.mxu0 %v11312_v2  ;;  %1016 = vmatprep.mubr.bf16.mxu1 %v11312_v2 }
  0x38   : > { %1339 = vmatpush1.bf16.msra.mxu0 %v7787_v21  ;;  %1603 = vmatpush1.bf16.msra.mxu1 %v7790_v22  ;;  %v7870_v21 = vld [vmem:[%s11294_s4 + $0x84] ss:$8 sps:$4 sm:$0xff]   ;;  %v7865_v22 = vld [vmem:[%s11294_s4 + $0x160] ss:$8 sps:$4 sm:$0xff]  }
  0x39   : > { %1340 = vmatprep.subr.bf16.mxu0 %v7795_v23  ;;  %1604 = vmatprep.subr.bf16.mxu1 %v7798_v24  ;;  %v7868_v23 = vld [vmem:[%s11294_s4 + $0x80] ss:$8 sps:$4 sm:$0xff]   ;;  %v7873_v24 = vld [vmem:[%s11294_s4 + $0x234] ss:$8 sps:$4 sm:$0xff]  }
  0x3c   : > { %1341 = vmatpush1.bf16.msra.mxu0 %v7793_v25  ;;  %1605 = vmatpush1.bf16.msra.mxu1 %v7796_v26  ;;  %v669_v25 = vlaneseq }
  0x3d   : > { %1342 = vmatprep.subr.bf16.mxu0 %v7801_v27  ;;  %1606 = vmatprep.subr.bf16.mxu1 %v7804_v28 }
  0x3e   : > { %844 = vmatmul.mubr.bf16.gmra.mxu0 %v7768_v29  ;;  %1017 = vmatmul.mubr.bf16.gmra.mxu1 %v7773_v30  ;;  %v670_v26 = vshrl.u32 %v669_v25, 7  ;;  %v667_v29 = vld [vmem:[%s11326_s3] sm:$0x3]  ;;  %s11327_s3 = sld [smem:[#allocation10_spill]] }
  0x3f   : > { %853 = vmatprep.mubr.bf16.mxu0 %v11312_v2  ;;  %1026 = vmatprep.mubr.bf16.mxu1 %v11312_v2 }
  0x40   : > { %1343 = vmatpush1.bf16.msra.mxu0 %v7799_v31  ;;  %1607 = vmatpush1.bf16.msra.mxu1 %v7802_v32  ;;  %v8871_v27 = vsub.s32 0, %v670_v26  ;;  %v8873_v28 = vsub.s32 1, %v670_v26 }
  0x41   : > { %1344 = vmatprep.subr.bf16.mxu0 %v7807_v33  ;;  %1608 = vmatprep.subr.bf16.mxu1 %v7810_v34 }
  0x42   : > { %v8879_v32 = vrot.slane %v667_v29, %v8871_v27  ;;  %v8882_v33 = vrot.slane %v667_v29, %v8873_v28 }
  0x44   : > { %1345 = vmatpush1.bf16.msra.mxu0 %v7805_v35  ;;  %1609 = vmatpush1.bf16.msra.mxu1 %v7808_v36  ;;  %s625_s26 = scalar_lea.vmem %s11327_s3, %s7658_s2  ;;  %s8502_s3 = smov 56  }
  0x45   : > { %1346 = vmatprep.subr.bf16.mxu0 %v7813_v37  ;;  %1610 = vmatprep.subr.bf16.mxu1 %v7816_v38 }
  0x46   : > { %854 = vmatmul.mubr.bf16.gmra.mxu0 %v7771_v39  ;;  %1027 = vmatmul.mubr.bf16.gmra.mxu1 %v7776_v40 }
  0x47   : > { %863 = vmatprep.mubr.bf16.mxu0 %v11312_v2  ;;  %1036 = vmatprep.mubr.bf16.mxu1 %v11312_v2 }
  0x48   : > { %1347 = vmatpush1.bf16.msra.mxu0 %v7811_v41  ;;  %1611 = vmatpush1.bf16.msra.mxu1 %v7814_v42 }
  0x49   : > { %1348 = vmatprep.subr.bf16.mxu0 %v7819_v43  ;;  %1612 = vmatprep.subr.bf16.mxu1 %v7822_v44 }
  0x4c   : > { %1349 = vmatpush1.bf16.msra.mxu0 %v7817_v45  ;;  %1613 = vmatpush1.bf16.msra.mxu1 %v7820_v46 }
  0x4d   : > { %1350 = vmatprep.subr.bf16.mxu0 %v7825_v47  ;;  %1614 = vmatprep.subr.bf16.mxu1 %v7828_v48 }
  0x4e   : > { %864 = vmatmul.mubr.bf16.gmra.mxu0 %v7774_v49  ;;  %1037 = vmatmul.mubr.bf16.gmra.mxu1 %v7779_v50 }
  0x4f   : > { %873 = vmatprep.mubr.bf16.mxu0 %v11312_v2  ;;  %1046 = vmatprep.mubr.bf16.mxu1 %v11312_v2 }
  0x50   : > { %1351 = vmatpush1.bf16.msra.mxu0 %v7823_v51  ;;  %1615 = vmatpush1.bf16.msra.mxu1 %v7826_v52 }
  0x51   : > { %1352 = vmatprep.subr.bf16.mxu0 %v7831_v53  ;;  %1616 = vmatprep.subr.bf16.mxu1 %v7834_v54 }
  0x54   : > { %1353 = vmatpush1.bf16.msra.mxu0 %v7829_v55  ;;  %1617 = vmatpush1.bf16.msra.mxu1 %v7832_v56 }
  0x55   : > { %1358 = vmatprep.subr.bf16.mxu0 %v7837_v57  ;;  %1622 = vmatprep.subr.bf16.mxu1 %v7840_v58 }
  0x56   : > { %874 = vmatmul.mubr.bf16.gmra.mxu0 %v7777_v59  ;;  %1047 = vmatmul.mubr.bf16.gmra.mxu1 %v7782_v60 }
  0x57   : > { %883 = vmatprep.mubr.bf16.mxu0 %v11312_v2  ;;  %1056 = vmatprep.mubr.bf16.mxu1 %v11312_v2 }
  0x58   : > { %1359 = vmatpush2.bf16.msra.mxu0 %v7835_v61  ;;  %1623 = vmatpush2.bf16.msra.mxu1 %v7838_v62  ;;  %v7871_v62 = vld [vmem:[%s11294_s4 + $0x230] ss:$8 sps:$4 sm:$0xff]  }
  0x59   : > { %1360 = vmatprep.subr.bf16.mxu0 %v7843_v63  ;;  %1624 = vmatprep.subr.bf16.mxu1 %v7846_v0 }
  0x5c   : > { %1361 = vmatpush2.bf16.msra.mxu0 %v7841_v1  ;;  %1625 = vmatpush2.bf16.msra.mxu1 %v7844_v3 }
  0x5d   : > { %1362 = vmatprep.subr.bf16.mxu0 %v7849_v4  ;;  %1626 = vmatprep.subr.bf16.mxu1 %v7852_v5  ;;  %v7876_v4 = vld [vmem:[%s11294_s4 + $0x224] ss:$8 sps:$4 sm:$0xff]  }
  0x5e   : > { %884 = vmatmul.mubr.bf16.gmra.mxu0 %v7780_v6  ;;  %1057 = vmatmul.mubr.bf16.gmra.mxu1 %v7785_v7 }
  0x5f   : > { %893 = vmatprep.mubr.bf16.mxu0 %v11312_v2  ;;  %1066 = vmatprep.mubr.bf16.mxu1 %v11312_v2 }
  0x60   : > { %1363 = vmatpush2.bf16.msra.mxu0 %v7847_v8  ;;  %1627 = vmatpush2.bf16.msra.mxu1 %v7850_v9 }
  0x61   : > { %1364 = vmatprep.subr.bf16.mxu0 %v7855_v12  ;;  %1628 = vmatprep.subr.bf16.mxu1 %v7858_v13 }
  0x64   : > { %1365 = vmatpush2.bf16.msra.mxu0 %v7853_v14  ;;  %1629 = vmatpush2.bf16.msra.mxu1 %v7856_v15  ;;  %v7874_v15 = vld [vmem:[%s11294_s4 + $0x220] ss:$8 sps:$4 sm:$0xff]  }
  0x65   : > { %1366 = vmatprep.subr.bf16.mxu0 %v7861_v16  ;;  %1630 = vmatprep.subr.bf16.mxu1 %v7864_v17 }
  0x66   : > { %894 = vmatmul.mubr.bf16.gmra.mxu0 %v7783_v10  ;;  %1067 = vmatmul.mubr.bf16.gmra.mxu1 %v7786_v11 }
  0x67   : > { %1634 = vmatprep.mubr.bf16.mxu1 %v11312_v2 }
  0x68   : > { %1367 = vmatpush2.bf16.msra.mxu0 %v7859_v18  ;;  %1631 = vmatpush2.bf16.msra.mxu1 %v7862_v19 }
  0x69   : > { %1368 = vmatprep.subr.bf16.mxu0 %v7867_v20  ;;  %1632 = vmatprep.subr.bf16.mxu1 %v7870_v21  ;;  %v7879_v21 = vld [vmem:[%s11294_s4 + $0x214] ss:$8 sps:$4 sm:$0xff]  }
  0x6c   : > { %1369 = vmatpush2.bf16.msra.mxu0 %v7865_v22  ;;  %1633 = vmatpush2.bf16.msra.mxu1 %v7868_v23 }
  0x6d   : > { %2234 = vmatprep.subr.bf16.mxu1 %v11312_v2  ;;  %1877 = vmatprep.subr.bf16.mxu0 %v7873_v24 }
  0x6f   : > { %1635 = vmatmul.mubr.bf16.vlgmr.msra.gmra.mxu1 %v11312_v2 }
  0xf6   : > { %v835_v30 = vpop.f32.mrf.mxu0  ;;  %v1008_v31 = vpop.f32.mrf.mxu1 }
  0xf7   : > { %v1009_v36 = vadd.f32 %v1008_v31, %v8879_v32  ;;  %v836_v43 = vadd.f32 %v835_v30, %v8879_v32 }
  0xf8   : > { %v837_v34 = vpop.f32.mrf.mxu0  ;;  %v1010_v35 = vpop.f32.mrf.mxu1 }
  0xf9   : > { %v1011_v38 = vadd.f32 %v1010_v35, %v8882_v33  ;;  %v838_v40 = vadd.f32 %v837_v34, %v8882_v33  ;;  %v1077_v47 = vmax.f32 %v1009_v36, 0.0  ;;  %v904_v56 = vmax.f32 %v836_v43, 0.0  ;;  %v7877_v35 = vld [vmem:[%s11294_s4 + $0x210] ss:$8 sps:$4 sm:$0xff]  }
  0xfa   : > { %v839_v37 = vpop.f32.mrf.mxu0  ;;  %v1012_v39 = vpop.f32.mrf.mxu1 }
  0xfb   : > { %v840_v41 = vadd.f32 %v839_v37, %v8879_v32  ;;  %v1013_v42 = vadd.f32 %v1012_v39, %v8879_v32  ;;  %v1078_v52 = vmax.f32 %v1011_v38, 0.0  ;;  %v905_v54 = vmax.f32 %v838_v40, 0.0  ;;  %v7882_v40 = vld [vmem:[%s11294_s4 + $0x204] ss:$8 sps:$4 sm:$0xff]  }
  0xfc   : > { %v841_v44 = vpop.f32.mrf.mxu0  ;;  %v1014_v45 = vpop.f32.mrf.mxu1 }
  0xfd   : > { %v842_v46 = vadd.f32 %v841_v44, %v8882_v33  ;;  %v1079_v48 = vmax.f32 %v1013_v42, 0.0  ;;  %v1015_v49 = vadd.f32 %v1014_v45, %v8882_v33  ;;  %v906_v50 = vmax.f32 %v840_v41, 0.0 }
  0xfe   : > { %v845_v51 = vpop.f32.mrf.mxu0  ;;  %v1018_v53 = vpop.f32.mrf.mxu1 }
  0xff   : > { %v907_v55 = vmax.f32 %v842_v46, 0.0  ;;  %v1080_v58 = vmax.f32 %v1015_v49, 0.0  ;;  %v8892_v61 = vpack.c.bf16 %v1079_v48, %v1077_v47  ;;  %v1019_v63 = vadd.f32 %v1018_v53, %v8879_v32 }
 0x100   : > { %v847_v57 = vpop.f32.mrf.mxu0  ;;  %v1020_v59 = vpop.f32.mrf.mxu1  ;;  %v932_v0 = vpack.c.bf16 %v906_v50, %v904_v56  ;;  %v846_v10 = vadd.f32 %v845_v51, %v8879_v32  ;;  %v7880_v51 = vld [vmem:[%s11294_s4 + $0x200] ss:$8 sps:$4 sm:$0xff]  }
 0x101   : > { %v933_v60 = vpack.c.bf16 %v907_v55, %v905_v54  ;;  %v8898_v3 = vpack.c.bf16 %v1080_v58, %v1078_v52  ;;  %v1021_v5 = vadd.f32 %v1020_v59, %v8882_v33  ;;  %v848_v7 = vadd.f32 %v847_v57, %v8882_v33  ;;  %v7885_v57 = vld [vmem:[%s11294_s4 + $0x1f4] ss:$8 sps:$4 sm:$0xff]  }
 0x102   : > { %v849_v1 = vpop.f32.mrf.mxu0  ;;  %v1022_v6 = vpop.f32.mrf.mxu1  ;;  %v1081_v14 = vmax.f32 %v1019_v63, 0.0  ;;  %v908_v25 = vmax.f32 %v846_v10, 0.0 }
 0x103   : > { %v850_v8 = vadd.f32 %v849_v1, %v8879_v32  ;;  %6804 = vmatprep.mubr.msk.bf16.mxu0 %vm1316_vm0, %v933_v60  ;;  %v1023_v9 = vadd.f32 %v1022_v6, %v8879_v32  ;;  %6839 = vmatprep.mubr.msk.bf16.mxu1 %vm1316_vm0, %v8898_v3  ;;  %v1082_v20 = vmax.f32 %v1021_v5, 0.0  ;;  %v909_v23 = vmax.f32 %v848_v7, 0.0  ;;  %v7883_v6 = vld [vmem:[%s11294_s4 + $0x1f0] ss:$8 sps:$4 sm:$0xff]  }
 0x104   : > { %v851_v11 = vpop.f32.mrf.mxu0  ;;  %1371 = vmatmul.mubr.bf16.vlgmr.msra.gmra.mxu0 %v932_v0  ;;  %v1024_v12 = vpop.f32.mrf.mxu1  ;;  %1645 = vmatmul.mubr.bf16.gmra.mxu1 %v8892_v61 }
 0x105   : > { %v852_v13 = vadd.f32 %v851_v11, %v8882_v33  ;;  %1878 = vmatpush1.bf16.msra.mxu0 %v7871_v62  ;;  %v1083_v16 = vmax.f32 %v1023_v9, 0.0  ;;  %v1025_v17 = vadd.f32 %v1024_v12, %v8882_v33  ;;  %v910_v18 = vmax.f32 %v850_v8, 0.0  ;;  %v7888_v11 = vld [vmem:[%s11294_s4 + $0x1e4] ss:$8 sps:$4 sm:$0xff]  }
 0x106   : > { %v855_v19 = vpop.f32.mrf.mxu0  ;;  %1879 = vmatprep.subr.bf16.mxu0 %v7876_v4  ;;  %v1028_v22 = vpop.f32.mrf.mxu1 }
 0x107   : > { %v911_v24 = vmax.f32 %v852_v13, 0.0  ;;  %v1084_v29 = vmax.f32 %v1025_v17, 0.0  ;;  %v8920_v34 = vpack.c.bf16 %v1083_v16, %v1081_v14  ;;  %v1029_v36 = vadd.f32 %v1028_v22, %v8879_v32  ;;  %v7886_v22 = vld [vmem:[%s11294_s4 + $0x1e0] ss:$8 sps:$4 sm:$0xff]  }
 0x108   : > { %v857_v26 = vpop.f32.mrf.mxu0  ;;  %v1030_v30 = vpop.f32.mrf.mxu1  ;;  %v934_v37 = vpack.c.bf16 %v910_v18, %v908_v25  ;;  %v856_v46 = vadd.f32 %v855_v19, %v8879_v32 }
 0x109   : > { %v935_v31 = vpack.c.bf16 %v911_v24, %v909_v23  ;;  %1880 = vmatpush1.bf16.msra.mxu0 %v7874_v15  ;;  %v8926_v39 = vpack.c.bf16 %v1084_v29, %v1082_v20  ;;  %v1031_v41 = vadd.f32 %v1030_v30, %v8882_v33  ;;  %v858_v43 = vadd.f32 %v857_v26, %v8882_v33  ;;  %v7891_v30 = vld [vmem:[%s11294_s4 + $0x1d4] ss:$8 sps:$4 sm:$0xff]  }
 0x10a   : > { %v859_v38 = vpop.f32.mrf.mxu0  ;;  %1881 = vmatprep.subr.bf16.mxu0 %v7879_v21  ;;  %v1032_v42 = vpop.f32.mrf.mxu1  ;;  %v1085_v50 = vmax.f32 %v1029_v36, 0.0  ;;  %v912_v62 = vmax.f32 %v856_v46, 0.0 }
 0x10b   : > { %v860_v44 = vadd.f32 %v859_v38, %v8879_v32  ;;  %6805 = vmatprep.mubr.msk.bf16.mxu0 %vm1316_vm0, %v935_v31  ;;  %v1033_v45 = vadd.f32 %v1032_v42, %v8879_v32  ;;  %6840 = vmatprep.mubr.msk.bf16.mxu1 %vm1316_vm0, %v8926_v39  ;;  %v1086_v56 = vmax.f32 %v1031_v41, 0.0  ;;  %v913_v59 = vmax.f32 %v858_v43, 0.0 }
 0x10c   : > { %v861_v47 = vpop.f32.mrf.mxu0  ;;  %1381 = vmatmul.mubr.bf16.gmra.mxu0 %v934_v37  ;;  %v1034_v48 = vpop.f32.mrf.mxu1  ;;  %1655 = vmatmul.mubr.bf16.gmra.mxu1 %v8920_v34 }
 0x10d   : > { %v862_v49 = vadd.f32 %v861_v47, %v8882_v33  ;;  %1882 = vmatpush1.bf16.msra.mxu0 %v7877_v35  ;;  %v1087_v52 = vmax.f32 %v1033_v45, 0.0  ;;  %v1035_v53 = vadd.f32 %v1034_v48, %v8882_v33  ;;  %v914_v54 = vmax.f32 %v860_v44, 0.0  ;;  %v7889_v44 = vld [vmem:[%s11294_s4 + $0x1d0] ss:$8 sps:$4 sm:$0xff]  }
 0x10e   : > { %v865_v55 = vpop.f32.mrf.mxu0  ;;  %1883 = vmatprep.subr.bf16.mxu0 %v7882_v40  ;;  %v1038_v58 = vpop.f32.mrf.mxu1 }
 0x10f   : > { %v915_v60 = vmax.f32 %v862_v49, 0.0  ;;  %v1088_v0 = vmax.f32 %v1035_v53, 0.0  ;;  %v8948_v5 = vpack.c.bf16 %v1087_v52, %v1085_v50  ;;  %v1039_v7 = vadd.f32 %v1038_v58, %v8879_v32  ;;  %v7894_v49 = vld [vmem:[%s11294_s4 + $0x1c4] ss:$8 sps:$4 sm:$0xff]  }
 0x110   : > { %v867_v63 = vpop.f32.mrf.mxu0  ;;  %v1040_v1 = vpop.f32.mrf.mxu1  ;;  %v936_v8 = vpack.c.bf16 %v914_v54, %v912_v62  ;;  %v866_v17 = vadd.f32 %v865_v55, %v8879_v32 }
 0x111   : > { %v937_v4 = vpack.c.bf16 %v915_v60, %v913_v59  ;;  %1884 = vmatpush1.bf16.msra.mxu0 %v7880_v51  ;;  %v8954_v10 = vpack.c.bf16 %v1088_v0, %v1086_v56  ;;  %v1041_v12 = vadd.f32 %v1040_v1, %v8882_v33  ;;  %v868_v14 = vadd.f32 %v867_v63, %v8882_v33  ;;  %v7892_v60 = vld [vmem:[%s11294_s4 + $0x1c0] ss:$8 sps:$4 sm:$0xff]  }
 0x112   : > { %v869_v9 = vpop.f32.mrf.mxu0  ;;  %1885 = vmatprep.subr.bf16.mxu0 %v7885_v57  ;;  %v1042_v13 = vpop.f32.mrf.mxu1  ;;  %v1089_v21 = vmax.f32 %v1039_v7, 0.0  ;;  %v916_v37 = vmax.f32 %v866_v17, 0.0  ;;  %v7895_v17 = vld [vmem:[%s11294_s4 + $0x290] ss:$8 sps:$4 sm:$0xff]  }
 0x113   : > { %v870_v15 = vadd.f32 %v869_v9, %v8879_v32  ;;  %6806 = vmatprep.mubr.msk.bf16.mxu0 %vm1316_vm0, %v937_v4  ;;  %v1043_v16 = vadd.f32 %v1042_v13, %v8879_v32  ;;  %6841 = vmatprep.mubr.msk.bf16.mxu1 %vm1316_vm0, %v8954_v10  ;;  %v1090_v29 = vmax.f32 %v1041_v12, 0.0  ;;  %v917_v35 = vmax.f32 %v868_v14, 0.0 }
 0x114   : > { %v871_v18 = vpop.f32.mrf.mxu0  ;;  %1391 = vmatmul.mubr.bf16.gmra.mxu0 %v936_v8  ;;  %v1044_v19 = vpop.f32.mrf.mxu1  ;;  %1665 = vmatmul.mubr.bf16.gmra.mxu1 %v8948_v5 }
 0x115   : > { %v872_v20 = vadd.f32 %v871_v18, %v8882_v33  ;;  %1886 = vmatpush1.bf16.msra.mxu0 %v7883_v6  ;;  %v1091_v23 = vmax.f32 %v1043_v16, 0.0  ;;  %v1045_v24 = vadd.f32 %v1044_v19, %v8882_v33  ;;  %v918_v25 = vmax.f32 %v870_v15, 0.0  ;;  %v7897_v6 = vld [vmem:[%s11294_s4 + $0x294] ss:$8 sps:$4 sm:$0xff]  }
 0x116   : > { %v875_v26 = vpop.f32.mrf.mxu0  ;;  %1887 = vmatprep.subr.bf16.mxu0 %v7888_v11  ;;  %v1048_v31 = vpop.f32.mrf.mxu1 }
 0x117   : > { %v919_v36 = vmax.f32 %v872_v20, 0.0  ;;  %v1092_v40 = vmax.f32 %v1045_v24, 0.0  ;;  %v8976_v43 = vpack.c.bf16 %v1091_v23, %v1089_v21  ;;  %v1049_v45 = vadd.f32 %v1048_v31, %v8879_v32 }
 0x118   : > { %v877_v38 = vpop.f32.mrf.mxu0  ;;  %v1050_v41 = vpop.f32.mrf.mxu1  ;;  %v938_v46 = vpack.c.bf16 %v918_v25, %v916_v37  ;;  %v876_v55 = vadd.f32 %v875_v26, %v8879_v32 }
 0x119   : > { %v939_v42 = vpack.c.bf16 %v919_v36, %v917_v35  ;;  %1888 = vmatpush1.bf16.msra.mxu0 %v7886_v22  ;;  %v8982_v48 = vpack.c.bf16 %v1092_v40, %v1090_v29  ;;  %v1051_v50 = vadd.f32 %v1050_v41, %v8882_v33  ;;  %v878_v52 = vadd.f32 %v877_v38, %v8882_v33  ;;  %v7900_v22 = vld [vmem:[%s11294_s4 + $0x284] ss:$8 sps:$4 sm:$0xff]   ;;  %v7898_v38 = vld [vmem:[%s11294_s4 + $0x280] ss:$8 sps:$4 sm:$0xff]  }
 0x11a   : > { %v879_v47 = vpop.f32.mrf.mxu0  ;;  %1889 = vmatprep.subr.bf16.mxu0 %v7891_v30  ;;  %v1052_v51 = vpop.f32.mrf.mxu1  ;;  %v1093_v59 = vmax.f32 %v1049_v45, 0.0  ;;  %v920_v11 = vmax.f32 %v876_v55, 0.0  ;;  %v7901_v55 = vld [vmem:[%s11294_s4 + $0x270] ss:$8 sps:$4 sm:$0xff]  }
 0x11b   : > { %v880_v53 = vadd.f32 %v879_v47, %v8879_v32  ;;  %6807 = vmatprep.mubr.msk.bf16.mxu0 %vm1316_vm0, %v939_v42  ;;  %v1053_v54 = vadd.f32 %v1052_v51, %v8879_v32  ;;  %6842 = vmatprep.mubr.msk.bf16.mxu1 %vm1316_vm0, %v8982_v48  ;;  %v1094_v4 = vmax.f32 %v1051_v50, 0.0  ;;  %v921_v8 = vmax.f32 %v878_v52, 0.0 }
 0x11c   : > { %v881_v56 = vpop.f32.mrf.mxu0  ;;  %1401 = vmatmul.mubr.bf16.gmra.mxu0 %v938_v46  ;;  %v1054_v57 = vpop.f32.mrf.mxu1  ;;  %1675 = vmatmul.mubr.bf16.gmra.mxu1 %v8976_v43  ;;  %v7903_v46 = vld [vmem:[%s11294_s4 + $0x274] ss:$8 sps:$4 sm:$0xff]  }
 0x11d   : > { %v882_v58 = vadd.f32 %v881_v56, %v8882_v33  ;;  %1890 = vmatpush1.bf16.msra.mxu0 %v7889_v44  ;;  %v1095_v62 = vmax.f32 %v1053_v54, 0.0  ;;  %v1055_v63 = vadd.f32 %v1054_v57, %v8882_v33  ;;  %v922_v0 = vmax.f32 %v880_v53, 0.0 }
 0x11e   : > { %v885_v1 = vpop.f32.mrf.mxu0  ;;  %1891 = vmatprep.subr.bf16.mxu0 %v7894_v49  ;;  %v1058_v7 = vpop.f32.mrf.mxu1 }
 0x11f   : > { %v923_v9 = vmax.f32 %v882_v58, 0.0  ;;  %v1096_v13 = vmax.f32 %v1055_v63, 0.0  ;;  %v9004_v16 = vpack.c.bf16 %v1095_v62, %v1093_v59  ;;  %v1059_v18 = vadd.f32 %v1058_v7, %v8879_v32  ;;  %v7906_v59 = vld [vmem:[%s11294_s4 + $0x264] ss:$8 sps:$4 sm:$0xff]   ;;  %v7909_v7 = vld [vmem:[%s11294_s4 + $0x254] ss:$8 sps:$4 sm:$0xff]  }
 0x120   : > { %v887_v12 = vpop.f32.mrf.mxu0  ;;  %v1060_v14 = vpop.f32.mrf.mxu1  ;;  %v940_v19 = vpack.c.bf16 %v922_v0, %v920_v11  ;;  %v886_v30 = vadd.f32 %v885_v1, %v8879_v32 }
 0x121   : > { %v941_v15 = vpack.c.bf16 %v923_v9, %v921_v8  ;;  %1892 = vmatpush1.bf16.msra.mxu0 %v7892_v60  ;;  %v9010_v21 = vpack.c.bf16 %v1096_v13, %v1094_v4  ;;  %v1061_v23 = vadd.f32 %v1060_v14, %v8882_v33  ;;  %v888_v25 = vadd.f32 %v887_v12, %v8882_v33  ;;  %v7904_v4 = vld [vmem:[%s11294_s4 + $0x260] ss:$8 sps:$4 sm:$0xff]   ;;  %v7907_v13 = vld [vmem:[%s11294_s4 + $0x250] ss:$8 sps:$4 sm:$0xff]  }
 0x122   : > { %v889_v20 = vpop.f32.mrf.mxu0  ;;  %1897 = vmatprep.subr.bf16.mxu0 %v7897_v6  ;;  %v1062_v24 = vpop.f32.mrf.mxu1  ;;  %v1097_v37 = vmax.f32 %v1059_v18, 0.0  ;;  %v924_v50 = vmax.f32 %v886_v30, 0.0 }
 0x123   : > { %v890_v26 = vadd.f32 %v889_v20, %v8879_v32  ;;  %6808 = vmatprep.mubr.msk.bf16.mxu0 %vm1316_vm0, %v941_v15  ;;  %v1063_v29 = vadd.f32 %v1062_v24, %v8879_v32  ;;  %6843 = vmatprep.mubr.msk.bf16.mxu1 %vm1316_vm0, %v9010_v21  ;;  %v1098_v45 = vmax.f32 %v1061_v23, 0.0  ;;  %v925_v47 = vmax.f32 %v888_v25, 0.0  ;;  %v7912_v15 = vld [vmem:[%s11294_s4 + $0x244] ss:$8 sps:$4 sm:$0xff]   ;;  %v7919_v25 = vld [vmem:[%s11296_s6 + $0x98] sm:$0xff]  }
 0x124   : > { %v891_v31 = vpop.f32.mrf.mxu0  ;;  %1411 = vmatmul.mubr.bf16.gmra.mxu0 %v940_v19  ;;  %v1064_v35 = vpop.f32.mrf.mxu1  ;;  %1685 = vmatmul.mubr.bf16.gmra.mxu1 %v9004_v16 }
 0x125   : > { %v892_v36 = vadd.f32 %v891_v31, %v8882_v33  ;;  %1898 = vmatpush2.bf16.msra.mxu0 %v7895_v17  ;;  %v1099_v40 = vmax.f32 %v1063_v29, 0.0  ;;  %v1065_v41 = vadd.f32 %v1064_v35, %v8882_v33  ;;  %v926_v42 = vmax.f32 %v890_v26, 0.0  ;;  %v7910_v17 = vld [vmem:[%s11294_s4 + $0x240] ss:$8 sps:$4 sm:$0xff]   ;;  %v7920_v26 = vld [vmem:[%s11296_s6 + $0x18] sm:$0xff]   ;;  %v7922_v31 = vld [vmem:[%s11296_s6 + $0x10] sm:$0xff]  }
 0x126   : > { %v895_v44 = vpop.f32.mrf.mxu0  ;;  %1899 = vmatprep.subr.bf16.mxu0 %v7900_v22  ;;  %v1068_v18 = vpop.f32.mrf.mxu1  ;;  %v7918_v22 = vld [vmem:[%s11296_s6 + $0x20] sm:$0xff]  }
 0x127   : > { %v927_v49 = vmax.f32 %v892_v36, 0.0  ;;  %v1100_v52 = vmax.f32 %v1065_v41, 0.0  ;;  %v9032_v54 = vpack.c.bf16 %v1099_v40, %v1097_v37  ;;  %v942_v56 = vpack.c.bf16 %v926_v42, %v924_v50  ;;  %v7923_v36 = vld [vmem:[%s11296_s6 + $0x88] sm:$0xff]   ;;  %v7926_v40 = vld [vmem:[%s11296_s6] sm:$0xff]   ;;  %v7927_v41 = vld [vmem:[%s11296_s6 + $0x78] sm:$0xff]  }
 0x128   : > { %v897_v51 = vpop.f32.mrf.mxu0  ;;  %v896_v63 = vadd.f32 %v895_v44, %v8879_v32  ;;  %v7924_v37 = vld [vmem:[%s11296_s6 + $0x8] sm:$0xff]   ;;  %v7929_v44 = vld [vmem:[%s11296_s6 + $0x70] sm:$0xff]  }
 0x129   : > { %v943_v53 = vpack.c.bf16 %v927_v49, %v925_v47  ;;  %1900 = vmatpush2.bf16.msra.mxu0 %v7898_v38  ;;  %v1116_v58 = vpack.c.bf16 %v1100_v52, %v1098_v45  ;;  %v898_v60 = vadd.f32 %v897_v51, %v8882_v33  ;;  %v7925_v38 = vld [vmem:[%s11296_s6 + $0x80] sm:$0xff]   ;;  %v7928_v42 = vld [vmem:[%s11296_s6 + $0x68] sm:$0xff]   ;;  %v7932_v47 = vld [vmem:[%s11296_s6 + $0x58] sm:$0xff]  }
 0x12a   : > { %v899_v57 = vpop.f32.mrf.mxu0  ;;  %1901 = vmatprep.subr.bf16.mxu0 %v7903_v46  ;;  %v928_v11 = vmax.f32 %v896_v63, 0.0  ;;  %v7930_v45 = vld [vmem:[%s11296_s6 + $0x60] sm:$0xff]   ;;  %v7931_v46 = vld [vmem:[%s11296_s6 + $0xd8] sm:$0xff]   ;;  %v7933_v49 = vld [vmem:[%s11296_s6 + $0xd0] sm:$0xff]  }
 0x12b   : > { %v900_v62 = vadd.f32 %v899_v57, %v8879_v32  ;;  %6809 = vmatprep.mubr.msk.bf16.mxu0 %vm1316_vm0, %v943_v53  ;;  %6844 = vmatprep.mubr.msk.bf16.mxu1 %vm1316_vm0, %v1116_v58  ;;  %v929_v8 = vmax.f32 %v898_v60, 0.0  ;;  %v7934_v50 = vld [vmem:[%s11296_s6 + $0x50] sm:$0xff]   ;;  %v7935_v51 = vld [vmem:[%s11296_s6 + $0xc8] sm:$0xff]   ;;  %v7937_v53 = vld [vmem:[%s11296_s6 + $0xc0] sm:$0xff]  }
 0x12c   : > { %v901_v0 = vpop.f32.mrf.mxu0  ;;  %1421 = vmatmul.mubr.bf16.gmra.mxu0 %v942_v56  ;;  %1695 = vmatmul.mubr.bf16.gmra.mxu1 %v9032_v54  ;;  %v7936_v52 = vld [vmem:[%s11296_s6 + $0x48] sm:$0xff]   ;;  %v7941_v56 = vld [vmem:[%s11296_s6 + $0xb0] sm:$0xff]  }
 0x12d   : > { %v902_v1 = vadd.f32 %v901_v0, %v8882_v33  ;;  %1902 = vmatpush2.bf16.msra.mxu0 %v7901_v55  ;;  %v930_v6 = vmax.f32 %v900_v62, 0.0  ;;  %v7939_v55 = vld [vmem:[%s11296_s6 + $0xb8] sm:$0xff]  }
 0x12e   : > { %1903 = vmatprep.subr.bf16.mxu0 %v7906_v59 }
 0x12f   : > { %v931_v9 = vmax.f32 %v902_v1, 0.0  ;;  %v944_v14 = vpack.c.bf16 %v930_v6, %v928_v11 }
 0x131   : > { %v945_v12 = vpack.c.bf16 %v931_v9, %v929_v8  ;;  %1904 = vmatpush2.bf16.msra.mxu0 %v7904_v4 }
 0x132   : > { %1905 = vmatprep.subr.bf16.mxu0 %v7909_v7 }
 0x133   : > { %6810 = vmatprep.mubr.msk.bf16.mxu0 %vm1316_vm0, %v945_v12 }
 0x134   : > { %1431 = vmatmul.mubr.bf16.gmra.mxu0 %v944_v14 }
 0x135   : > { %1906 = vmatpush2.bf16.msra.mxu0 %v7907_v13  ;;  %6901 = vmatprep.mubr.msk.bf16.mxu0 %vm1316_vm0, %v8898_v3  ;;  %v1070_v3 = vpop.f32.mrf.mxu1 }
 0x136   : > { %1907 = vmatprep.subr.bf16.mxu0 %v7912_v15 }
 0x137   : > { %v1072_v19 = vpop.f32.mrf.mxu1 }
 0x138   : > { %v1073_v23 = vadd.f32 %v1072_v19, %v8879_v32 }
 0x139   : > { %1908 = vmatpush2.bf16.msra.mxu0 %v7910_v17 }
 0x13a   : > { %2362 = vmatprep.subr.bf16.mxu0 %v11312_v2  ;;  %v1103_v30 = vmax.f32 %v1073_v23, 0.0 }
 0x13c   : > { %1910 = vmatmul.mubr.bf16.vlgmr.msra.gmra.mxu0 %v8892_v61  ;;  %v7913_v61 = vld [vmem:[%s11296_s6 + $0x38] sm:$0xff]  }
 0x13d   : > { %6902 = vmatprep.mubr.msk.bf16.mxu0 %vm1316_vm0, %v8926_v39  ;;  %2363 = vmatpush1.bf16.msra.mxu0 %v7913_v61  ;;  %v7914_v39 = vld [vmem:[%s11296_s6 + $0x30] sm:$0xff]  }
 0x13e   : > { %2364 = vmatprep.subr.bf16.mxu0 %v11312_v2 }
 0x141   : > { %2365 = vmatpush1.bf16.msra.mxu0 %v7914_v39 }
 0x142   : > { %2366 = vmatprep.subr.bf16.mxu0 %v11312_v2 }
 0x144   : > { %1920 = vmatmul.mubr.bf16.gmra.mxu0 %v8920_v34  ;;  %v1074_v34 = vpop.f32.mrf.mxu1 }
 0x145   : > { %6903 = vmatprep.mubr.msk.bf16.mxu0 %vm1316_vm0, %v8954_v10  ;;  %v1075_v10 = vadd.f32 %v1074_v34, %v8882_v33 }
 0x146   : > { %v1636_v57 = vpop.f32.mrf.mxu1 }
 0x14c   : > { %1930 = vmatmul.mubr.bf16.gmra.mxu0 %v8948_v5  ;;  %v1071_v5 = vadd.f32 %v1070_v3, %v8882_v33  ;;  %v7917_v33 = vld [vmem:[%s11296_s6 + $0xa0] sm:$0xff]  }
 0x14d   : > { %6904 = vmatprep.mubr.msk.bf16.mxu0 %vm1316_vm0, %v8982_v48  ;;  %v7916_v48 = vld [vmem:[%s11296_s6 + $0x28] sm:$0xff]  }
 0x14e   : > { %v1102_v20 = vmax.f32 %v1071_v5, 0.0  ;;  %2367 = vmatpush1.bf16.msra.mxu0 %v7916_v48 }
 0x14f   : > { %2368 = vmatprep.subr.bf16.mxu0 %v11312_v2 }
 0x152   : > { %2369 = vmatpush1.bf16.msra.mxu0 %v7918_v22 }
 0x153   : > { %2370 = vmatprep.subr.bf16.mxu0 %v11312_v2 }
 0x154   : > { %1940 = vmatmul.mubr.bf16.gmra.mxu0 %v8976_v43  ;;  %v7915_v43 = vld [vmem:[%s11296_s6 + $0xa8] sm:$0xff]  }
 0x155   : > { %6905 = vmatprep.mubr.msk.bf16.mxu0 %vm1316_vm0, %v9010_v21  ;;  %2235 = vmatpush1.bf16.msra.mxu1 %v7915_v43  ;;  %v1104_v21 = vmax.f32 %v1075_v10, 0.0 }
 0x156   : > { %2236 = vmatprep.subr.bf16.mxu1 %v11312_v2  ;;  %2371 = vmatpush1.bf16.msra.mxu0 %v7920_v26 }
 0x157   : > { %v1118_v24 = vpack.c.bf16 %v1104_v21, %v1102_v20  ;;  %2372 = vmatprep.subr.bf16.mxu0 %v11312_v2 }
 0x159   : > { %2237 = vmatpush1.bf16.msra.mxu1 %v7917_v33 }
 0x15a   : > { %2238 = vmatprep.subr.bf16.mxu1 %v11312_v2  ;;  %2373 = vmatpush1.bf16.msra.mxu0 %v7922_v31 }
 0x15b   : > { %2374 = vmatprep.subr.bf16.mxu0 %v11312_v2 }
 0x15c   : > { %1950 = vmatmul.mubr.bf16.gmra.mxu0 %v9004_v16  ;;  %v1069_v16 = vadd.f32 %v1068_v18, %v8879_v32  ;;  %v7921_v32 = vld [vmem:[%s11296_s6 + $0x90] sm:$0xff]  }
 0x15d   : > { %6906 = vmatprep.mubr.msk.bf16.mxu0 %vm1316_vm0, %v1116_v58  ;;  %2239 = vmatpush1.bf16.msra.mxu1 %v7919_v25  ;;  %v1638_v58 = vpop.f32.mrf.mxu1 }
 0x15e   : > { %v1101_v29 = vmax.f32 %v1069_v16, 0.0  ;;  %2240 = vmatprep.subr.bf16.mxu1 %v11312_v2  ;;  %2375 = vmatpush1.bf16.msra.mxu0 %v7924_v37 }
 0x15f   : > { %2376 = vmatprep.subr.bf16.mxu0 %v11312_v2  ;;  %v1640_v59 = vpop.f32.mrf.mxu1 }
 0x160   : > { %v1117_v35 = vpack.c.bf16 %v1103_v30, %v1101_v29 }
 0x161   : > { %2241 = vmatpush1.bf16.msra.mxu1 %v7921_v32  ;;  %v1642_v60 = vpop.f32.mrf.mxu1 }
 0x162   : > { %2242 = vmatprep.subr.bf16.mxu1 %v11312_v2  ;;  %2377 = vmatpush1.bf16.msra.mxu0 %v7926_v40 }
 0x163   : > { %2382 = vmatprep.subr.bf16.mxu0 %v11312_v2 }
 0x164   : > { %1960 = vmatmul.mubr.bf16.gmra.mxu0 %v9032_v54  ;;  %v7938_v54 = vld [vmem:[%s11296_s6 + $0x40] sm:$0xff]  }
 0x165   : > { %6907 = vmatprep.mubr.msk.bf16.mxu0 %vm1316_vm0, %v1118_v24  ;;  %2243 = vmatpush1.bf16.msra.mxu1 %v7923_v36 }
 0x166   : > { %2244 = vmatprep.subr.bf16.mxu1 %v11312_v2  ;;  %2383 = vmatpush2.bf16.msra.mxu0 %v7928_v42 }
 0x167   : > { %2384 = vmatprep.subr.bf16.mxu0 %v11312_v2 }
 0x169   : > { %2245 = vmatpush1.bf16.msra.mxu1 %v7925_v38 }
 0x16a   : > { %2246 = vmatprep.subr.bf16.mxu1 %v11312_v2  ;;  %2385 = vmatpush2.bf16.msra.mxu0 %v7930_v45 }
 0x16b   : > { %2386 = vmatprep.subr.bf16.mxu0 %v11312_v2 }
 0x16c   : > { %1970 = vmatmul.mubr.bf16.gmra.mxu0 %v1117_v35 }
 0x16d   : > { %2247 = vmatpush1.bf16.msra.mxu1 %v7927_v41 }
 0x16e   : > { %2248 = vmatprep.subr.bf16.mxu1 %v11312_v2  ;;  %2387 = vmatpush2.bf16.msra.mxu0 %v7932_v47 }
 0x16f   : > { %2388 = vmatprep.subr.bf16.mxu0 %v11312_v2 }
 0x171   : > { %2249 = vmatpush1.bf16.msra.mxu1 %v7929_v44 }
 0x172   : > { %2254 = vmatprep.subr.bf16.mxu1 %v11312_v2  ;;  %2389 = vmatpush2.bf16.msra.mxu0 %v7934_v50 }
 0x173   : > { %2390 = vmatprep.subr.bf16.mxu0 %v11312_v2 }
 0x175   : > { %2255 = vmatpush2.bf16.msra.mxu1 %v7931_v46  ;;  %v2008_v46 = vld [vmem:[%s11295_s5] sm:$0x3] }
 0x176   : > { %2256 = vmatprep.subr.bf16.mxu1 %v11312_v2  ;;  %2391 = vmatpush2.bf16.msra.mxu0 %v7936_v52  ;;  %v9266_v52 = vrot.slane %v2008_v46, %v8873_v28 }
 0x177   : > { %2392 = vmatprep.subr.bf16.mxu0 %v11312_v2 }
 0x179   : > { %2257 = vmatpush2.bf16.msra.mxu1 %v7933_v49 }
 0x17a   : > { %2258 = vmatprep.subr.bf16.mxu1 %v11312_v2  ;;  %2393 = vmatpush2.bf16.msra.mxu0 %v7938_v54  ;;  %v9269_v54 = vrot.slane %v2008_v46, %v8871_v27 }
 0x17b   : > { %2678 = vmatprep.subr.bf16.mxu0 %v11312_v2 }
 0x17d   : > { %2259 = vmatpush2.bf16.msra.mxu1 %v7935_v51 }
 0x17e   : > { %2260 = vmatprep.subr.bf16.mxu1 %v11312_v2 }
 0x181   : > { %2261 = vmatpush2.bf16.msra.mxu1 %v7937_v53 }
 0x182   : > { %2262 = vmatprep.subr.bf16.mxu1 %v11312_v2 }
 0x185   : > { %2263 = vmatpush2.bf16.msra.mxu1 %v7939_v55 }
 0x186   : > { %2264 = vmatprep.subr.bf16.mxu1 %v11312_v2 }
 0x189   : > { %2265 = vmatpush2.bf16.msra.mxu1 %v7941_v56 }
 0x18a   : > { %2519 = vmatprep.subr.bf16.mxu1 %v11312_v2 }
 0x1c4   : > { %v1372_v62 = vpop.f32.mrf.mxu0  ;;  %v9198_v63 = vpop.f32.mrf.mxu1 }
 0x1c5   : > { %v1637_v47 = vadd.f32 %v1636_v57, %v1372_v62 }
 0x1c6   : > { %v1374_v0 = vpop.f32.mrf.mxu0  ;;  %v1648_v1 = vpop.f32.mrf.mxu1 }
 0x1c7   : > { %v1639_v45 = vadd.f32 %v1638_v58, %v1374_v0 }
 0x1c8   : > { %v1376_v4 = vpop.f32.mrf.mxu0  ;;  %v9200_v6 = vpop.f32.mrf.mxu1 }
 0x1c9   : > { %v1641_v50 = vadd.f32 %v1640_v59, %v1376_v4 }
 0x1ca   : > { %v1378_v7 = vpop.f32.mrf.mxu0  ;;  %v9202_v8 = vpop.f32.mrf.mxu1 }
 0x1cb   : > { %v1643_v56 = vadd.f32 %v1642_v60, %v1378_v7 }
 0x1cc   : > { %v1382_v9 = vpop.f32.mrf.mxu0  ;;  %v9204_v11 = vpop.f32.mrf.mxu1 }
 0x1ce   : > { %v1384_v12 = vpop.f32.mrf.mxu0  ;;  %v9206_v13 = vpop.f32.mrf.mxu1 }
 0x1cf   : > { %v1649_v62 = vadd.f32 %v1648_v1, %v1384_v12  ;;  %v7940_v1 = vld [vmem:[%s11296_s6 + $0x188] sm:$0xff]  }
 0x1d0   : > { %v1386_v14 = vpop.f32.mrf.mxu0  ;;  %v9208_v15 = vpop.f32.mrf.mxu1 }
 0x1d1   : > { %v1651_v46 = vadd.f32 %v9200_v6, %v1386_v14 }
 0x1d2   : > { %v1388_v17 = vpop.f32.mrf.mxu0  ;;  %v9210_v18 = vpop.f32.mrf.mxu1 }
 0x1d4   : > { %v9212_v3 = vpop.f32.mrf.mxu0  ;;  %v9214_v19 = vpop.f32.mrf.mxu1 }
 0x1d6   : > { %v9216_v61 = vpop.f32.mrf.mxu0  ;;  %v9218_v34 = vpop.f32.mrf.mxu1 }
 0x1d8   : > { %v9220_v39 = vpop.f32.mrf.mxu0  ;;  %v9222_v5 = vpop.f32.mrf.mxu1 }
 0x1da   : > { %v9224_v10 = vpop.f32.mrf.mxu0  ;;  %v9226_v43 = vpop.f32.mrf.mxu1 }
 0x1dc   : > { %v9228_v48 = vpop.f32.mrf.mxu0  ;;  %v1676_v21 = vpop.f32.mrf.mxu1 }
 0x1de   : > { %v9230_v20 = vpop.f32.mrf.mxu0  ;;  %v9236_v16 = vpop.f32.mrf.mxu1 }
 0x1e0   : > { %v9232_v33 = vpop.f32.mrf.mxu0  ;;  %v1680_v26 = vpop.f32.mrf.mxu1 }
 0x1e2   : > { %v9234_v22 = vpop.f32.mrf.mxu0 }
 0x1e4   : > { %v1412_v23 = vpop.f32.mrf.mxu0 }
 0x1e5   : > { %v9238_v24 = vadd.f32 %v1676_v21, %v1412_v23 }
 0x1e6   : > { %v9240_v25 = vpop.f32.mrf.mxu0 }
 0x1e8   : > { %v1416_v29 = vpop.f32.mrf.mxu0 }
 0x1e9   : > { %v9242_v30 = vadd.f32 %v1680_v26, %v1416_v29  ;;  %v1647_v29 = vadd.f32 %v9198_v63, %v1382_v9  ;;  %v1657_v9 = vadd.f32 %v9204_v11, %v9212_v3  ;;  %v7942_v11 = vld [vmem:[%s11296_s6 + $0x180] sm:$0xff]   ;;  %v1661_v3 = vadd.f32 %v9208_v15, %v9220_v39  ;;  %v7943_v15 = vld [vmem:[%s11296_s6 + $0x118] sm:$0xff]  }
 0x1ea   : > { %v9244_v32 = vpop.f32.mrf.mxu0  ;;  %v7944_v39 = vld [vmem:[%s11296_s6 + $0x178] sm:$0xff]  }
 0x1ec   : > { %v9246_v31 = vpop.f32.mrf.mxu0 }
 0x1ee   : > { %v9248_v35 = vpop.f32.mrf.mxu0 }
 0x1f0   : > { %v9250_v36 = vpop.f32.mrf.mxu0 }
 0x1f2   : > { %v9252_v37 = vpop.f32.mrf.mxu0 }
 0x1f4   : > { %v9254_v38 = vpop.f32.mrf.mxu0 }
 0x1f6   : > { %v9256_v40 = vpop.f32.mrf.mxu0 }
 0x1f8   : > { %v9258_v41 = vpop.f32.mrf.mxu0 }
 0x1fa   : > { %v9260_v42 = vpop.f32.mrf.mxu0 }
 0x1fc   : > { %v1911_v44 = vpop.f32.mrf.mxu0 }
 0x1fd   : > { %v1980_v53 = vadd.f32 %v1911_v44, %v1637_v47 }
 0x1fe   : > { %v1913_v49 = vpop.f32.mrf.mxu0 }
 0x1ff   : > { %v1981_v51 = vadd.f32 %v1913_v49, %v1639_v45  ;;  %v2020_v57 = vadd.f32 %v9269_v54, %v1980_v53 }
 0x200   : > { %v1915_v55 = vpop.f32.mrf.mxu0 }
 0x201   : > { %v1982_v21 = vadd.f32 %v1915_v55, %v1641_v50  ;;  %v2021_v58 = vadd.f32 %v9266_v52, %v1981_v51  ;;  %v2048_v49 = vmax.f32 %v2020_v57, 0.0  ;;  %v1653_v55 = vadd.f32 %v9202_v8, %v1388_v17 }
 0x202   : > { %v1917_v23 = vpop.f32.mrf.mxu0 }
 0x203   : > { %v2022_v0 = vadd.f32 %v9269_v54, %v1982_v21  ;;  %v1983_v26 = vadd.f32 %v1917_v23, %v1643_v56  ;;  %v2049_v60 = vmax.f32 %v2021_v58, 0.0  ;;  %v1659_v23 = vadd.f32 %v9206_v13, %v9216_v61 }
 0x204   : > { %v1921_v59 = vpop.f32.mrf.mxu0 }
 0x205   : > { %v2023_v4 = vadd.f32 %v9266_v52, %v1983_v26  ;;  %v2050_v44 = vmax.f32 %v2022_v0, 0.0  ;;  %v1984_v50 = vadd.f32 %v1921_v59, %v1647_v29  ;;  %v9295_v26 = vpop.f32.mrf.mxu1 }
 0x206   : > { %v1923_v45 = vpop.f32.mrf.mxu0 }
 0x207   : > { %v2051_v7 = vmax.f32 %v2023_v4, 0.0  ;;  %v1985_v47 = vadd.f32 %v1923_v45, %v1649_v62  ;;  %v2076_v12 = vpack.c.bf16 %v2050_v44, %v2048_v49  ;;  %v2024_v8 = vadd.f32 %v9269_v54, %v1984_v50 }
 0x208   : > { %v1925_v51 = vpop.f32.mrf.mxu0  ;;  %v1663_v45 = vadd.f32 %v9210_v18, %v9224_v10  ;;  %v1667_v18 = vadd.f32 %v9214_v19, %v9228_v48  ;;  %v7945_v19 = vld [vmem:[%s11296_s6 + $0x110] sm:$0xff]  }
 0x209   : > { %v2077_v56 = vpack.c.bf16 %v2051_v7, %v2049_v60  ;;  %v1986_v53 = vadd.f32 %v1925_v51, %v1651_v46  ;;  %v2025_v6 = vadd.f32 %v9266_v52, %v1985_v47  ;;  %v2052_v29 = vmax.f32 %v2024_v8, 0.0  ;;  %v9307_v7 = vpop.f32.mrf.mxu1  ;;  %v7946_v48 = vld [vmem:[%s11296_s6 + $0x170] sm:$0xff]  }
 0x20a   : > { %v1927_v63 = vpop.f32.mrf.mxu0 }
 0x20b   : > { %v2026_v14 = vadd.f32 %v9269_v54, %v1986_v53  ;;  %v1987_v21 = vadd.f32 %v1927_v63, %v1653_v55  ;;  %6965 = vmatprep.mubr.msk.bf16.mxu0 %vm1316_vm0, %v2077_v56  ;;  %v2053_v62 = vmax.f32 %v2025_v6, 0.0  ;;  %v1669_v55 = vadd.f32 %v9218_v34, %v9230_v20  ;;  %v9326_v20 = vpop.f32.mrf.mxu1 }
 0x20c   : > { %v1931_v17 = vpop.f32.mrf.mxu0  ;;  %2395 = vmatmul.mubr.bf16.vlgmr.msra.gmra.mxu0 %v2076_v12  ;;  %v1671_v34 = vadd.f32 %v9222_v5, %v9232_v33  ;;  %v7947_v33 = vld [vmem:[%s11296_s6 + $0x108] sm:$0xff]  }
 0x20d   : > { %v2027_v58 = vadd.f32 %v9266_v52, %v1987_v21  ;;  %v1988_v0 = vadd.f32 %v1931_v17, %v1657_v9  ;;  %2679 = vmatpush1.bf16.msra.mxu0 %v7940_v1  ;;  %v2054_v57 = vmax.f32 %v2026_v14, 0.0  ;;  %v1673_v17 = vadd.f32 %v9226_v43, %v9234_v22 }
 0x20e   : > { %v1933_v59 = vpop.f32.mrf.mxu0  ;;  %2680 = vmatprep.subr.bf16.mxu0 %v11312_v2 }
 0x20f   : > { %v2055_v4 = vmax.f32 %v2027_v58, 0.0  ;;  %v2028_v13 = vadd.f32 %v9269_v54, %v1988_v0  ;;  %v1989_v61 = vadd.f32 %v1933_v59, %v1659_v23  ;;  %v2078_v47 = vpack.c.bf16 %v2054_v57, %v2052_v29 }
 0x210   : > { %v1935_v44 = vpop.f32.mrf.mxu0 }
 0x211   : > { %v2079_v46 = vpack.c.bf16 %v2055_v4, %v2053_v62  ;;  %v1990_v60 = vadd.f32 %v1935_v44, %v1661_v3  ;;  %2681 = vmatpush1.bf16.msra.mxu0 %v7942_v11  ;;  %v2029_v10 = vadd.f32 %v9266_v52, %v1989_v61  ;;  %v2056_v53 = vmax.f32 %v2028_v13, 0.0  ;;  %v7948_v11 = vld [vmem:[%s11296_s6 + $0x168] sm:$0xff]   ;;  %v1690_v3 = vpop.f32.mrf.mxu1 }
 0x212   : > { %v1937_v49 = vpop.f32.mrf.mxu0  ;;  %2682 = vmatprep.subr.bf16.mxu0 %v11312_v2  ;;  %v1679_v62 = vadd.f32 %v9236_v16, %v9240_v25 }
 0x213   : > { %v2030_v50 = vadd.f32 %v9269_v54, %v1990_v60  ;;  %v1991_v51 = vadd.f32 %v1937_v49, %v1663_v45  ;;  %6950 = vmatprep.mubr.msk.bf16.mxu1 %vm1316_vm0, %v2079_v46  ;;  %v2057_v6 = vmax.f32 %v2029_v10, 0.0  ;;  %v7949_v45 = vld [vmem:[%s11296_s6 + $0x100] sm:$0xff]   ;;  %v9356_v60 = vpop.f32.mrf.mxu1 }
 0x214   : > { %v1941_v56 = vpop.f32.mrf.mxu0  ;;  %2267 = vmatmul.mubr.bf16.vlgmr.msra.gmra.mxu1 %v2078_v47  ;;  %v7950_v46 = vld [vmem:[%s11296_s6 + $0x160] sm:$0xff]  }
 0x215   : > { %v2058_v1 = vmax.f32 %v2030_v50, 0.0  ;;  %v2031_v12 = vadd.f32 %v9266_v52, %v1991_v51  ;;  %v1992_v63 = vadd.f32 %v1941_v56, %v1667_v18  ;;  %2520 = vmatpush1.bf16.msra.mxu1 %v7943_v15  ;;  %2683 = vmatpush1.bf16.msra.mxu0 %v7944_v39  ;;  %v1683_v18 = vadd.f32 %v9295_v26, %v9244_v32  ;;  %v7951_v51 = vld [vmem:[%s11296_s6 + $0xf8] sm:$0xff]   ;;  %v1696_v56 = vpop.f32.mrf.mxu1 }
 0x216   : > { %v1943_v9 = vpop.f32.mrf.mxu0  ;;  %2521 = vmatprep.subr.bf16.mxu1 %v11312_v2  ;;  %2684 = vmatprep.subr.bf16.mxu0 %v11312_v2  ;;  %v1687_v32 = vadd.f32 %v9307_v7, %v9246_v31  ;;  %v7954_v31 = vld [vmem:[%s11296_s6 + $0x150] sm:$0xff]   ;;  %v1691_v7 = vadd.f32 %v1690_v3, %v9250_v36  ;;  %v7955_v36 = vld [vmem:[%s11296_s6 + $0xe8] sm:$0xff]  }
 0x217   : > { %v9330_v14 = vpack.c.bf16 %v2058_v1, %v2056_v53  ;;  %v2059_v21 = vmax.f32 %v2031_v12, 0.0  ;;  %v1993_v8 = vadd.f32 %v1943_v9, %v1669_v55  ;;  %v2032_v0 = vadd.f32 %v9269_v54, %v1992_v63  ;;  %v7952_v55 = vld [vmem:[%s11296_s6 + $0x158] sm:$0xff]   ;;  %v7953_v9 = vld [vmem:[%s11296_s6 + $0xf0] sm:$0xff]  }
 0x218   : > { %v1945_v23 = vpop.f32.mrf.mxu0 }
 0x219   : > { %v2081_v58 = vpack.c.bf16 %v2059_v21, %v2057_v6  ;;  %v1994_v5 = vadd.f32 %v1945_v23, %v1671_v34  ;;  %2522 = vmatpush1.bf16.msra.mxu1 %v7945_v19  ;;  %2685 = vmatpush1.bf16.msra.mxu0 %v7946_v48  ;;  %v2033_v57 = vadd.f32 %v9266_v52, %v1993_v8  ;;  %v2060_v13 = vmax.f32 %v2032_v0, 0.0  ;;  %v1698_v6 = vpop.f32.mrf.mxu1 }
 0x21a   : > { %v1947_v59 = vpop.f32.mrf.mxu0  ;;  %2523 = vmatprep.subr.bf16.mxu1 %v11312_v2  ;;  %2686 = vmatprep.subr.bf16.mxu0 %v11312_v2 }
 0x21b   : > { %v2034_v43 = vadd.f32 %v9269_v54, %v1994_v5  ;;  %v1995_v22 = vadd.f32 %v1947_v59, %v1673_v17  ;;  %7008 = vmatprep.mubr.msk.bf16.mxu1 %vm1316_vm0, %v2081_v58  ;;  %v2061_v16 = vmax.f32 %v2033_v57, 0.0  ;;  %v1700_v3 = vpop.f32.mrf.mxu1  ;;  %v1697_v59 = vadd.f32 %v1696_v56, %v9254_v38 }
 0x21c   : > { %v1951_v4 = vpop.f32.mrf.mxu0 }
 0x21d   : > { %v2062_v61 = vmax.f32 %v2034_v43, 0.0  ;;  %v2035_v29 = vadd.f32 %v9266_v52, %v1995_v22  ;;  %v1996_v44 = vadd.f32 %v1951_v4, %v9238_v24  ;;  %2524 = vmatpush1.bf16.msra.mxu1 %v7947_v33  ;;  %2687 = vmatpush1.bf16.msra.mxu0 %v7948_v11  ;;  %v7956_v11 = vld [vmem:[%s11296_s6 + $0x1b8] sm:$0xff]  }
 0x21e   : > { %v1953_v25 = vpop.f32.mrf.mxu0  ;;  %2525 = vmatprep.subr.bf16.mxu1 %v11312_v2  ;;  %2688 = vmatprep.subr.bf16.mxu0 %v11312_v2 }
 0x21f   : > { %v9360_v15 = vpack.c.bf16 %v2062_v61, %v2060_v13  ;;  %v2063_v24 = vmax.f32 %v2035_v29, 0.0  ;;  %v2036_v39 = vadd.f32 %v9269_v54, %v1996_v44  ;;  %v1997_v47 = vadd.f32 %v1953_v25, %v1679_v62  ;;  %v7957_v29 = vld [vmem:[%s11296_s6 + $0xe0] sm:$0xff]   ;;  %v7958_v44 = vld [vmem:[%s11296_s6 + $0x1b0] sm:$0xff]  }
 0x220   : > { %v1955_v49 = vpop.f32.mrf.mxu0  ;;  %v1699_v62 = vadd.f32 %v1698_v6, %v9256_v40  ;;  %v1701_v40 = vadd.f32 %v1700_v3, %v9258_v41  ;;  %v7968_v6 = vld [vmem:[%s11296_s6 + $0x268] sm:$0xff]   ;;  %v7979_v3 = vld [vmem:[%s11296_s6 + $0x1d8] sm:$0xff]  }
 0x221   : > { %v2083_v10 = vpack.c.bf16 %v2063_v24, %v2061_v16  ;;  %v1998_v50 = vadd.f32 %v1955_v49, %v9242_v30  ;;  %2526 = vmatpush1.bf16.msra.mxu1 %v7949_v45  ;;  %2689 = vmatpush1.bf16.msra.mxu0 %v7950_v46  ;;  %v2037_v30 = vadd.f32 %v9266_v52, %v1997_v47  ;;  %v2064_v63 = vmax.f32 %v2036_v39, 0.0  ;;  %v1702_v45 = vpop.f32.mrf.mxu1  ;;  %v7959_v49 = vld [vmem:[%s11296_s6 + $0x148] sm:$0xff]  }
 0x222   : > { %v1957_v53 = vpop.f32.mrf.mxu0  ;;  %2527 = vmatprep.subr.bf16.mxu1 %v11312_v2  ;;  %2690 = vmatprep.subr.bf16.mxu0 %v11312_v2  ;;  %v1703_v39 = vadd.f32 %v1702_v45, %v9260_v42  ;;  %v7990_v45 = vld [vmem:[%s11296_s6 + $0x280] sm:$0xff]  }
 0x223   : > { %v2038_v26 = vadd.f32 %v9269_v54, %v1998_v50  ;;  %v1999_v1 = vadd.f32 %v1957_v53, %v1683_v18  ;;  %7051 = vmatprep.mubr.msk.bf16.mxu0 %vm1316_vm0, %v2083_v10  ;;  %v2065_v8 = vmax.f32 %v2037_v30, 0.0  ;;  %v7960_v18 = vld [vmem:[%s11296_s6 + $0x1a8] sm:$0xff]   ;;  %v7961_v53 = vld [vmem:[%s11296_s6 + $0x140] sm:$0xff]   ;;  %v1693_v30 = vadd.f32 %v9356_v60, %v9252_v37  ;;  %v7963_v37 = vld [vmem:[%s11296_s6 + $0x138] sm:$0xff]  }
 0x224   : > { %v1961_v12 = vpop.f32.mrf.mxu0  ;;  %v7964_v60 = vld [vmem:[%s11296_s6 + $0x198] sm:$0xff]  }
 0x225   : > { %v2066_v19 = vmax.f32 %v2038_v26, 0.0  ;;  %v2039_v48 = vadd.f32 %v9266_v52, %v1999_v1  ;;  %v2000_v34 = vadd.f32 %v1961_v12, %v1687_v32  ;;  %2528 = vmatpush1.bf16.msra.mxu1 %v7951_v51  ;;  %2691 = vmatpush1.bf16.msra.mxu0 %v7952_v55  ;;  %v7962_v32 = vld [vmem:[%s11296_s6 + $0x1a0] sm:$0xff]   ;;  %v1689_v12 = vadd.f32 %v9326_v20, %v9248_v35  ;;  %v7965_v20 = vld [vmem:[%s11296_s6 + $0x130] sm:$0xff]  }
 0x226   : > { %v9387_v21 = vpop.f32.mrf.mxu0  ;;  %2529 = vmatprep.subr.bf16.mxu1 %v11312_v2  ;;  %2692 = vmatprep.subr.bf16.mxu0 %v11312_v2 }
 0x227   : > { %v9391_v17 = vpack.c.bf16 %v2066_v19, %v2064_v63  ;;  %v2067_v23 = vmax.f32 %v2039_v48, 0.0  ;;  %v2040_v58 = vadd.f32 %v9269_v54, %v2000_v34  ;;  %v2001_v48 = vadd.f32 %v9387_v21, %v1689_v12  ;;  %v7966_v34 = vld [vmem:[%s11296_s6 + $0x190] sm:$0xff]   ;;  %v3212_v12 = vld [vmem:[%s11298_s8 + $0x28] sm:$0xff] }
 0x228   : > { %v1965_v0 = vpop.f32.mrf.mxu0 }
 0x229   : > { %v9394_v5 = vpack.c.bf16 %v2067_v23, %v2065_v8  ;;  %v2002_v33 = vadd.f32 %v1965_v0, %v1691_v7  ;;  %2530 = vmatpush1.bf16.msra.mxu1 %v7953_v9  ;;  %2693 = vmatpush1.bf16.msra.mxu0 %v7954_v31  ;;  %v2068_v4 = vmax.f32 %v2040_v58, 0.0  ;;  %v2041_v9 = vadd.f32 %v9266_v52, %v2001_v48  ;;  %v7967_v7 = vld [vmem:[%s11296_s6 + $0x128] sm:$0xff]   ;;  %v7969_v8 = vld [vmem:[%s11296_s6 + $0x120] sm:$0xff]   ;;  %v7972_v58 = vld [vmem:[%s11296_s6 + $0x258] sm:$0xff]  }
 0x22a   : > { %v1967_v57 = vpop.f32.mrf.mxu0  ;;  %2531 = vmatprep.subr.bf16.mxu1 %v11312_v2  ;;  %2698 = vmatprep.subr.bf16.mxu0 %v11312_v2  ;;  %v7970_v23 = vld [vmem:[%s11296_s6 + $0x260] sm:$0xff]   ;;  %v7973_v0 = vld [vmem:[%s11296_s6 + $0x1f0] sm:$0xff]  }
 0x22b   : > { %v2042_v43 = vadd.f32 %v9269_v54, %v2002_v33  ;;  %v2003_v63 = vadd.f32 %v1967_v57, %v1693_v30  ;;  %v2069_v21 = vmax.f32 %v2041_v9, 0.0  ;;  %v7974_v33 = vld [vmem:[%s11296_s6 + $0x250] sm:$0xff]   ;;  %v7980_v57 = vld [vmem:[%s11296_s6 + $0x238] sm:$0xff]  }
 0x22c   : > { %v1971_v22 = vpop.f32.mrf.mxu0  ;;  %v3214_v30 = vld [vmem:[%s11298_s8 + $0x38] sm:$0xff] }
 0x22d   : > { %v2070_v13 = vmax.f32 %v2042_v43, 0.0  ;;  %v2004_v61 = vadd.f32 %v1971_v22, %v1697_v59  ;;  %2532 = vmatpush1.bf16.msra.mxu1 %v7955_v36  ;;  %2699 = vmatpush2.bf16.msra.mxu0 %v7956_v11  ;;  %v2043_v35 = vadd.f32 %v9266_v52, %v2003_v63  ;;  %v7977_v36 = vld [vmem:[%s11296_s6 + $0x1e0] sm:$0xff]   ;;  %v7981_v59 = vld [vmem:[%s11296_s6 + $0x1d0] sm:$0xff]   ;;  %v7983_v22 = vld [vmem:[%s11296_s6 + $0x1c8] sm:$0xff]  }
 0x22e   : > { %v1973_v38 = vpop.f32.mrf.mxu0  ;;  %2533 = vmatprep.subr.bf16.mxu1 %v11312_v2  ;;  %2700 = vmatprep.subr.bf16.mxu0 %v11312_v2  ;;  %v7978_v11 = vld [vmem:[%s11296_s6 + $0x240] sm:$0xff]   ;;  %v7982_v43 = vld [vmem:[%s11296_s6 + $0x230] sm:$0xff]  }
 0x22f   : > { %v9416_v46 = vpack.c.bf16 %v2070_v13, %v2068_v4  ;;  %v2044_v16 = vadd.f32 %v9269_v54, %v2004_v61  ;;  %v2005_v25 = vadd.f32 %v1973_v38, %v1699_v62  ;;  %v2071_v31 = vmax.f32 %v2043_v35, 0.0  ;;  %v7984_v62 = vld [vmem:[%s11296_s6 + $0x298] sm:$0xff]   ;;  %v7985_v4 = vld [vmem:[%s11296_s6 + $0x1c0] sm:$0xff]   ;;  %v7986_v13 = vld [vmem:[%s11296_s6 + $0x290] sm:$0xff]  }
 0x230   : > { %v1975_v24 = vpop.f32.mrf.mxu0  ;;  %v7987_v61 = vld [vmem:[%s11296_s6 + $0x228] sm:$0xff]   ;;  %v7991_v38 = vld [vmem:[%s11296_s6 + $0x218] sm:$0xff]  }
 0x231   : > { %v2006_v47 = vadd.f32 %v1975_v24, %v1701_v40  ;;  %2534 = vmatpush1.bf16.msra.mxu1 %v7957_v29  ;;  %2701 = vmatpush2.bf16.msra.mxu0 %v7958_v44  ;;  %v2045_v10 = vadd.f32 %v9266_v52, %v2005_v25  ;;  %v2072_v51 = vmax.f32 %v2044_v16, 0.0  ;;  %v7988_v29 = vld [vmem:[%s11296_s6 + $0x288] sm:$0xff]   ;;  %v7989_v44 = vld [vmem:[%s11296_s6 + $0x220] sm:$0xff]   ;;  %v7992_v40 = vld [vmem:[%s11296_s6 + $0x278] sm:$0xff]  }
 0x232   : > { %v1977_v41 = vpop.f32.mrf.mxu0  ;;  %2539 = vmatprep.subr.bf16.mxu1 %v11312_v2  ;;  %2702 = vmatprep.subr.bf16.mxu0 %v11312_v2  ;;  %v7993_v16 = vld [vmem:[%s11296_s6 + $0x210] sm:$0xff]   ;;  %v7995_v24 = vld [vmem:[%s11296_s6 + $0x208] sm:$0xff]  }
 0x233   : > { %v2046_v42 = vadd.f32 %v9269_v54, %v2006_v47  ;;  %v2007_v50 = vadd.f32 %v1977_v41, %v1703_v39  ;;  %v2073_v54 = vmax.f32 %v2045_v10, 0.0  ;;  %v7994_v25 = vld [vmem:[%s11296_s6 + $0x270] sm:$0xff]   ;;  %v7996_v39 = vld [vmem:[%s11296_s6 + $0x200] sm:$0xff]   ;;  %v7997_v47 = vld [vmem:[%s11296_s6 + $0x2d8] sm:$0xff]  }
 0x234   : > { %v8002_v41 = vld [vmem:[%s11296_s6 + $0x2b0] sm:$0xff]   ;;  %v8003_v10 = vld [vmem:[%s11296_s6 + $0x2a8] sm:$0xff]  }
 0x235   : > { %v2074_v55 = vmax.f32 %v2046_v42, 0.0  ;;  %v2047_v56 = vadd.f32 %v9266_v52, %v2007_v50  ;;  %2540 = vmatpush2.bf16.msra.mxu1 %v7959_v49  ;;  %2703 = vmatpush2.bf16.msra.mxu0 %v7960_v18  ;;  %v2087_v52 = vpack.c.bf16 %v2071_v31, %v2069_v21  ;;  %v7999_v49 = vld [vmem:[%s11296_s6 + $0x2c8] sm:$0xff]   ;;  %v8001_v18 = vld [vmem:[%s11296_s6 + $0x2b8] sm:$0xff]   ;;  %v8004_v42 = vld [vmem:[%s11296_s6 + $0x2a0] sm:$0xff]  }
 0x236   : > { %2541 = vmatprep.subr.bf16.mxu1 %v11312_v2  ;;  %2704 = vmatprep.subr.bf16.mxu0 %v11312_v2  ;;  %v8005_v50 = vld [vmem:[%s11296_s6 + $0x308] sm:$0xff]   ;;  %v3210_v31 = vld [vmem:[%s11298_s8 + $0x18] sm:$0xff]  ;;  %v3207_v21 = vld [vmem:[%s11298_s8] sm:$0xff] }
 0x237   : > { %v9441_v26 = vpack.c.bf16 %v2074_v55, %v2072_v51  ;;  %v2075_v1 = vmax.f32 %v2047_v56, 0.0  ;;  %v8006_v51 = vld [vmem:[%s11296_s6 + $0x300] sm:$0xff]   ;;  %v8007_v55 = vld [vmem:[%s11296_s6 + $0x2f8] sm:$0xff]   ;;  %v8008_v56 = vld [vmem:[%s11296_s6 + $0x2f0] sm:$0xff]  }
 0x239   : > { %v9445_v19 = vpack.c.bf16 %v2075_v1, %v2073_v54  ;;  %2542 = vmatpush2.bf16.msra.mxu1 %v7961_v53  ;;  %2705 = vmatpush2.bf16.msra.mxu0 %v7962_v32  ;;  %v8009_v53 = vld [vmem:[%s11296_s6 + $0x2e8] sm:$0xff]   ;;  %v8010_v32 = vld [vmem:[%s11296_s6 + $0x2e0] sm:$0xff]   ;;  %v3213_v54 = vld [vmem:[%s11298_s8 + $0x30] sm:$0xff] }
 0x23a   : > { %2543 = vmatprep.subr.bf16.mxu1 %v11312_v2  ;;  %2706 = vmatprep.subr.bf16.mxu0 %v11312_v2 }
 0x23d   : > { %2544 = vmatpush2.bf16.msra.mxu1 %v7963_v37  ;;  %2707 = vmatpush2.bf16.msra.mxu0 %v7964_v60 }
 0x23e   : > { %2545 = vmatprep.subr.bf16.mxu1 %v11312_v2  ;;  %2708 = vmatprep.subr.bf16.mxu0 %v11312_v2 }
 0x241   : > { %2546 = vmatpush2.bf16.msra.mxu1 %v7965_v20  ;;  %2709 = vmatpush2.bf16.msra.mxu0 %v7966_v34 }
 0x242   : > { %2547 = vmatprep.subr.bf16.mxu1 %v11312_v2  ;;  %2996 = vmatprep.subr.bf16.mxu0 %v11312_v2 }
 0x244   : > { %2711 = vmatmul.mubr.bf16.vlgmr.msra.gmra.mxu0 %v9360_v15  ;;  %v7971_v15 = vld [vmem:[%s11296_s6 + $0x1f8] sm:$0xff]  }
 0x245   : > { %2548 = vmatpush2.bf16.msra.mxu1 %v7967_v7  ;;  %2997 = vmatpush1.bf16.msra.mxu0 %v7968_v6  ;;  %v3209_v7 = vld [vmem:[%s11298_s8 + $0x10] sm:$0xff]  ;;  %v3208_v6 = vld [vmem:[%s11298_s8 + $0x8] sm:$0xff] }
 0x246   : > { %7137 = vmatprep.mubr.msk.bf16.mxu0 %vm1316_vm0, %v2087_v52  ;;  %2549 = vmatprep.subr.bf16.mxu1 %v11312_v2 }
 0x247   : > { %2998 = vmatprep.subr.bf16.mxu0 %v11312_v2 }
 0x249   : > { %2550 = vmatpush2.bf16.msra.mxu1 %v7969_v8  ;;  %2999 = vmatpush1.bf16.msra.mxu0 %v7970_v23 }
 0x24a   : > { %2837 = vmatprep.subr.bf16.mxu1 %v11312_v2  ;;  %3000 = vmatprep.subr.bf16.mxu0 %v11312_v2 }
 0x24c   : > { %2552 = vmatmul.mubr.bf16.vlgmr.msra.gmra.mxu1 %v9330_v14  ;;  %v7975_v14 = vld [vmem:[%s11296_s6 + $0x1e8] sm:$0xff]  }
 0x24d   : > { %2838 = vmatpush1.bf16.msra.mxu1 %v7971_v15  ;;  %7094 = vmatprep.mubr.msk.bf16.mxu1 %vm1316_vm0, %v9394_v5  ;;  %v7976_v5 = vld [vmem:[%s11296_s6 + $0x248] sm:$0xff]  }
 0x24e   : > { %3001 = vmatpush1.bf16.msra.mxu0 %v7972_v58  ;;  %2839 = vmatprep.subr.bf16.mxu1 %v11312_v2 }
 0x24f   : > { %3002 = vmatprep.subr.bf16.mxu0 %v11312_v2 }
 0x251   : > { %2840 = vmatpush1.bf16.msra.mxu1 %v7973_v0 }
 0x252   : > { %3003 = vmatpush1.bf16.msra.mxu0 %v7974_v33  ;;  %2841 = vmatprep.subr.bf16.mxu1 %v11312_v2 }
 0x253   : > { %3004 = vmatprep.subr.bf16.mxu0 %v11312_v2 }
 0x255   : > { %2842 = vmatpush1.bf16.msra.mxu1 %v7975_v14 }
 0x256   : > { %3005 = vmatpush1.bf16.msra.mxu0 %v7976_v5  ;;  %2843 = vmatprep.subr.bf16.mxu1 %v11312_v2 }
 0x257   : > { %3006 = vmatprep.subr.bf16.mxu0 %v11312_v2 }
 0x259   : > { %2844 = vmatpush1.bf16.msra.mxu1 %v7977_v36 }
 0x25a   : > { %3007 = vmatpush1.bf16.msra.mxu0 %v7978_v11  ;;  %2845 = vmatprep.subr.bf16.mxu1 %v11312_v2 }
 0x25b   : > { %3008 = vmatprep.subr.bf16.mxu0 %v11312_v2 }
 0x25d   : > { %2846 = vmatpush1.bf16.msra.mxu1 %v7979_v3 }
 0x25e   : > { %3009 = vmatpush1.bf16.msra.mxu0 %v7980_v57  ;;  %2847 = vmatprep.subr.bf16.mxu1 %v11312_v2 }
 0x25f   : > { %3010 = vmatprep.subr.bf16.mxu0 %v11312_v2 }
 0x261   : > { %2848 = vmatpush1.bf16.msra.mxu1 %v7981_v59 }
 0x262   : > { %3011 = vmatpush1.bf16.msra.mxu0 %v7982_v43  ;;  %2849 = vmatprep.subr.bf16.mxu1 %v11312_v2 }
 0x263   : > { %3016 = vmatprep.subr.bf16.mxu0 %v11312_v2 }
 0x265   : > { %2850 = vmatpush1.bf16.msra.mxu1 %v7983_v22 }
 0x266   : > { %3017 = vmatpush2.bf16.msra.mxu0 %v7984_v62  ;;  %2851 = vmatprep.subr.bf16.mxu1 %v11312_v2 }
 0x267   : > { %3018 = vmatprep.subr.bf16.mxu0 %v11312_v2 }
 0x269   : > { %2852 = vmatpush1.bf16.msra.mxu1 %v7985_v4 }
 0x26a   : > { %3019 = vmatpush2.bf16.msra.mxu0 %v7986_v13  ;;  %2857 = vmatprep.subr.bf16.mxu1 %v11312_v2 }
 0x26b   : > { %3020 = vmatprep.subr.bf16.mxu0 %v11312_v2 }
 0x26d   : > { %2858 = vmatpush2.bf16.msra.mxu1 %v7987_v61 }
 0x26e   : > { %3021 = vmatpush2.bf16.msra.mxu0 %v7988_v29  ;;  %2859 = vmatprep.subr.bf16.mxu1 %v11312_v2 }
 0x26f   : > { %3022 = vmatprep.subr.bf16.mxu0 %v11312_v2 }
 0x271   : > { %2860 = vmatpush2.bf16.msra.mxu1 %v7989_v44 }
 0x272   : > { %3023 = vmatpush2.bf16.msra.mxu0 %v7990_v45  ;;  %2861 = vmatprep.subr.bf16.mxu1 %v11312_v2 }
 0x273   : > { %3024 = vmatprep.subr.bf16.mxu0 %v11312_v2 }
 0x275   : > { %2862 = vmatpush2.bf16.msra.mxu1 %v7991_v38 }
 0x276   : > { %3025 = vmatpush2.bf16.msra.mxu0 %v7992_v40  ;;  %2863 = vmatprep.subr.bf16.mxu1 %v11312_v2  ;;  %v7181_v40 = vld [vmem:[%s11297_s7] ss:$0 sm:$0xff] }
 0x277   : > { %3026 = vmatprep.subr.bf16.mxu0 %v11312_v2 }
 0x279   : > { %2864 = vmatpush2.bf16.msra.mxu1 %v7993_v16 }
 0x27a   : > { %3027 = vmatpush2.bf16.msra.mxu0 %v7994_v25  ;;  %2865 = vmatprep.subr.bf16.mxu1 %v11312_v2 }
 0x27b   : > { %7674 = vmatprep.subr.mxu0 %v3214_v30 }
 0x27d   : > { %3029 = vmatmul.mubr.bf16.vlgmr.msra.gmra.mxu0 %v9416_v46  ;;  %2866 = vmatpush2.bf16.msra.mxu1 %v7995_v24  ;;  %v7998_v46 = vld [vmem:[%s11296_s6 + $0x2d0] sm:$0xff]  }
 0x27e   : > { %2867 = vmatprep.subr.bf16.mxu1 %v11312_v2  ;;  %7675 = vmatpush3.msra.mxu0 %v3214_v30  ;;  %v3327_v30 = vld [vmem:[%s11300_s10] sm:$0xff] }
 0x27f   : > { %7676 = vmatprep.subr.mxu0 %v3213_v54 }
 0x280   : > { %7677 = vmatpush3.msra.mxu0 %v3213_v54  ;;  %v8013_v54 = vld [vmem:[%s11302_s12 + $0x34] ss:$8 sps:$4 sm:$0xff]  }
 0x281   : > { %2868 = vmatpush2.bf16.msra.mxu1 %v7996_v39  ;;  %7678 = vmatprep.subr.mxu0 %v3212_v12 }
 0x282   : > { %3155 = vmatprep.subr.bf16.mxu1 %v11312_v2  ;;  %7679 = vmatpush3.msra.mxu0 %v3212_v12  ;;  %v8016_v12 = vld [vmem:[%s11302_s12 + $0x74] ss:$8 sps:$4 sm:$0xff]  }
 0x284   : > { %2870 = vmatmul.mubr.bf16.vlgmr.msra.gmra.mxu1 %v9391_v17  ;;  %v8000_v17 = vld [vmem:[%s11296_s6 + $0x2c0] sm:$0xff]  }
 0x285   : > { %3156 = vmatpush1.bf16.msra.mxu1 %v7997_v47  ;;  %7180 = vmatprep.mubr.msk.bf16.mxu1 %vm1316_vm0, %v9445_v19 }
 0x286   : > { %3157 = vmatprep.subr.bf16.mxu1 %v11312_v2 }
 0x289   : > { %3158 = vmatpush1.bf16.msra.mxu1 %v7998_v46 }
 0x28a   : > { %3159 = vmatprep.subr.bf16.mxu1 %v11312_v2 }
 0x28d   : > { %3160 = vmatpush1.bf16.msra.mxu1 %v7999_v49 }
 0x28e   : > { %3161 = vmatprep.subr.bf16.mxu1 %v11312_v2 }
 0x291   : > { %3162 = vmatpush1.bf16.msra.mxu1 %v8000_v17 }
 0x292   : > { %3163 = vmatprep.subr.bf16.mxu1 %v11312_v2 }
 0x295   : > { %3164 = vmatpush1.bf16.msra.mxu1 %v8001_v18  ;;  %v3328_v18 = vld [vmem:[%s11300_s10 + $0x8] sm:$0xff] }
 0x296   : > { %3165 = vmatprep.subr.bf16.mxu1 %v11312_v2 }
 0x299   : > { %3166 = vmatpush1.bf16.msra.mxu1 %v8002_v41  ;;  %v7182_v41 = vld [vmem:[%s11299_s9] ss:$0 sm:$0xff] }
 0x29a   : > { %3167 = vmatprep.subr.bf16.mxu1 %v11312_v2 }
 0x29d   : > { %3168 = vmatpush1.bf16.msra.mxu1 %v8003_v10 }
 0x29e   : > { %3169 = vmatprep.subr.bf16.mxu1 %v11312_v2 }
 0x2a1   : > { %3170 = vmatpush1.bf16.msra.mxu1 %v8004_v42 }
 0x2a2   : > { %3175 = vmatprep.subr.bf16.mxu1 %v11312_v2 }
 0x2a5   : > { %3176 = vmatpush2.bf16.msra.mxu1 %v8005_v50 }
 0x2a6   : > { %3177 = vmatprep.subr.bf16.mxu1 %v11312_v2 }
 0x2a9   : > { %3178 = vmatpush2.bf16.msra.mxu1 %v8006_v51 }
 0x2aa   : > { %3179 = vmatprep.subr.bf16.mxu1 %v11312_v2 }
 0x2ad   : > { %3180 = vmatpush2.bf16.msra.mxu1 %v8007_v55 }
 0x2ae   : > { %3181 = vmatprep.subr.bf16.mxu1 %v11312_v2 }
 0x2b1   : > { %3182 = vmatpush2.bf16.msra.mxu1 %v8008_v56 }
 0x2b2   : > { %3183 = vmatprep.subr.bf16.mxu1 %v11312_v2 }
 0x2b5   : > { %3184 = vmatpush2.bf16.msra.mxu1 %v8009_v53 }
 0x2b6   : > { %3185 = vmatprep.subr.bf16.mxu1 %v11312_v2 }
 0x2b9   : > { %3186 = vmatpush2.bf16.msra.mxu1 %v8010_v32 }
 0x2ba   : > { %7693 = vmatprep.subr.mxu1 %v3328_v18 }
 0x2bc   : > { %3188 = vmatmul.mubr.bf16.vlgmr.msra.gmra.mxu1 %v9441_v26  ;;  %v3211_v26 = vld [vmem:[%s11298_s8 + $0x20] sm:$0xff] }
 0x2bd   : > { %7680 = vmatprep.subr.mxu0 %v3211_v26  ;;  %7694 = vmatpush3.msra.mxu1 %v3328_v18  ;;  %v8059_v18 = vld [vmem:[%s11302_s12 + $0x130] ss:$8 sps:$4 sm:$0xff]  }
 0x2be   : > { %7681 = vmatpush3.msra.mxu0 %v3211_v26  ;;  %7695 = vmatprep.subr.mxu1 %v3327_v30 }
 0x2bf   : > { %7682 = vmatprep.subr.mxu0 %v3210_v31  ;;  %7696 = vmatpush3.msra.mxu1 %v3327_v30  ;;  %v8079_v30 = vld [vmem:[%s11302_s12 + $0x104] ss:$8 sps:$4 sm:$0xff]  }
 0x2c0   : > { %7683 = vmatpush3.msra.mxu0 %v3210_v31  ;;  %3490 = vmatprep.subr.bf16.mxu1 %v8013_v54  ;;  %v8082_v54 = vld [vmem:[%s11302_s12 + $0x144] ss:$8 sps:$4 sm:$0xff]  }
 0x2c1   : > { %7684 = vmatprep.subr.mxu0 %v3209_v7 }
 0x2c2   : > { %7685 = vmatpush3.msra.mxu0 %v3209_v7 }
 0x2c3   : > { %7686 = vmatprep.subr.mxu0 %v3208_v6 }
 0x2c4   : > { %7687 = vmatpush3.msra.mxu0 %v3208_v6 }
 0x2c5   : > { %7688 = vmatprep.subr.mxu0 %v3207_v21 }
 0x2c6   : > { %7689 = vmatpush3.msra.mxu0 %v3207_v21  ;;  %v8011_v21 = vld [vmem:[%s11302_s12 + $0x30] ss:$8 sps:$4 sm:$0xff]  }
 0x2c7   : > { %3586 = vmatprep.subr.bf16.mxu0 %v8016_v12  ;;  %v8080_v12 = vld [vmem:[%s11302_s12 + $0x140] ss:$8 sps:$4 sm:$0xff]  }
 0x2cc   : > { %v2396_v1 = vpop.f32.mrf.mxu0 }
 0x2ce   : > { %v2398_v63 = vpop.f32.mrf.mxu0 }
 0x2cf   : > { %v8022_v63 = vld [vmem:[%s11302_s12 + $0x64] ss:$8 sps:$4 sm:$0xff]  }
 0x2d0   : > { %v2399_v19 = vpop.f32.mrf.mxu0 }
 0x2d2   : > { %v2401_v37 = vpop.f32.mrf.mxu0 }
 0x2d3   : > { %v8028_v37 = vld [vmem:[%s11302_s12 + $0x54] ss:$8 sps:$4 sm:$0xff]  }
 0x2d4   : > { %v2268_v60 = vpop.f32.mrf.mxu1 }
 0x2d5   : > { %v2397_v48 = vadd.f32 %v2396_v1, %v2268_v60  ;;  %v8014_v1 = vld [vmem:[%s11302_s12 + $0x70] ss:$8 sps:$4 sm:$0xff]  }
 0x2d6   : > { %v2270_v35 = vpop.f32.mrf.mxu1 }
 0x2d7   : > { %v3307_v35 = vld [vmem:[%s625_s26] sm:$0xff] }
 0x2d8   : > { %v2271_v20 = vpop.f32.mrf.mxu1 }
 0x2d9   : > { %v2400_v34 = vadd.f32 %v2399_v19, %v2271_v20  ;;  %v8020_v19 = vld [vmem:[%s11302_s12 + $0x60] ss:$8 sps:$4 sm:$0xff]  }
 0x2da   : > { %v2273_v9 = vpop.f32.mrf.mxu1 }
 0x2db   : > { %v3308_v9 = vld [vmem:[%s625_s26 + $0x8] sm:$0xff]  ;;  %s8503_s26 = smov 28  }
 0x304   : > { %v2712_v52 = vpop.f32.mrf.mxu0 }
 0x306   : > { %v2714_v8 = vpop.f32.mrf.mxu0 }
 0x307   : > { %v8019_v8 = vld [vmem:[%s11302_s12 + $0x24] ss:$8 sps:$4 sm:$0xff]  }
 0x308   : > { %v2715_v23 = vpop.f32.mrf.mxu0 }
 0x30a   : > { %v2717_v15 = vpop.f32.mrf.mxu0 }
 0x30b   : > { %v8025_v15 = vld [vmem:[%s11302_s12 + $0x14] ss:$8 sps:$4 sm:$0xff]  }
 0x30c   : > { %v2553_v58 = vpop.f32.mrf.mxu1 }
 0x30d   : > { %v2560_v0 = vadd.f32 %v2553_v58, %v2397_v48  ;;  %v8026_v48 = vld [vmem:[%s11302_s12 + $0x50] ss:$8 sps:$4 sm:$0xff]  }
 0x30e   : > { %v2555_v33 = vpop.f32.mrf.mxu1  ;;  %v8023_v58 = vld [vmem:[%s11302_s12 + $0x10] ss:$8 sps:$4 sm:$0xff]  }
 0x30f   : > { %v2719_v14 = vadd.f32 %v2712_v52, %v2560_v0  ;;  %v8031_v0 = vld [vmem:[%s11302_s12 + $0x4] ss:$8 sps:$4 sm:$0xff]  }
 0x310   : > { %v2556_v5 = vpop.f32.mrf.mxu1  ;;  %v8034_v33 = vld [vmem:[%s11302_s12 + $0x44] ss:$8 sps:$4 sm:$0xff]  }
 0x311   : > { %v2561_v36 = vadd.f32 %v2556_v5, %v2400_v34  ;;  %v8032_v5 = vld [vmem:[%s11302_s12 + $0x40] ss:$8 sps:$4 sm:$0xff]  }
 0x312   : > { %v2558_v11 = vpop.f32.mrf.mxu1 }
 0x313   : > { %v2720_v3 = vadd.f32 %v2715_v23, %v2561_v36  ;;  %v8017_v23 = vld [vmem:[%s11302_s12 + $0x20] ss:$8 sps:$4 sm:$0xff]   ;;  %v8037_v36 = vld [vmem:[%s11302_s12 + $0xb4] ss:$8 sps:$4 sm:$0xff]  }
 0x314   : > { %v8040_v11 = vld [vmem:[%s11302_s12 + $0xf4] ss:$8 sps:$4 sm:$0xff]  }
 0x33d   : > { %v3030_v57 = vpop.f32.mrf.mxu0 }
 0x33f   : > { %v3032_v59 = vpop.f32.mrf.mxu0 }
 0x341   : > { %v3033_v43 = vpop.f32.mrf.mxu0 }
 0x343   : > { %v3035_v22 = vpop.f32.mrf.mxu0 }
 0x344   : > { %v2871_v62 = vpop.f32.mrf.mxu1 }
 0x345   : > { %v2878_v29 = vadd.f32 %v2871_v62, %v2719_v14  ;;  %v8029_v14 = vld [vmem:[%s11302_s12] ss:$8 sps:$4 sm:$0xff]   ;;  %v8035_v62 = vld [vmem:[%s11302_s12 + $0xb0] ss:$8 sps:$4 sm:$0xff]  }
 0x346   : > { %v2873_v4 = vpop.f32.mrf.mxu1 }
 0x347   : > { %v3037_v45 = vadd.f32 %v3030_v57, %v2878_v29  ;;  %v7185_v57 = vld [vmem:[%s11301_s11] ss:$0 sm:$0xff]  ;;  %v8038_v4 = vld [vmem:[%s11302_s12 + $0xf0] ss:$8 sps:$4 sm:$0xff]   ;;  %v8046_v29 = vld [vmem:[%s11302_s12 + $0xe4] ss:$8 sps:$4 sm:$0xff]  }
 0x348   : > { %v2874_v13 = vpop.f32.mrf.mxu1 }
 0x349   : > { %v2879_v44 = vadd.f32 %v2874_v13, %v2720_v3 }
 0x34a   : > { %v2876_v61 = vpop.f32.mrf.mxu1 }
 0x34b   : > { %v3038_v39 = vadd.f32 %v3033_v43, %v2879_v44  ;;  %v8043_v61 = vld [vmem:[%s11302_s12 + $0xa4] ss:$8 sps:$4 sm:$0xff]   ;;  %v8041_v44 = vld [vmem:[%s11302_s12 + $0xa0] ss:$8 sps:$4 sm:$0xff]  }
 0x37c   : > { %v3189_v38 = vpop.f32.mrf.mxu1 }
 0x37d   : > { %v3196_v16 = vadd.f32 %v3189_v38, %v3037_v45  ;;  %v8044_v45 = vld [vmem:[%s11302_s12 + $0xe0] ss:$8 sps:$4 sm:$0xff]   ;;  %v8049_v38 = vld [vmem:[%s11302_s12 + $0x94] ss:$8 sps:$4 sm:$0xff]  }
 0x37e   : > { %v3191_v25 = vpop.f32.mrf.mxu1 }
 0x37f   : > { %v3205_v24 = vadd.f32 %v7181_v40, %v3196_v16  ;;  %v8047_v16 = vld [vmem:[%s11302_s12 + $0x90] ss:$8 sps:$4 sm:$0xff]  }
 0x380   : > { %v3192_v47 = vpop.f32.mrf.mxu1  ;;  %v8050_v25 = vld [vmem:[%s11302_s12 + $0xd0] ss:$8 sps:$4 sm:$0xff]  }
 0x381   : > { %v3197_v46 = vadd.f32 %v3192_v47, %v3038_v39  ;;  %7690 = vmatprep.mubr.msk.f32.mxu0 %vm3222_vm1, %v3205_v24  ;;  %v8055_v24 = vld [vmem:[%s11302_s12 + $0x84] ss:$8 sps:$4 sm:$0xff]   ;;  %v8053_v47 = vld [vmem:[%s11302_s12 + $0x80] ss:$8 sps:$4 sm:$0xff]  }
 0x382   : > { %v3194_v49 = vpop.f32.mrf.mxu1  ;;  %v8058_v39 = vld [vmem:[%s11302_s12 + $0xc4] ss:$8 sps:$4 sm:$0xff]  }
 0x383   : > { %v3206_v17 = vadd.f32 %v7181_v40, %v3197_v46  ;;  %v8052_v40 = vld [vmem:[%s11302_s12 + $0xd4] ss:$8 sps:$4 sm:$0xff]   ;;  %v8056_v46 = vld [vmem:[%s11302_s12 + $0xc0] ss:$8 sps:$4 sm:$0xff]  }
 0x384   : > { %v8061_v49 = vld [vmem:[%s11302_s12 + $0x134] ss:$8 sps:$4 sm:$0xff]  }
 0x385   : > { %7691 = vmatmul.mubr.msk.f32.vlgmr.msra.gmra.mxu0 %vm3222_vm1, %v3206_v17  ;;  %v8064_v17 = vld [vmem:[%s11302_s12 + $0x174] ss:$8 sps:$4 sm:$0xff]  }
 0x386   : > { %3610 = vmatprep.mubr.bf16.mxu0 %v11312_v2  ;;  %3587 = vmatpush1.bf16.msra.mxu0 %v8014_v1  ;;  %v8077_v1 = vld [vmem:[%s11302_s12 + $0x100] ss:$8 sps:$4 sm:$0xff]  }
 0x387   : > { %3588 = vmatprep.subr.bf16.mxu0 %v8022_v63  ;;  %v8085_v63 = vld [vmem:[%s11302_s12 + $0x1b4] ss:$8 sps:$4 sm:$0xff]  }
 0x38a   : > { %3589 = vmatpush1.bf16.msra.mxu0 %v8020_v19  ;;  %v8083_v19 = vld [vmem:[%s11302_s12 + $0x1b0] ss:$8 sps:$4 sm:$0xff]  }
 0x38b   : > { %3590 = vmatprep.subr.bf16.mxu0 %v8028_v37  ;;  %v8088_v37 = vld [vmem:[%s11302_s12 + $0x1a4] ss:$8 sps:$4 sm:$0xff]  }
 0x38e   : > { %3591 = vmatpush1.bf16.msra.mxu0 %v8026_v48  ;;  %v8103_v48 = vld [vmem:[%s11304_s14 + $0x64] ss:$8 sps:$4 sm:$0xff]  }
 0x38f   : > { %3592 = vmatprep.subr.bf16.mxu0 %v8034_v33  ;;  %v8119_v33 = vld [vmem:[%s11304_s14 + $0x30] ss:$8 sps:$4 sm:$0xff]  }
 0x392   : > { %3593 = vmatpush1.bf16.msra.mxu0 %v8032_v5  ;;  %v8104_v5 = vld [vmem:[%s11304_s14 + $0x220] ss:$8 sps:$4 sm:$0xff]  }
 0x393   : > { %3778 = vmatprep.subr.bf16.mxu0 %v8040_v11  ;;  %v8125_v11 = vld [vmem:[%s11304_s14 + $0x20] ss:$8 sps:$4 sm:$0xff]  }
 0x445   : > { %v7692_v10 = vpop.f32.mrf.mxu0 }
 0x446   : > { %v3301_v42 = vadd.f32 %v7692_v10, %v7182_v41  ;;  %v8067_v10 = vld [vmem:[%s11302_s12 + $0x124] ss:$8 sps:$4 sm:$0xff]  }
 0x447   : > { %v3295_v50 = vpop.f32.mrf.mxu0 }
 0x448   : > { %v3296_v51 = vadd.f32 %v7182_v41, %v3295_v50  ;;  %3306 = vst.msk [vmem:[%s630_s27 + $0x8] sm:$0xff] %vm3304_vm2, %v3301_v42  ;;  %v3310_v55 = vmul.f32 0.5, %v3301_v42  ;;  %v8062_v41 = vld [vmem:[%s11302_s12 + $0x170] ss:$8 sps:$4 sm:$0xff]   ;;  %v8065_v50 = vld [vmem:[%s11302_s12 + $0x120] ss:$8 sps:$4 sm:$0xff]  }
 0x44a   : > { %v3309_v56 = vmul.f32 0.5, %v3296_v51  ;;  %3305 = vst.msk [vmem:[%s630_s27] sm:$0xff] %vm3304_vm2, %v3296_v51  ;;  %v3313_v32 = vmul.f32 1.442695, %v3310_v55  ;;  %v8073_v55 = vld [vmem:[%s11302_s12 + $0x114] ss:$8 sps:$4 sm:$0xff]  }
 0x44b   : > { %s8504_s27 = smov 84  }
 0x44c   : > { %v3311_v53 = vmul.f32 1.442695, %v3309_v56  ;;  %v8076_v56 = vld [vmem:[%s11302_s12 + $0x154] ss:$8 sps:$4 sm:$0xff]  }
 0x44e   : > { %8263 = vpow2.f32 %v3311_v53  ;;  %v8071_v53 = vld [vmem:[%s11302_s12 + $0x110] ss:$8 sps:$4 sm:$0xff]  }
 0x44f   : > { %8265 = vpow2.f32 %v3313_v32  ;;  %v8074_v32 = vld [vmem:[%s11302_s12 + $0x150] ss:$8 sps:$4 sm:$0xff]  }
 0x45b   : > { %v8264_v26 = vpop.eup %8263 }
 0x45c   : > { %3317 = vrot.lane.b32.xlu0 %v8264_v26, %s8501_s29  ;;  %v8266_v60 = vpop.eup %8265  ;;  %v8097_v26 = vld [vmem:[%s11304_s14 + $0x74] ss:$8 sps:$4 sm:$0xff]  }
 0x460   : > { %3319 = vrot.lane.b32.xlu0 %v8266_v60, %s8501_s29  ;;  %v8095_v60 = vld [vmem:[%s11304_s14 + $0x70] ss:$8 sps:$4 sm:$0xff]  }
 0x4ce   : > { %v3318_v20 = vpop.permute.xlu0 %3317 }
 0x4cf   : > { %v3323_v34 = vmul.f32 %v3318_v20, %v3307_v35  ;;  %v8086_v35 = vld [vmem:[%s11302_s12 + $0x1a0] ss:$8 sps:$4 sm:$0xff]   ;;  %v8091_v20 = vld [vmem:[%s11302_s12 + $0x194] ss:$8 sps:$4 sm:$0xff]  }
 0x4d1   : > { %v3325_v31 = vadd.f32 %v3323_v34, %v3296_v51  ;;  %v8068_v51 = vld [vmem:[%s11302_s12 + $0x160] ss:$8 sps:$4 sm:$0xff]  }
 0x4d2   : > { %v3320_v7 = vpop.permute.xlu0 %3319  ;;  %v8101_v34 = vld [vmem:[%s11304_s14 + $0x60] ss:$8 sps:$4 sm:$0xff]  }
 0x4d3   : > { %v3324_v6 = vmul.f32 %v3320_v7, %v3308_v9  ;;  %7697 = vmatprep.mubr.msk.f32.mxu1 %vm3336_vm3, %v3325_v31  ;;  %v8109_v9 = vld [vmem:[%s11304_s14 + $0x54] ss:$8 sps:$4 sm:$0xff]   ;;  %v8089_v31 = vld [vmem:[%s11302_s12 + $0x190] ss:$8 sps:$4 sm:$0xff]   ;;  %v8094_v7 = vld [vmem:[%s11302_s12 + $0x184] ss:$8 sps:$4 sm:$0xff]  }
 0x4d5   : > { %v3326_v52 = vadd.f32 %v3324_v6, %v3301_v42  ;;  %v8070_v42 = vld [vmem:[%s11302_s12 + $0x164] ss:$8 sps:$4 sm:$0xff]   ;;  %v8107_v6 = vld [vmem:[%s11304_s14 + $0x50] ss:$8 sps:$4 sm:$0xff]  }
 0x4d7   : > { %7698 = vmatmul.mubr.msk.f32.vlgmr.msra.gmra.mxu1 %vm3336_vm3, %v3326_v52  ;;  %v8092_v52 = vld [vmem:[%s11302_s12 + $0x180] ss:$8 sps:$4 sm:$0xff]  }
 0x4d8   : > { %3491 = vmatpush1.bf16.msra.mxu1 %v8011_v21  ;;  %3514 = vmatprep.mubr.bf16.mxu1 %v11312_v2  ;;  %v8115_v21 = vld [vmem:[%s11304_s14 + $0x44] ss:$8 sps:$4 sm:$0xff]  }
 0x4d9   : > { %3492 = vmatprep.subr.bf16.mxu1 %v8019_v8  ;;  %v8100_v8 = vld [vmem:[%s11304_s14 + $0x234] ss:$8 sps:$4 sm:$0xff]  }
 0x4dc   : > { %3493 = vmatpush1.bf16.msra.mxu1 %v8017_v23  ;;  %v8113_v23 = vld [vmem:[%s11304_s14 + $0x40] ss:$8 sps:$4 sm:$0xff]  }
 0x4dd   : > { %3494 = vmatprep.subr.bf16.mxu1 %v8025_v15  ;;  %v8121_v15 = vld [vmem:[%s11304_s14 + $0x34] ss:$8 sps:$4 sm:$0xff]  }
 0x4e0   : > { %3495 = vmatpush1.bf16.msra.mxu1 %v8023_v58  ;;  %v8098_v58 = vld [vmem:[%s11304_s14 + $0x230] ss:$8 sps:$4 sm:$0xff]  }
 0x4e1   : > { %3496 = vmatprep.subr.bf16.mxu1 %v8031_v0  ;;  %v8106_v0 = vld [vmem:[%s11304_s14 + $0x224] ss:$8 sps:$4 sm:$0xff]  }
 0x4e4   : > { %3497 = vmatpush1.bf16.msra.mxu1 %v8029_v14  ;;  %v8127_v14 = vld [vmem:[%s11304_s14 + $0x24] ss:$8 sps:$4 sm:$0xff]  }
 0x4e5   : > { %3682 = vmatprep.subr.bf16.mxu1 %v8037_v36  ;;  %v8112_v36 = vld [vmem:[%s11304_s14 + $0x214] ss:$8 sps:$4 sm:$0xff]  }
 0x597   : > { %v7699_v3 = vpop.f32.mrf.mxu1 }
 0x598   : > { %v3415_v43 = vadd.f32 %v7699_v3, %v7185_v57  ;;  %v8133_v3 = vld [vmem:[%s11304_s14 + $0x14] ss:$8 sps:$4 sm:$0xff]  }
 0x599   : > { %v3409_v59 = vpop.f32.mrf.mxu1 }
 0x59a   : > { %v3410_v22 = vadd.f32 %v7185_v57, %v3409_v59  ;;  %v8110_v57 = vld [vmem:[%s11304_s14 + $0x210] ss:$8 sps:$4 sm:$0xff]   ;;  %v8118_v59 = vld [vmem:[%s11304_s14 + $0x204] ss:$8 sps:$4 sm:$0xff]  }
 0x59c   : > { %v9766_v13 = vpack.c.bf16 %v3415_v43, %v3410_v22  ;;  %v8131_v43 = vld [vmem:[%s11304_s14 + $0x10] ss:$8 sps:$4 sm:$0xff]   ;;  %v8139_v22 = vld [vmem:[%s11304_s14 + $0x4] ss:$8 sps:$4 sm:$0xff]  }
 0x59e   : > { %7196 = vmatmul.mubr.msk.bf16.vlgmr.msra.gmra.mxu1 %vm3222_vm1, %v9766_v13  ;;  %7213 = vmatmul.mubr.msk.bf16.vlgmr.msra.gmra.mxu0 %vm3222_vm1, %v9766_v13 }
 0x59f   : > { %3683 = vmatpush1.bf16.msra.mxu1 %v8035_v62  ;;  %3779 = vmatpush1.bf16.msra.mxu0 %v8038_v4  ;;  %v8116_v62 = vld [vmem:[%s11304_s14 + $0x200] ss:$8 sps:$4 sm:$0xff]   ;;  %v8124_v4 = vld [vmem:[%s11304_s14 + $0x1f4] ss:$8 sps:$4 sm:$0xff]  }
 0x5a0   : > { %3684 = vmatprep.subr.bf16.mxu1 %v8043_v61  ;;  %3780 = vmatprep.subr.bf16.mxu0 %v8046_v29  ;;  %v8145_v61 = vld [vmem:[%s11304_s14 + $0xd4] ss:$8 sps:$4 sm:$0xff]   ;;  %v8122_v29 = vld [vmem:[%s11304_s14 + $0x1f0] ss:$8 sps:$4 sm:$0xff]  }
 0x5a1   : > { %3706 = vmatprep.mubr.bf16.mxu1 %v11312_v2  ;;  %3802 = vmatprep.mubr.bf16.mxu0 %v11312_v2 }
 0x5a3   : > { %3685 = vmatpush1.bf16.msra.mxu1 %v8041_v44  ;;  %3781 = vmatpush1.bf16.msra.mxu0 %v8044_v45  ;;  %v8130_v44 = vld [vmem:[%s11304_s14 + $0x1e4] ss:$8 sps:$4 sm:$0xff]   ;;  %v8143_v45 = vld [vmem:[%s11304_s14 + $0xd0] ss:$8 sps:$4 sm:$0xff]  }
 0x5a4   : > { %3686 = vmatprep.subr.bf16.mxu1 %v8049_v38  ;;  %3782 = vmatprep.subr.bf16.mxu0 %v8052_v40  ;;  %v8151_v38 = vld [vmem:[%s11304_s14 + $0xc4] ss:$8 sps:$4 sm:$0xff]   ;;  %v8128_v40 = vld [vmem:[%s11304_s14 + $0x1e0] ss:$8 sps:$4 sm:$0xff]  }
 0x5a7   : > { %3687 = vmatpush1.bf16.msra.mxu1 %v8047_v16  ;;  %3783 = vmatpush1.bf16.msra.mxu0 %v8050_v25  ;;  %v8136_v16 = vld [vmem:[%s11304_s14 + $0x1d4] ss:$8 sps:$4 sm:$0xff]   ;;  %v8149_v25 = vld [vmem:[%s11304_s14 + $0xc0] ss:$8 sps:$4 sm:$0xff]  }
 0x5a8   : > { %3688 = vmatprep.subr.bf16.mxu1 %v8055_v24  ;;  %3784 = vmatprep.subr.bf16.mxu0 %v8058_v39  ;;  %v8157_v24 = vld [vmem:[%s11304_s14 + $0xb4] ss:$8 sps:$4 sm:$0xff]   ;;  %v8134_v39 = vld [vmem:[%s11304_s14 + $0x1d0] ss:$8 sps:$4 sm:$0xff]  }
 0x5ab   : > { %3689 = vmatpush1.bf16.msra.mxu1 %v8053_v47  ;;  %3785 = vmatpush1.bf16.msra.mxu0 %v8056_v46  ;;  %v8142_v47 = vld [vmem:[%s11304_s14 + $0x1c4] ss:$8 sps:$4 sm:$0xff]   ;;  %v8155_v46 = vld [vmem:[%s11304_s14 + $0xb0] ss:$8 sps:$4 sm:$0xff]  }
 0x5ac   : > { %3874 = vmatprep.subr.bf16.mxu1 %v8061_v49  ;;  %3970 = vmatprep.subr.bf16.mxu0 %v8064_v17  ;;  %v8163_v49 = vld [vmem:[%s11304_s14 + $0xa4] ss:$8 sps:$4 sm:$0xff]   ;;  %v8140_v17 = vld [vmem:[%s11304_s14 + $0x1c0] ss:$8 sps:$4 sm:$0xff]  }
 0x5ae   : > { %7230 = vmatmul.mubr.msk.bf16.vlgmr.msra.gmra.mxu1 %vm3222_vm1, %v9766_v13  ;;  %7247 = vmatmul.mubr.msk.bf16.vlgmr.msra.gmra.mxu0 %vm3222_vm1, %v9766_v13 }
 0x5af   : > { %3875 = vmatpush1.bf16.msra.mxu1 %v8059_v18  ;;  %3971 = vmatpush1.bf16.msra.mxu0 %v8062_v41  ;;  %v8148_v18 = vld [vmem:[%s11304_s14 + $0x294] ss:$8 sps:$4 sm:$0xff]   ;;  %v8161_v41 = vld [vmem:[%s11304_s14 + $0xa0] ss:$8 sps:$4 sm:$0xff]  }
 0x5b0   : > { %3876 = vmatprep.subr.bf16.mxu1 %v8067_v10  ;;  %3972 = vmatprep.subr.bf16.mxu0 %v8070_v42  ;;  %v8169_v10 = vld [vmem:[%s11304_s14 + $0x94] ss:$8 sps:$4 sm:$0xff]   ;;  %v8146_v42 = vld [vmem:[%s11304_s14 + $0x290] ss:$8 sps:$4 sm:$0xff]  }
 0x5b1   : > { %3898 = vmatprep.mubr.bf16.mxu1 %v11312_v2  ;;  %3994 = vmatprep.mubr.bf16.mxu0 %v11312_v2 }
 0x5b3   : > { %3877 = vmatpush1.bf16.msra.mxu1 %v8065_v50  ;;  %3973 = vmatpush1.bf16.msra.mxu0 %v8068_v51  ;;  %v8154_v50 = vld [vmem:[%s11304_s14 + $0x284] ss:$8 sps:$4 sm:$0xff]   ;;  %v8167_v51 = vld [vmem:[%s11304_s14 + $0x90] ss:$8 sps:$4 sm:$0xff]  }
 0x5b4   : > { %3878 = vmatprep.subr.bf16.mxu1 %v8073_v55  ;;  %3974 = vmatprep.subr.bf16.mxu0 %v8076_v56  ;;  %v8175_v55 = vld [vmem:[%s11304_s14 + $0x84] ss:$8 sps:$4 sm:$0xff]   ;;  %v8152_v56 = vld [vmem:[%s11304_s14 + $0x280] ss:$8 sps:$4 sm:$0xff]  }
 0x5b7   : > { %3879 = vmatpush1.bf16.msra.mxu1 %v8071_v53  ;;  %3975 = vmatpush1.bf16.msra.mxu0 %v8074_v32  ;;  %v8160_v53 = vld [vmem:[%s11304_s14 + $0x274] ss:$8 sps:$4 sm:$0xff]   ;;  %v8173_v32 = vld [vmem:[%s11304_s14 + $0x80] ss:$8 sps:$4 sm:$0xff]  }
 0x5b8   : > { %3880 = vmatprep.subr.bf16.mxu1 %v8079_v30  ;;  %3976 = vmatprep.subr.bf16.mxu0 %v8082_v54  ;;  %v8181_v30 = vld [vmem:[%s11304_s14 + $0x154] ss:$8 sps:$4 sm:$0xff]   ;;  %v8158_v54 = vld [vmem:[%s11304_s14 + $0x270] ss:$8 sps:$4 sm:$0xff]  }
 0x5bb   : > { %3881 = vmatpush1.bf16.msra.mxu1 %v8077_v1  ;;  %3977 = vmatpush1.bf16.msra.mxu0 %v8080_v12  ;;  %v8166_v1 = vld [vmem:[%s11304_s14 + $0x264] ss:$8 sps:$4 sm:$0xff]   ;;  %v8164_v12 = vld [vmem:[%s11304_s14 + $0x260] ss:$8 sps:$4 sm:$0xff]  }
 0x5bc   : > { %4066 = vmatprep.subr.bf16.mxu1 %v8085_v63  ;;  %4320 = vmatprep.subr.bf16.mxu0 %v8097_v26  ;;  %v8172_v63 = vld [vmem:[%s11304_s14 + $0x254] ss:$8 sps:$4 sm:$0xff]   ;;  %v8170_v26 = vld [vmem:[%s11304_s14 + $0x250] ss:$8 sps:$4 sm:$0xff]  }
 0x5be   : > { %7264 = vmatmul.mubr.msk.bf16.vlgmr.msra.gmra.mxu1 %vm3222_vm1, %v9766_v13  ;;  %7281 = vmatmul.mubr.msk.bf16.vlgmr.msra.gmra.mxu0 %vm3222_vm1, %v9766_v13 }
 0x5bf   : > { %4067 = vmatpush1.bf16.msra.mxu1 %v8083_v19  ;;  %4090 = vmatprep.mubr.bf16.mxu1 %v11312_v2  ;;  %v8178_v19 = vld [vmem:[%s11304_s14 + $0x244] ss:$8 sps:$4 sm:$0xff]  }
 0x5c0   : > { %4068 = vmatprep.subr.bf16.mxu1 %v8088_v37  ;;  %4321 = vmatpush1.bf16.msra.mxu0 %v8095_v60  ;;  %v8176_v37 = vld [vmem:[%s11304_s14 + $0x240] ss:$8 sps:$4 sm:$0xff]  }
 0x5c1   : > { %4322 = vmatprep.subr.bf16.mxu0 %v8103_v48  ;;  %v3419_v60 = vld [vmem:[%s11303_s13] sm:$0x3] }
 0x5c3   : > { %4069 = vmatpush1.bf16.msra.mxu1 %v8086_v35 }
 0x5c4   : > { %4070 = vmatprep.subr.bf16.mxu1 %v8091_v20  ;;  %4323 = vmatpush1.bf16.msra.mxu0 %v8101_v34  ;;  %v10071_v20 = vrot.slane %v3419_v60, %v8873_v28  ;;  %v10074_v34 = vrot.slane %v3419_v60, %v8871_v27 }
 0x5c5   : > { %4324 = vmatprep.subr.bf16.mxu0 %v8109_v9 }
 0x5c7   : > { %4071 = vmatpush1.bf16.msra.mxu1 %v8089_v31 }
 0x5c8   : > { %4072 = vmatprep.subr.bf16.mxu1 %v8094_v7  ;;  %4325 = vmatpush1.bf16.msra.mxu0 %v8107_v6 }
 0x5c9   : > { %4326 = vmatprep.subr.bf16.mxu0 %v8115_v21 }
 0x5cb   : > { %4073 = vmatpush1.bf16.msra.mxu1 %v8092_v52 }
 0x5cc   : > { %4663 = vmatprep.subr.bf16.mxu1 %v8100_v8  ;;  %4327 = vmatpush1.bf16.msra.mxu0 %v8113_v23 }
 0x5cd   : > { %4328 = vmatprep.subr.bf16.mxu0 %v8121_v15 }
 0x5ce   : > { %7298 = vmatmul.mubr.msk.bf16.vlgmr.msra.gmra.mxu1 %vm3222_vm1, %v9766_v13  ;;  %v8137_v13 = vld [vmem:[%s11304_s14] ss:$8 sps:$4 sm:$0xff]  }
 0x5cf   : > { %4664 = vmatpush1.bf16.msra.mxu1 %v8098_v58 }
 0x5d0   : > { %4665 = vmatprep.subr.bf16.mxu1 %v8106_v0  ;;  %4329 = vmatpush1.bf16.msra.mxu0 %v8119_v33 }
 0x5d1   : > { %4330 = vmatprep.subr.bf16.mxu0 %v8127_v14 }
 0x5d3   : > { %4666 = vmatpush1.bf16.msra.mxu1 %v8104_v5 }
 0x5d4   : > { %4667 = vmatprep.subr.bf16.mxu1 %v8112_v36  ;;  %4331 = vmatpush1.bf16.msra.mxu0 %v8125_v11 }
 0x5d5   : > { %4332 = vmatprep.subr.bf16.mxu0 %v8133_v3 }
 0x5d7   : > { %4668 = vmatpush1.bf16.msra.mxu1 %v8110_v57 }
 0x5d8   : > { %4669 = vmatprep.subr.bf16.mxu1 %v8118_v59  ;;  %4333 = vmatpush1.bf16.msra.mxu0 %v8131_v43  ;;  %v8179_v43 = vld [vmem:[%s11304_s14 + $0x150] ss:$8 sps:$4 sm:$0xff]  }
 0x5d9   : > { %4334 = vmatprep.subr.bf16.mxu0 %v8139_v22 }
 0x5db   : > { %4670 = vmatpush1.bf16.msra.mxu1 %v8116_v62 }
 0x5dc   : > { %4671 = vmatprep.subr.bf16.mxu1 %v8124_v4  ;;  %4335 = vmatpush1.bf16.msra.mxu0 %v8137_v13  ;;  %v8184_v4 = vld [vmem:[%s11304_s14 + $0x144] ss:$8 sps:$4 sm:$0xff]  }
 0x5dd   : > { %4340 = vmatprep.subr.bf16.mxu0 %v8145_v61  ;;  %v10096_v61 = vld [vmem:[%s11306_s16 + $0x38] sm:$0xff]  }
 0x5df   : > { %4672 = vmatpush1.bf16.msra.mxu1 %v8122_v29 }
 0x5e0   : > { %4673 = vmatprep.subr.bf16.mxu1 %v8130_v44  ;;  %4341 = vmatpush2.bf16.msra.mxu0 %v8143_v45  ;;  %v8182_v44 = vld [vmem:[%s11304_s14 + $0x140] ss:$8 sps:$4 sm:$0xff]  }
 0x5e1   : > { %4342 = vmatprep.subr.bf16.mxu0 %v8151_v38 }
 0x5e3   : > { %4674 = vmatpush1.bf16.msra.mxu1 %v8128_v40 }
 0x5e4   : > { %4675 = vmatprep.subr.bf16.mxu1 %v8136_v16  ;;  %4343 = vmatpush2.bf16.msra.mxu0 %v8149_v25  ;;  %v8187_v16 = vld [vmem:[%s11304_s14 + $0x134] ss:$8 sps:$4 sm:$0xff]  }
 0x5e5   : > { %4344 = vmatprep.subr.bf16.mxu0 %v8157_v24  ;;  %v10113_v25 = vld [vmem:[%s11306_s16 + $0x30] sm:$0xff]  }
 0x5e7   : > { %4676 = vmatpush1.bf16.msra.mxu1 %v8134_v39 }
 0x5e8   : > { %4677 = vmatprep.subr.bf16.mxu1 %v8142_v47  ;;  %4345 = vmatpush2.bf16.msra.mxu0 %v8155_v46  ;;  %v8185_v46 = vld [vmem:[%s11304_s14 + $0x130] ss:$8 sps:$4 sm:$0xff]  }
 0x5e9   : > { %4346 = vmatprep.subr.bf16.mxu0 %v8163_v49 }
 0x5eb   : > { %4678 = vmatpush1.bf16.msra.mxu1 %v8140_v17 }
 0x5ec   : > { %4683 = vmatprep.subr.bf16.mxu1 %v8148_v18  ;;  %4347 = vmatpush2.bf16.msra.mxu0 %v8161_v41  ;;  %v8190_v41 = vld [vmem:[%s11304_s14 + $0x124] ss:$8 sps:$4 sm:$0xff]  }
 0x5ed   : > { %4348 = vmatprep.subr.bf16.mxu0 %v8169_v10 }
 0x5ef   : > { %4684 = vmatpush2.bf16.msra.mxu1 %v8146_v42 }
 0x5f0   : > { %4685 = vmatprep.subr.bf16.mxu1 %v8154_v50  ;;  %4349 = vmatpush2.bf16.msra.mxu0 %v8167_v51  ;;  %v10130_v50 = vld [vmem:[%s11306_s16 + $0x28] sm:$0xff]  }
 0x5f1   : > { %4350 = vmatprep.subr.bf16.mxu0 %v8175_v55 }
 0x5f3   : > { %4686 = vmatpush2.bf16.msra.mxu1 %v8152_v56 }
 0x5f4   : > { %4687 = vmatprep.subr.bf16.mxu1 %v8160_v53  ;;  %4351 = vmatpush2.bf16.msra.mxu0 %v8173_v32 }
 0x5f5   : > { %4906 = vmatprep.subr.bf16.mxu0 %v8181_v30 }
 0x5f7   : > { %4688 = vmatpush2.bf16.msra.mxu1 %v8158_v54  ;;  %v8188_v54 = vld [vmem:[%s11304_s14 + $0x120] ss:$8 sps:$4 sm:$0xff]  }
 0x5f8   : > { %4689 = vmatprep.subr.bf16.mxu1 %v8166_v1 }
 0x5fb   : > { %4690 = vmatpush2.bf16.msra.mxu1 %v8164_v12  ;;  %v8193_v12 = vld [vmem:[%s11304_s14 + $0x114] ss:$8 sps:$4 sm:$0xff]  }
 0x5fc   : > { %4691 = vmatprep.subr.bf16.mxu1 %v8172_v63 }
 0x5ff   : > { %4692 = vmatpush2.bf16.msra.mxu1 %v8170_v26 }
 0x600   : > { %4693 = vmatprep.subr.bf16.mxu1 %v8178_v19 }
 0x603   : > { %4694 = vmatpush2.bf16.msra.mxu1 %v8176_v37 }
 0x604   : > { %5219 = vmatprep.subr.bf16.mxu1 %v11312_v2 }
 0x65e   : > { %v3516_v48 = vpop.f32.mrf.mxu1  ;;  %v3612_v35 = vpop.f32.mrf.mxu0 }
 0x65f   : > { %v3517_v8 = vadd.f32 %v3516_v48, %v10074_v34  ;;  %v3613_v29 = vadd.f32 %v3612_v35, %v10074_v34  ;;  %v8191_v35 = vld [vmem:[%s11304_s14 + $0x110] ss:$8 sps:$4 sm:$0xff]  }
 0x660   : > { %v3518_v9 = vpop.f32.mrf.mxu1  ;;  %v3614_v31 = vpop.f32.mrf.mxu0 }
 0x661   : > { %v3519_v21 = vadd.f32 %v3518_v9, %v10071_v20  ;;  %v3615_v58 = vadd.f32 %v3614_v31, %v10071_v20  ;;  %v3525_v3 = vmax.f32 %v3517_v8, 0.0  ;;  %v3621_v24 = vmax.f32 %v3613_v29, 0.0  ;;  %v8194_v8 = vld [vmem:[%s11304_s14 + $0x100] ss:$8 sps:$4 sm:$0xff]  }
 0x662   : > { %v3520_v7 = vpop.f32.mrf.mxu1  ;;  %v3616_v6 = vpop.f32.mrf.mxu0 }
 0x663   : > { %v3521_v52 = vadd.f32 %v3520_v7, %v10074_v34  ;;  %v3526_v5 = vmax.f32 %v3519_v21, 0.0  ;;  %v3622_v57 = vmax.f32 %v3615_v58, 0.0  ;;  %v3617_v62 = vadd.f32 %v3616_v6, %v10074_v34  ;;  %v8196_v7 = vld [vmem:[%s11304_s14 + $0x104] ss:$8 sps:$4 sm:$0xff]  }
 0x664   : > { %v3522_v23 = vpop.f32.mrf.mxu1  ;;  %v3618_v15 = vpop.f32.mrf.mxu0  ;;  %v10167_v21 = vld [vmem:[%s11306_s16 + $0x20] sm:$0xff]  }
 0x665   : > { %v3523_v0 = vadd.f32 %v3522_v23, %v10071_v20  ;;  %v3619_v33 = vadd.f32 %v3618_v15, %v10071_v20  ;;  %v3527_v14 = vmax.f32 %v3521_v52, 0.0  ;;  %v3623_v45 = vmax.f32 %v3617_v62, 0.0 }
 0x667   : > { %v3528_v36 = vmax.f32 %v3523_v0, 0.0  ;;  %v3624_v11 = vmax.f32 %v3619_v33, 0.0  ;;  %v4105_v22 = vpack.c.bf16 %v3527_v14, %v3525_v3  ;;  %v10119_v49 = vpack.c.bf16 %v3623_v45, %v3621_v24  ;;  %v8199_v0 = vld [vmem:[%s11304_s14 + $0xf4] ss:$8 sps:$4 sm:$0xff]   ;;  %v8200_v24 = vld [vmem:[%s11304_s14 + $0xe0] ss:$8 sps:$4 sm:$0xff]  }
 0x668   : > { %v10186_v33 = vld [vmem:[%s11306_s16 + $0x18] sm:$0xff]  }
 0x669   : > { %v4106_v59 = vpack.c.bf16 %v3528_v36, %v3526_v5  ;;  %v10089_v13 = vpack.c.bf16 %v3624_v11, %v3622_v57  ;;  %v8197_v11 = vld [vmem:[%s11304_s14 + $0xf0] ss:$8 sps:$4 sm:$0xff]  }
 0x66b   : > { %7327 = vmatprep.mubr.msk.bf16.mxu0 %vm1316_vm0, %v4106_v59  ;;  %7418 = vmatprep.mubr.msk.bf16.mxu1 %vm1316_vm0, %v4106_v59 }
 0x66c   : > { %4353 = vmatmul.mubr.bf16.vlgmr.msra.gmra.mxu0 %v4105_v22  ;;  %4696 = vmatmul.mubr.bf16.vlgmr.msra.gmra.mxu1 %v4105_v22 }
 0x66d   : > { %4907 = vmatpush1.bf16.msra.mxu0 %v8179_v43  ;;  %7328 = vmatprep.mubr.msk.bf16.mxu0 %vm1316_vm0, %v10089_v13  ;;  %v8202_v43 = vld [vmem:[%s11304_s14 + $0xe4] ss:$8 sps:$4 sm:$0xff]  }
 0x66e   : > { %v3708_v38 = vpop.f32.mrf.mxu1  ;;  %v3804_v40 = vpop.f32.mrf.mxu0  ;;  %7419 = vmatprep.mubr.msk.bf16.mxu1 %vm1316_vm0, %v10089_v13  ;;  %4908 = vmatprep.subr.bf16.mxu0 %v8184_v4  ;;  %v10203_v4 = vld [vmem:[%s11306_s16 + $0x10] sm:$0xff]  }
 0x66f   : > { %5220 = vmatpush1.bf16.msra.mxu1 %v10096_v61  ;;  %v3709_v51 = vadd.f32 %v3708_v38, %v10074_v34  ;;  %v3805_v52 = vadd.f32 %v3804_v40, %v10074_v34 }
 0x670   : > { %v3710_v39 = vpop.f32.mrf.mxu1  ;;  %v3806_v47 = vpop.f32.mrf.mxu0  ;;  %5221 = vmatprep.subr.bf16.mxu1 %v11312_v2 }
 0x671   : > { %4909 = vmatpush1.bf16.msra.mxu0 %v8182_v44  ;;  %v3711_v10 = vadd.f32 %v3710_v39, %v10071_v20  ;;  %v3807_v53 = vadd.f32 %v3806_v47, %v10071_v20  ;;  %v3717_v37 = vmax.f32 %v3709_v51, 0.0  ;;  %v3813_v14 = vmax.f32 %v3805_v52, 0.0  ;;  %v8205_v47 = vld [vmem:[%s11304_s14 + $0x1b4] ss:$8 sps:$4 sm:$0xff]   ;;  %v8203_v51 = vld [vmem:[%s11304_s14 + $0x1b0] ss:$8 sps:$4 sm:$0xff]  }
 0x672   : > { %v3712_v17 = vpop.f32.mrf.mxu1  ;;  %v3808_v18 = vpop.f32.mrf.mxu0  ;;  %4910 = vmatprep.subr.bf16.mxu0 %v8187_v16  ;;  %v8214_v52 = vld [vmem:[%s11304_s14 + $0x184] ss:$8 sps:$4 sm:$0xff]  }
 0x673   : > { %v3713_v42 = vadd.f32 %v3712_v17, %v10074_v34  ;;  %5222 = vmatpush1.bf16.msra.mxu1 %v10113_v25  ;;  %v3718_v63 = vmax.f32 %v3711_v10, 0.0  ;;  %v3814_v60 = vmax.f32 %v3807_v53, 0.0  ;;  %v3809_v31 = vadd.f32 %v3808_v18, %v10074_v34  ;;  %v8208_v53 = vld [vmem:[%s11304_s14 + $0x1a4] ss:$8 sps:$4 sm:$0xff]  }
 0x674   : > { %v3714_v55 = vpop.f32.mrf.mxu1  ;;  %v3810_v56 = vpop.f32.mrf.mxu0  ;;  %4363 = vmatmul.mubr.bf16.gmra.mxu0 %v10119_v49  ;;  %4706 = vmatmul.mubr.bf16.gmra.mxu1 %v10119_v49 }
 0x675   : > { %v3715_v32 = vadd.f32 %v3714_v55, %v10071_v20  ;;  %v3811_v30 = vadd.f32 %v3810_v56, %v10071_v20  ;;  %4911 = vmatpush1.bf16.msra.mxu0 %v8185_v46  ;;  %5223 = vmatprep.subr.bf16.mxu1 %v11312_v2  ;;  %v3719_v1 = vmax.f32 %v3713_v42, 0.0  ;;  %v3815_v23 = vmax.f32 %v3809_v31, 0.0 }
 0x676   : > { %4912 = vmatprep.subr.bf16.mxu0 %v8190_v41 }
 0x677   : > { %v3720_v26 = vmax.f32 %v3715_v32, 0.0  ;;  %v3816_v19 = vmax.f32 %v3811_v30, 0.0  ;;  %5224 = vmatpush1.bf16.msra.mxu1 %v10130_v50  ;;  %v10152_v9 = vpack.c.bf16 %v3719_v1, %v3717_v37  ;;  %v10192_v3 = vpack.c.bf16 %v3815_v23, %v3813_v14  ;;  %v10240_v30 = vld [vmem:[%s11306_s16 + $0x8] sm:$0xff]  }
 0x678   : > { %5225 = vmatprep.subr.bf16.mxu1 %v11312_v2  ;;  %v8206_v1 = vld [vmem:[%s11304_s14 + $0x1a0] ss:$8 sps:$4 sm:$0xff]  }
 0x679   : > { %v10147_v48 = vpack.c.bf16 %v3720_v26, %v3718_v63  ;;  %4913 = vmatpush1.bf16.msra.mxu0 %v8188_v54  ;;  %v10158_v6 = vpack.c.bf16 %v3816_v19, %v3814_v60  ;;  %v8211_v26 = vld [vmem:[%s11304_s14 + $0x194] ss:$8 sps:$4 sm:$0xff]   ;;  %v10259_v19 = vld [vmem:[%s11306_s16] sm:$0xff]  }
 0x67a   : > { %4914 = vmatprep.subr.bf16.mxu0 %v8193_v12 }
 0x67b   : > { %7329 = vmatprep.mubr.msk.bf16.mxu0 %vm1316_vm0, %v10147_v48  ;;  %7420 = vmatprep.mubr.msk.bf16.mxu1 %vm1316_vm0, %v10147_v48 }
 0x67c   : > { %4373 = vmatmul.mubr.bf16.gmra.mxu0 %v10152_v9  ;;  %4716 = vmatmul.mubr.bf16.gmra.mxu1 %v10152_v9 }
 0x67d   : > { %4915 = vmatpush1.bf16.msra.mxu0 %v8191_v35  ;;  %7330 = vmatprep.mubr.msk.bf16.mxu0 %vm1316_vm0, %v10158_v6  ;;  %v8209_v35 = vld [vmem:[%s11304_s14 + $0x190] ss:$8 sps:$4 sm:$0xff]  }
 0x67e   : > { %v3900_v15 = vpop.f32.mrf.mxu1  ;;  %v3996_v58 = vpop.f32.mrf.mxu0  ;;  %7421 = vmatprep.mubr.msk.bf16.mxu1 %vm1316_vm0, %v10158_v6  ;;  %4916 = vmatprep.subr.bf16.mxu0 %v8196_v7 }
 0x67f   : > { %5226 = vmatpush1.bf16.msra.mxu1 %v10167_v21  ;;  %v3901_v29 = vadd.f32 %v3900_v15, %v10074_v34  ;;  %v3997_v54 = vadd.f32 %v3996_v58, %v10074_v34  ;;  %v10276_v15 = vld [vmem:[%s11306_s16 + $0x68] sm:$0xff]  }
 0x680   : > { %v3902_v5 = vpop.f32.mrf.mxu1  ;;  %v3998_v36 = vpop.f32.mrf.mxu0  ;;  %5227 = vmatprep.subr.bf16.mxu1 %v11312_v2 }
 0x681   : > { %4917 = vmatpush1.bf16.msra.mxu0 %v8194_v8  ;;  %v3903_v22 = vadd.f32 %v3902_v5, %v10071_v20  ;;  %v3999_v38 = vadd.f32 %v3998_v36, %v10071_v20  ;;  %v3909_v41 = vmax.f32 %v3901_v29, 0.0  ;;  %v4005_v37 = vmax.f32 %v3997_v54, 0.0  ;;  %v8212_v5 = vld [vmem:[%s11304_s14 + $0x180] ss:$8 sps:$4 sm:$0xff]  }
 0x682   : > { %v3904_v57 = vpop.f32.mrf.mxu1  ;;  %v4000_v59 = vpop.f32.mrf.mxu0  ;;  %4918 = vmatprep.subr.bf16.mxu0 %v8199_v0  ;;  %v10304_v29 = vld [vmem:[%s11306_s16 + $0x60] sm:$0xff]  }
 0x683   : > { %v3905_v62 = vadd.f32 %v3904_v57, %v10074_v34  ;;  %5228 = vmatpush1.bf16.msra.mxu1 %v10186_v33  ;;  %v3910_v46 = vmax.f32 %v3903_v22, 0.0  ;;  %v4006_v10 = vmax.f32 %v3999_v38, 0.0  ;;  %v4001_v56 = vadd.f32 %v4000_v59, %v10074_v34  ;;  %v10327_v38 = vld [vmem:[%s11306_s16 + $0x118] sm:$0xff]  }
 0x684   : > { %v3906_v44 = vpop.f32.mrf.mxu1  ;;  %v4002_v45 = vpop.f32.mrf.mxu0  ;;  %4383 = vmatmul.mubr.bf16.gmra.mxu0 %v10192_v3  ;;  %4726 = vmatmul.mubr.bf16.gmra.mxu1 %v10192_v3 }
 0x685   : > { %v3907_v40 = vadd.f32 %v3906_v44, %v10071_v20  ;;  %v4003_v16 = vadd.f32 %v4002_v45, %v10071_v20  ;;  %4919 = vmatpush1.bf16.msra.mxu0 %v8197_v11  ;;  %5229 = vmatprep.subr.bf16.mxu1 %v11312_v2  ;;  %v3911_v39 = vmax.f32 %v3905_v62, 0.0  ;;  %v4007_v12 = vmax.f32 %v4001_v56, 0.0  ;;  %v8220_v62 = vld [vmem:[%s11304_s14 + $0x164] ss:$8 sps:$4 sm:$0xff]   ;;  %v8218_v44 = vld [vmem:[%s11304_s14 + $0x160] ss:$8 sps:$4 sm:$0xff]  }
 0x686   : > { %4920 = vmatprep.subr.bf16.mxu0 %v8202_v43  ;;  %v8215_v43 = vld [vmem:[%s11304_s14 + $0x170] ss:$8 sps:$4 sm:$0xff]  }
 0x687   : > { %v3912_v17 = vmax.f32 %v3907_v40, 0.0  ;;  %v4008_v18 = vmax.f32 %v4003_v16, 0.0  ;;  %5230 = vmatpush1.bf16.msra.mxu1 %v10203_v4  ;;  %v10225_v55 = vpack.c.bf16 %v3911_v39, %v3909_v41  ;;  %v10265_v31 = vpack.c.bf16 %v4007_v12, %v4005_v37  ;;  %v10321_v45 = vld [vmem:[%s11306_s16 + $0x58] sm:$0xff]   ;;  %v10346_v40 = vld [vmem:[%s11306_s16 + $0x108] sm:$0xff]   ;;  %v10386_v16 = vld [vmem:[%s11306_s16 + $0xf0] sm:$0xff]  }
 0x688   : > { %5231 = vmatprep.subr.bf16.mxu1 %v11312_v2  ;;  %v10411_v39 = vld [vmem:[%s11306_s16 + $0xe0] sm:$0xff]   ;;  %v10451_v41 = vld [vmem:[%s11306_s16 + $0x128] sm:$0xff]  }
 0x689   : > { %v10220_v42 = vpack.c.bf16 %v3912_v17, %v3910_v46  ;;  %4921 = vmatpush1.bf16.msra.mxu0 %v8200_v24  ;;  %v10231_v32 = vpack.c.bf16 %v4008_v18, %v4006_v10  ;;  %v10400_v24 = vld [vmem:[%s11306_s16 + $0xe8] sm:$0xff]   ;;  %v10428_v46 = vld [vmem:[%s11306_s16 + $0x140] sm:$0xff]   ;;  %v10435_v17 = vld [vmem:[%s11306_s16 + $0x138] sm:$0xff]  }
 0x68a   : > { %4926 = vmatprep.subr.bf16.mxu0 %v8205_v47  ;;  %v10418_v47 = vld [vmem:[%s11306_s16 + $0x148] sm:$0xff]   ;;  %v10444_v18 = vld [vmem:[%s11306_s16 + $0x130] sm:$0xff]   ;;  %v10459_v10 = vld [vmem:[%s11306_s16 + $0x120] sm:$0xff]  }
 0x68b   : > { %7331 = vmatprep.mubr.msk.bf16.mxu0 %vm1316_vm0, %v10220_v42  ;;  %7422 = vmatprep.mubr.msk.bf16.mxu1 %vm1316_vm0, %v10220_v42 }
 0x68c   : > { %4393 = vmatmul.mubr.bf16.gmra.mxu0 %v10225_v55  ;;  %4736 = vmatmul.mubr.bf16.gmra.mxu1 %v10225_v55 }
 0x68d   : > { %4927 = vmatpush2.bf16.msra.mxu0 %v8203_v51  ;;  %7332 = vmatprep.mubr.msk.bf16.mxu0 %vm1316_vm0, %v10231_v32 }
 0x68e   : > { %v4092_v63 = vpop.f32.mrf.mxu1  ;;  %7423 = vmatprep.mubr.msk.bf16.mxu1 %vm1316_vm0, %v10231_v32  ;;  %4928 = vmatprep.subr.bf16.mxu0 %v8208_v53 }
 0x68f   : > { %5232 = vmatpush1.bf16.msra.mxu1 %v10240_v30  ;;  %v4093_v58 = vadd.f32 %v4092_v63, %v10074_v34 }
 0x690   : > { %v4094_v60 = vpop.f32.mrf.mxu1  ;;  %5233 = vmatprep.subr.bf16.mxu1 %v11312_v2 }
 0x691   : > { %4929 = vmatpush2.bf16.msra.mxu0 %v8206_v1  ;;  %v4095_v8 = vadd.f32 %v4094_v60, %v10071_v20  ;;  %v4101_v59 = vmax.f32 %v4093_v58, 0.0  ;;  %v10486_v58 = vld [vmem:[%s11306_s16 + $0xa8] sm:$0xff]  }
 0x692   : > { %v4096_v7 = vpop.f32.mrf.mxu1  ;;  %4930 = vmatprep.subr.bf16.mxu0 %v8211_v26 }
 0x693   : > { %v4097_v23 = vadd.f32 %v4096_v7, %v10074_v34  ;;  %5234 = vmatpush1.bf16.msra.mxu1 %v10259_v19  ;;  %v8217_v34 = vld [vmem:[%s11304_s14 + $0x174] ss:$8 sps:$4 sm:$0xff]   ;;  %v4102_v11 = vmax.f32 %v4095_v8, 0.0 }
 0x694   : > { %v4098_v0 = vpop.f32.mrf.mxu1  ;;  %4403 = vmatmul.mubr.bf16.gmra.mxu0 %v10265_v31  ;;  %4746 = vmatmul.mubr.bf16.gmra.mxu1 %v10265_v31 }
 0x695   : > { %v4099_v14 = vadd.f32 %v4098_v0, %v10071_v20  ;;  %4931 = vmatpush2.bf16.msra.mxu0 %v8209_v35  ;;  %5239 = vmatprep.subr.bf16.mxu1 %v11312_v2  ;;  %v4103_v36 = vmax.f32 %v4097_v23, 0.0 }
 0x696   : > { %4932 = vmatprep.subr.bf16.mxu0 %v8214_v52 }
 0x697   : > { %v4104_v57 = vmax.f32 %v4099_v14, 0.0  ;;  %5240 = vmatpush2.bf16.msra.mxu1 %v10276_v15  ;;  %v10296_v22 = vpack.c.bf16 %v4103_v36, %v4101_v59 }
 0x698   : > { %5241 = vmatprep.subr.bf16.mxu1 %v11312_v2 }
 0x699   : > { %v10291_v20 = vpack.c.bf16 %v4104_v57, %v4102_v11  ;;  %4933 = vmatpush2.bf16.msra.mxu0 %v8212_v5 }
 0x69a   : > { %4934 = vmatprep.subr.bf16.mxu0 %v8217_v34 }
 0x69b   : > { %7333 = vmatprep.mubr.msk.bf16.mxu0 %vm1316_vm0, %v10291_v20  ;;  %7424 = vmatprep.mubr.msk.bf16.mxu1 %vm1316_vm0, %v10291_v20 }
 0x69c   : > { %4413 = vmatmul.mubr.bf16.gmra.mxu0 %v10296_v22  ;;  %4756 = vmatmul.mubr.bf16.gmra.mxu1 %v10296_v22 }
 0x69d   : > { %4935 = vmatpush2.bf16.msra.mxu0 %v8215_v43  ;;  %7453 = vmatprep.mubr.msk.bf16.mxu0 %vm1316_vm0, %v10089_v13  ;;  %v10339_v13 = vld [vmem:[%s11306_s16 + $0x110] sm:$0xff]  }
 0x69e   : > { %4936 = vmatprep.subr.bf16.mxu0 %v8220_v62  ;;  %5242 = vmatpush2.bf16.msra.mxu1 %v10304_v29 }
 0x69f   : > { %5243 = vmatprep.subr.bf16.mxu1 %v11312_v2 }
 0x6a1   : > { %4937 = vmatpush2.bf16.msra.mxu0 %v8218_v44 }
 0x6a2   : > { %5450 = vmatprep.subr.bf16.mxu0 %v11312_v2  ;;  %5244 = vmatpush2.bf16.msra.mxu1 %v10321_v45 }
 0x6a3   : > { %5245 = vmatprep.subr.bf16.mxu1 %v11312_v2 }
 0x6a4   : > { %4939 = vmatmul.mubr.bf16.vlgmr.msra.gmra.mxu0 %v10119_v49  ;;  %v10356_v49 = vld [vmem:[%s11306_s16 + $0x100] sm:$0xff]  }
 0x6a5   : > { %7454 = vmatprep.mubr.msk.bf16.mxu0 %vm1316_vm0, %v10147_v48  ;;  %5451 = vmatpush1.bf16.msra.mxu0 %v10327_v38  ;;  %v10362_v48 = vld [vmem:[%s11306_s16 + $0x50] sm:$0xff]  }
 0x6a6   : > { %5452 = vmatprep.subr.bf16.mxu0 %v11312_v2  ;;  %5246 = vmatpush2.bf16.msra.mxu1 %v10362_v48 }
 0x6a7   : > { %5247 = vmatprep.subr.bf16.mxu1 %v11312_v2 }
 0x6a9   : > { %5453 = vmatpush1.bf16.msra.mxu0 %v10339_v13 }
 0x6aa   : > { %5454 = vmatprep.subr.bf16.mxu0 %v11312_v2 }
 0x6ac   : > { %4949 = vmatmul.mubr.bf16.gmra.mxu0 %v10152_v9  ;;  %v10369_v9 = vld [vmem:[%s11306_s16 + $0xf8] sm:$0xff]  }
 0x6ad   : > { %7455 = vmatprep.mubr.msk.bf16.mxu0 %vm1316_vm0, %v10158_v6  ;;  %5455 = vmatpush1.bf16.msra.mxu0 %v10346_v40  ;;  %v10376_v6 = vld [vmem:[%s11306_s16 + $0x48] sm:$0xff]  }
 0x6ae   : > { %5456 = vmatprep.subr.bf16.mxu0 %v11312_v2  ;;  %5248 = vmatpush2.bf16.msra.mxu1 %v10376_v6 }
 0x6af   : > { %5249 = vmatprep.subr.bf16.mxu1 %v11312_v2 }
 0x6b1   : > { %5457 = vmatpush1.bf16.msra.mxu0 %v10356_v49 }
 0x6b2   : > { %5458 = vmatprep.subr.bf16.mxu0 %v11312_v2 }
 0x6b4   : > { %4959 = vmatmul.mubr.bf16.gmra.mxu0 %v10192_v3  ;;  %v10393_v3 = vld [vmem:[%s11306_s16 + $0x40] sm:$0xff]  }
 0x6b5   : > { %7456 = vmatprep.mubr.msk.bf16.mxu0 %vm1316_vm0, %v10220_v42  ;;  %5459 = vmatpush1.bf16.msra.mxu0 %v10369_v9  ;;  %v4119_v42 = vld [vmem:[%s11305_s15] sm:$0x3] }
 0x6b6   : > { %5460 = vmatprep.subr.bf16.mxu0 %v11312_v2  ;;  %5250 = vmatpush2.bf16.msra.mxu1 %v10393_v3  ;;  %v10471_v56 = vrot.slane %v4119_v42, %v8871_v27 }
 0x6b7   : > { %5644 = vmatprep.subr.bf16.mxu1 %v11312_v2 }
 0x6b9   : > { %5461 = vmatpush1.bf16.msra.mxu0 %v10386_v16 }
 0x6ba   : > { %5462 = vmatprep.subr.bf16.mxu0 %v11312_v2 }
 0x6bc   : > { %4969 = vmatmul.mubr.bf16.gmra.mxu0 %v10225_v55  ;;  %v10468_v55 = vrot.slane %v4119_v42, %v8873_v28 }
 0x6bd   : > { %7457 = vmatprep.mubr.msk.bf16.mxu0 %vm1316_vm0, %v10231_v32  ;;  %5463 = vmatpush1.bf16.msra.mxu0 %v10400_v24 }
 0x6be   : > { %5464 = vmatprep.subr.bf16.mxu0 %v11312_v2 }
 0x6c1   : > { %5465 = vmatpush1.bf16.msra.mxu0 %v10411_v39 }
 0x6c2   : > { %5470 = vmatprep.subr.bf16.mxu0 %v11312_v2 }
 0x6c4   : > { %4979 = vmatmul.mubr.bf16.gmra.mxu0 %v10265_v31 }
 0x6c5   : > { %7458 = vmatprep.mubr.msk.bf16.mxu0 %vm1316_vm0, %v10291_v20  ;;  %5471 = vmatpush2.bf16.msra.mxu0 %v10418_v47  ;;  %v10501_v20 = vld [vmem:[%s11306_s16 + $0xa0] sm:$0xff]  }
 0x6c6   : > { %5472 = vmatprep.subr.bf16.mxu0 %v11312_v2 }
 0x6c9   : > { %5473 = vmatpush2.bf16.msra.mxu0 %v10428_v46 }
 0x6ca   : > { %5474 = vmatprep.subr.bf16.mxu0 %v11312_v2 }
 0x6cc   : > { %4989 = vmatmul.mubr.bf16.gmra.mxu0 %v10296_v22 }
 0x6cd   : > { %4998 = vmatprep.mubr.bf16.mxu0 %v11312_v2  ;;  %5475 = vmatpush2.bf16.msra.mxu0 %v10435_v17 }
 0x6ce   : > { %5476 = vmatprep.subr.bf16.mxu0 %v11312_v2 }
 0x6d1   : > { %5477 = vmatpush2.bf16.msra.mxu0 %v10444_v18 }
 0x6d2   : > { %5478 = vmatprep.subr.bf16.mxu0 %v11312_v2 }
 0x6d4   : > { %4999 = vmatmul.mubr.bf16.gmra.mxu0 %v11312_v2 }
 0x6d5   : > { %5479 = vmatpush2.bf16.msra.mxu0 %v10451_v41 }
 0x6d6   : > { %5480 = vmatprep.subr.bf16.mxu0 %v11312_v2 }
 0x6d9   : > { %5481 = vmatpush2.bf16.msra.mxu0 %v10459_v10 }
 0x6da   : > { %5747 = vmatprep.subr.bf16.mxu0 %v11312_v2 }
 0x72c   : > { %v4354_v51 = vpop.f32.mrf.mxu0  ;;  %v10473_v53 = vpop.f32.mrf.mxu1 }
 0x72d   : > { %v4355_v63 = vadd.f32 %v4354_v51, %v10471_v56 }
 0x72e   : > { %v4356_v32 = vpop.f32.mrf.mxu0  ;;  %v10478_v26 = vpop.f32.mrf.mxu1 }
 0x72f   : > { %v4357_v1 = vadd.f32 %v4356_v32, %v10468_v55  ;;  %v4423_v7 = vmax.f32 %v4355_v63, 0.0 }
 0x730   : > { %v4358_v54 = vpop.f32.mrf.mxu0  ;;  %v10481_v52 = vpop.f32.mrf.mxu1 }
 0x731   : > { %v4359_v12 = vadd.f32 %v4358_v54, %v10471_v56  ;;  %v4424_v31 = vmax.f32 %v4357_v1, 0.0 }
 0x732   : > { %v4360_v37 = vpop.f32.mrf.mxu0  ;;  %v10492_v34 = vpop.f32.mrf.mxu1 }
 0x733   : > { %v4361_v60 = vadd.f32 %v4360_v37, %v10468_v55  ;;  %v4425_v28 = vmax.f32 %v4359_v12, 0.0 }
 0x734   : > { %v4364_v35 = vpop.f32.mrf.mxu0  ;;  %v10505_v51 = vpop.f32.mrf.mxu1 }
 0x735   : > { %v4426_v27 = vmax.f32 %v4361_v60, 0.0  ;;  %v4451_v0 = vpack.c.bf16 %v4425_v28, %v4423_v7  ;;  %v4365_v11 = vadd.f32 %v4364_v35, %v10471_v56 }
 0x736   : > { %v4366_v8 = vpop.f32.mrf.mxu0 }
 0x737   : > { %v4452_v23 = vpack.c.bf16 %v4426_v27, %v4424_v31  ;;  %v4367_v5 = vadd.f32 %v4366_v8, %v10468_v55  ;;  %v4427_v42 = vmax.f32 %v4365_v11, 0.0  ;;  %v10537_v31 = vld [vmem:[%s11306_s16 + $0x90] sm:$0xff]  }
 0x738   : > { %v4368_v14 = vpop.f32.mrf.mxu0 }
 0x739   : > { %v4369_v36 = vadd.f32 %v4368_v14, %v10471_v56  ;;  %7474 = vmatprep.mubr.msk.bf16.mxu1 %vm1316_vm0, %v4452_v23  ;;  %7551 = vmatprep.mubr.msk.bf16.mxu0 %vm1316_vm0, %v4452_v23  ;;  %v4428_v62 = vmax.f32 %v4367_v5, 0.0 }
 0x73a   : > { %v4370_v57 = vpop.f32.mrf.mxu0  ;;  %5252 = vmatmul.mubr.bf16.vlgmr.msra.gmra.mxu1 %v4451_v0  ;;  %5483 = vmatmul.mubr.bf16.vlgmr.msra.gmra.mxu0 %v4451_v0 }
 0x73b   : > { %v4371_v59 = vadd.f32 %v4370_v57, %v10468_v55  ;;  %5645 = vmatpush1.bf16.msra.mxu1 %v10486_v58  ;;  %5748 = vmatpush1.bf16.msra.mxu0 %v10096_v61  ;;  %v4429_v43 = vmax.f32 %v4369_v36, 0.0  ;;  %v10514_v61 = vld [vmem:[%s11306_s16 + $0x98] sm:$0xff]  }
 0x73c   : > { %v4374_v22 = vpop.f32.mrf.mxu0  ;;  %5646 = vmatprep.subr.bf16.mxu1 %v11312_v2  ;;  %5749 = vmatprep.subr.bf16.mxu0 %v11312_v2 }
 0x73d   : > { %v4430_v44 = vmax.f32 %v4371_v59, 0.0  ;;  %v10516_v1 = vpack.c.bf16 %v4429_v43, %v4427_v42  ;;  %v4375_v60 = vadd.f32 %v4374_v22, %v10471_v56  ;;  %v10573_v42 = vld [vmem:[%s11306_s16 + $0x80] sm:$0xff]  }
 0x73e   : > { %v4376_v32 = vpop.f32.mrf.mxu0 }
 0x73f   : > { %v10507_v54 = vpack.c.bf16 %v4430_v44, %v4428_v62  ;;  %5647 = vmatpush1.bf16.msra.mxu1 %v10501_v20  ;;  %5750 = vmatpush1.bf16.msra.mxu0 %v10113_v25  ;;  %v4377_v63 = vadd.f32 %v4376_v32, %v10468_v55  ;;  %v10526_v25 = vpop.f32.mrf.mxu1  ;;  %v4431_v14 = vmax.f32 %v4375_v60, 0.0 }
 0x740   : > { %v4378_v12 = vpop.f32.mrf.mxu0  ;;  %5648 = vmatprep.subr.bf16.mxu1 %v11312_v2  ;;  %5751 = vmatprep.subr.bf16.mxu0 %v11312_v2 }
 0x741   : > { %v4379_v37 = vadd.f32 %v4378_v12, %v10471_v56  ;;  %7475 = vmatprep.mubr.msk.bf16.mxu1 %vm1316_vm0, %v10507_v54  ;;  %7552 = vmatprep.mubr.msk.bf16.mxu0 %vm1316_vm0, %v10507_v54  ;;  %v4432_v8 = vmax.f32 %v4377_v63, 0.0  ;;  %v10541_v0 = vpop.f32.mrf.mxu1 }
 0x742   : > { %v4380_v28 = vpop.f32.mrf.mxu0  ;;  %5260 = vmatmul.mubr.bf16.gmra.mxu1 %v10516_v1  ;;  %5491 = vmatmul.mubr.bf16.gmra.mxu0 %v10516_v1 }
 0x743   : > { %v4381_v35 = vadd.f32 %v4380_v28, %v10468_v55  ;;  %5649 = vmatpush1.bf16.msra.mxu1 %v10514_v61  ;;  %5752 = vmatpush1.bf16.msra.mxu0 %v10130_v50  ;;  %v4433_v27 = vmax.f32 %v4379_v37, 0.0  ;;  %v10550_v50 = vld [vmem:[%s11306_s16 + $0x88] sm:$0xff]  }
 0x744   : > { %v4384_v7 = vpop.f32.mrf.mxu0  ;;  %5650 = vmatprep.subr.bf16.mxu1 %v11312_v2  ;;  %5753 = vmatprep.subr.bf16.mxu0 %v11312_v2 }
 0x745   : > { %v4434_v23 = vmax.f32 %v4381_v35, 0.0  ;;  %v10552_v11 = vpack.c.bf16 %v4433_v27, %v4431_v14  ;;  %v4385_v22 = vadd.f32 %v4384_v7, %v10471_v56 }
 0x746   : > { %v4386_v5 = vpop.f32.mrf.mxu0 }
 0x747   : > { %v10543_v36 = vpack.c.bf16 %v4434_v23, %v4432_v8  ;;  %5651 = vmatpush1.bf16.msra.mxu1 %v10537_v31  ;;  %5754 = vmatpush1.bf16.msra.mxu0 %v10167_v21  ;;  %v4387_v59 = vadd.f32 %v4386_v5, %v10468_v55  ;;  %v10562_v21 = vpop.f32.mrf.mxu1  ;;  %v4435_v28 = vmax.f32 %v4385_v22, 0.0 }
 0x748   : > { %v4388_v57 = vpop.f32.mrf.mxu0  ;;  %5652 = vmatprep.subr.bf16.mxu1 %v11312_v2  ;;  %5755 = vmatprep.subr.bf16.mxu0 %v11312_v2 }
 0x749   : > { %v4389_v43 = vadd.f32 %v4388_v57, %v10471_v56  ;;  %7476 = vmatprep.mubr.msk.bf16.mxu1 %vm1316_vm0, %v10543_v36  ;;  %7553 = vmatprep.mubr.msk.bf16.mxu0 %vm1316_vm0, %v10543_v36  ;;  %v4436_v63 = vmax.f32 %v4387_v59, 0.0  ;;  %v10577_v60 = vpop.f32.mrf.mxu1 }
 0x74a   : > { %v4390_v62 = vpop.f32.mrf.mxu0  ;;  %5268 = vmatmul.mubr.bf16.gmra.mxu1 %v10552_v11  ;;  %5499 = vmatmul.mubr.bf16.gmra.mxu0 %v10552_v11 }
 0x74b   : > { %v4391_v44 = vadd.f32 %v4390_v62, %v10468_v55  ;;  %5653 = vmatpush1.bf16.msra.mxu1 %v10550_v50  ;;  %5756 = vmatpush1.bf16.msra.mxu0 %v10186_v33  ;;  %v4437_v32 = vmax.f32 %v4389_v43, 0.0  ;;  %v10586_v33 = vld [vmem:[%s11306_s16 + $0x78] sm:$0xff]   ;;  %v10609_v43 = vld [vmem:[%s11306_s16 + $0x70] sm:$0xff]  }
 0x74c   : > { %v4394_v12 = vpop.f32.mrf.mxu0  ;;  %5654 = vmatprep.subr.bf16.mxu1 %v11312_v2  ;;  %5757 = vmatprep.subr.bf16.mxu0 %v11312_v2 }
 0x74d   : > { %v4438_v37 = vmax.f32 %v4391_v44, 0.0  ;;  %v10588_v7 = vpack.c.bf16 %v4437_v32, %v4435_v28  ;;  %v4395_v5 = vadd.f32 %v4394_v12, %v10471_v56 }
 0x74e   : > { %v4396_v35 = vpop.f32.mrf.mxu0 }
 0x74f   : > { %v10579_v27 = vpack.c.bf16 %v4438_v37, %v4436_v63  ;;  %5655 = vmatpush1.bf16.msra.mxu1 %v10573_v42  ;;  %5758 = vmatpush1.bf16.msra.mxu0 %v10203_v4  ;;  %11329 = vst [vmem:[#allocation3_spill] sm:$0xff] %v10588_v7  ;;  %v4397_v23 = vadd.f32 %v4396_v35, %v10468_v55  ;;  %v10598_v4 = vpop.f32.mrf.mxu1  ;;  %v4439_v63 = vmax.f32 %v4395_v5, 0.0 }
 0x750   : > { %v4398_v8 = vpop.f32.mrf.mxu0  ;;  %5656 = vmatprep.subr.bf16.mxu1 %v11312_v2  ;;  %5759 = vmatprep.subr.bf16.mxu0 %v11312_v2 }
 0x751   : > { %11328 = vst [vmem:[#allocation2_spill] sm:$0xff] %v10579_v27  ;;  %v4399_v14 = vadd.f32 %v4398_v8, %v10471_v56  ;;  %7477 = vmatprep.mubr.msk.bf16.mxu1 %vm1316_vm0, %v10579_v27  ;;  %7554 = vmatprep.mubr.msk.bf16.mxu0 %vm1316_vm0, %v10579_v27  ;;  %v4440_v44 = vmax.f32 %v4397_v23, 0.0  ;;  %v10613_v12 = vpop.f32.mrf.mxu1 }
 0x752   : > { %v4400_v57 = vpop.f32.mrf.mxu0  ;;  %5276 = vmatmul.mubr.bf16.gmra.mxu1 %v10588_v7  ;;  %5507 = vmatmul.mubr.bf16.gmra.mxu0 %v10588_v7 }
 0x753   : > { %v4401_v59 = vadd.f32 %v4400_v57, %v10468_v55  ;;  %5657 = vmatpush1.bf16.msra.mxu1 %v10586_v33  ;;  %5760 = vmatpush1.bf16.msra.mxu0 %v10240_v30  ;;  %v4441_v22 = vmax.f32 %v4399_v14, 0.0  ;;  %v10622_v30 = vld [vmem:[%s11306_s16 + $0xd8] sm:$0xff]  }
 0x754   : > { %v4404_v62 = vpop.f32.mrf.mxu0  ;;  %5658 = vmatprep.subr.bf16.mxu1 %v11312_v2  ;;  %5761 = vmatprep.subr.bf16.mxu0 %v11312_v2 }
 0x755   : > { %v4442_v32 = vmax.f32 %v4401_v59, 0.0  ;;  %v10624_v35 = vpack.c.bf16 %v4441_v22, %v4439_v63  ;;  %v4405_v5 = vadd.f32 %v4404_v62, %v10471_v56  ;;  %v10645_v22 = vld [vmem:[%s11306_s16 + $0xd0] sm:$0xff]  }
 0x756   : > { %v4406_v37 = vpop.f32.mrf.mxu0 }
 0x757   : > { %v10615_v28 = vpack.c.bf16 %v4442_v32, %v4440_v44  ;;  %5659 = vmatpush1.bf16.msra.mxu1 %v10609_v43  ;;  %5762 = vmatpush1.bf16.msra.mxu0 %v10259_v19  ;;  %11331 = vst [vmem:[#allocation5_spill] sm:$0xff] %v10624_v35  ;;  %v4407_v23 = vadd.f32 %v4406_v37, %v10468_v55  ;;  %v10634_v19 = vpop.f32.mrf.mxu1 }
 0x758   : > { %v4408_v8 = vpop.f32.mrf.mxu0  ;;  %5664 = vmatprep.subr.bf16.mxu1 %v11312_v2  ;;  %5767 = vmatprep.subr.bf16.mxu0 %v11312_v2 }
 0x759   : > { %11330 = vst [vmem:[#allocation4_spill] sm:$0xff] %v10615_v28  ;;  %v4409_v14 = vadd.f32 %v4408_v8, %v10471_v56  ;;  %7478 = vmatprep.mubr.msk.bf16.mxu1 %vm1316_vm0, %v10615_v28  ;;  %7555 = vmatprep.mubr.msk.bf16.mxu0 %vm1316_vm0, %v10615_v28  ;;  %v4444_v62 = vmax.f32 %v4407_v23, 0.0  ;;  %v10649_v37 = vpop.f32.mrf.mxu1  ;;  %v4443_v8 = vmax.f32 %v4405_v5, 0.0  ;;  %v11334_v23 = vmov 0  }
 0x75a   : > { %v4410_v57 = vpop.f32.mrf.mxu0  ;;  %5284 = vmatmul.mubr.bf16.gmra.mxu1 %v10624_v35  ;;  %5515 = vmatmul.mubr.bf16.gmra.mxu0 %v10624_v35 }
 0x75b   : > { %v4411_v59 = vadd.f32 %v4410_v57, %v10468_v55  ;;  %5665 = vmatpush2.bf16.msra.mxu1 %v10622_v30  ;;  %5768 = vmatpush2.bf16.msra.mxu0 %v10276_v15  ;;  %v4445_v44 = vmax.f32 %v4409_v14, 0.0  ;;  %v10658_v15 = vld [vmem:[%s11306_s16 + $0xc8] sm:$0xff]  }
 0x75c   : > { %v4414_v32 = vpop.f32.mrf.mxu0  ;;  %5666 = vmatprep.subr.bf16.mxu1 %v11312_v2  ;;  %5769 = vmatprep.subr.bf16.mxu0 %v11312_v2 }
 0x75d   : > { %v4446_v63 = vmax.f32 %v4411_v59, 0.0  ;;  %v10660_v14 = vpack.c.bf16 %v4445_v44, %v4443_v8  ;;  %v4415_v44 = vadd.f32 %v4414_v32, %v10471_v56 }
 0x75e   : > { %v4416_v57 = vpop.f32.mrf.mxu0 }
 0x75f   : > { %v10651_v35 = vpack.c.bf16 %v4446_v63, %v4444_v62  ;;  %5667 = vmatpush2.bf16.msra.mxu1 %v10645_v22  ;;  %5770 = vmatpush2.bf16.msra.mxu0 %v10304_v29  ;;  %11333 = vst [vmem:[#allocation7_spill] sm:$0xff] %v10660_v14  ;;  %v4417_v5 = vadd.f32 %v4416_v57, %v10468_v55  ;;  %v10670_v29 = vpop.f32.mrf.mxu1 }
 0x760   : > { %v4418_v2 = vpop.f32.mrf.mxu0  ;;  %5668 = vmatprep.subr.bf16.mxu1 %v11334_v23  ;;  %5771 = vmatprep.subr.bf16.mxu0 %v11334_v23 }
 0x761   : > { %11332 = vst [vmem:[#allocation6_spill] sm:$0xff] %v10651_v35  ;;  %v4419_v59 = vadd.f32 %v4418_v2, %v10471_v56  ;;  %7479 = vmatprep.mubr.msk.bf16.mxu1 %vm1316_vm0, %v10651_v35  ;;  %7556 = vmatprep.mubr.msk.bf16.mxu0 %vm1316_vm0, %v10651_v35  ;;  %v10681_v2 = vld [vmem:[%s11306_s16 + $0xc0] sm:$0xff]   ;;  %v4448_v32 = vmax.f32 %v4417_v5, 0.0 }
 0x762   : > { %v4420_v62 = vpop.f32.mrf.mxu0  ;;  %5292 = vmatmul.mubr.bf16.gmra.mxu1 %v10660_v14  ;;  %5523 = vmatmul.mubr.bf16.gmra.mxu0 %v10660_v14  ;;  %v10685_v14 = vpop.f32.mrf.mxu1 }
 0x763   : > { %v4421_v63 = vadd.f32 %v4420_v62, %v10468_v55  ;;  %5669 = vmatpush2.bf16.msra.mxu1 %v10658_v15  ;;  %5772 = vmatpush2.bf16.msra.mxu0 %v10321_v45  ;;  %v4449_v8 = vmax.f32 %v4419_v59, 0.0  ;;  %v4447_v62 = vmax.f32 %v4415_v44, 0.0  ;;  %v10695_v59 = vld [vmem:[%s11306_s16 + $0xb8] sm:$0xff]  }
 0x764   : > { %v4940_v57 = vpop.f32.mrf.mxu0  ;;  %5670 = vmatprep.subr.bf16.mxu1 %v11334_v23  ;;  %5773 = vmatprep.subr.bf16.mxu0 %v11334_v23 }
 0x765   : > { %v4450_v35 = vmax.f32 %v4421_v63, 0.0  ;;  %v10697_v27 = vpack.c.bf16 %v4449_v8, %v4447_v62  ;;  %v4941_v5 = vadd.f32 %v4940_v57, %v10473_v53 }
 0x766   : > { %v4942_v28 = vpop.f32.mrf.mxu0 }
 0x767   : > { %v10687_v7 = vpack.c.bf16 %v4450_v35, %v4448_v32  ;;  %v4943_v45 = vadd.f32 %v4942_v28, %v10478_v26  ;;  %5671 = vmatpush2.bf16.msra.mxu1 %v10681_v2  ;;  %5774 = vmatpush2.bf16.msra.mxu0 %v10362_v48  ;;  %11335 = vst [vmem:[#allocation8_spill] sm:$0xff] %v10697_v27  ;;  %v10707_v48 = vpop.f32.mrf.mxu1 }
 0x768   : > { %v4944_v63 = vpop.f32.mrf.mxu0  ;;  %5672 = vmatprep.subr.bf16.mxu1 %v11334_v23  ;;  %5775 = vmatprep.subr.bf16.mxu0 %v11334_v23  ;;  %v5009_v8 = vadd.f32 %v4941_v5, %v10471_v56 }
 0x769   : > { %v4945_v26 = vadd.f32 %v4944_v63, %v10481_v52  ;;  %7480 = vmatprep.mubr.msk.bf16.mxu1 %vm1316_vm0, %v10687_v7  ;;  %7557 = vmatprep.mubr.msk.bf16.mxu0 %vm1316_vm0, %v10687_v7  ;;  %v5010_v53 = vadd.f32 %v4943_v45, %v10468_v55  ;;  %v10719_v52 = vld [vmem:[%s11306_s16 + $0xb0] sm:$0xff]   ;;  %v10725_v62 = vpop.f32.mrf.mxu1 }
 0x76a   : > { %v4946_v28 = vpop.f32.mrf.mxu0  ;;  %5300 = vmatmul.mubr.bf16.gmra.mxu1 %v10697_v27  ;;  %5531 = vmatmul.mubr.bf16.gmra.mxu0 %v10697_v27  ;;  %v5037_v5 = vmax.f32 %v5009_v8, 0.0 }
 0x76b   : > { %v5011_v35 = vadd.f32 %v4945_v26, %v10471_v56  ;;  %v4947_v44 = vadd.f32 %v4946_v28, %v10492_v34  ;;  %5673 = vmatpush2.bf16.msra.mxu1 %v10695_v59  ;;  %5776 = vmatpush2.bf16.msra.mxu0 %v10376_v6  ;;  %v5038_v63 = vmax.f32 %v5010_v53, 0.0  ;;  %v10736_v53 = vpop.f32.mrf.mxu1 }
 0x76c   : > { %v4950_v57 = vpop.f32.mrf.mxu0  ;;  %5674 = vmatprep.subr.bf16.mxu1 %v11334_v23  ;;  %5777 = vmatprep.subr.bf16.mxu0 %v11334_v23 }
 0x76d   : > { %v5012_v32 = vadd.f32 %v4947_v44, %v10468_v55  ;;  %v5039_v34 = vmax.f32 %v5011_v35, 0.0  ;;  %v4951_v28 = vadd.f32 %v4950_v57, %v10505_v51 }
 0x76e   : > { %v4952_v45 = vpop.f32.mrf.mxu0 }
 0x76f   : > { %v5040_v6 = vmax.f32 %v5012_v32, 0.0  ;;  %v4953_v26 = vadd.f32 %v4952_v45, %v10526_v25  ;;  %5675 = vmatpush2.bf16.msra.mxu1 %v10719_v52  ;;  %5778 = vmatpush2.bf16.msra.mxu0 %v10393_v3  ;;  %v10738_v32 = vpack.c.bf16 %v5039_v34, %v5037_v5  ;;  %v5013_v8 = vadd.f32 %v4951_v28, %v10471_v56 }
 0x770   : > { %v4954_v27 = vpop.f32.mrf.mxu0  ;;  %5836 = vmatprep.subr.bf16.mxu1 %v11334_v23  ;;  %5925 = vmatprep.subr.bf16.mxu0 %v11334_v23 }
 0x771   : > { %v10733_v44 = vpack.c.bf16 %v5040_v6, %v5038_v63  ;;  %v4955_v35 = vadd.f32 %v4954_v27, %v10541_v0  ;;  %v5014_v45 = vadd.f32 %v4953_v26, %v10468_v55  ;;  %v5041_v5 = vmax.f32 %v5013_v8, 0.0 }
 0x772   : > { %v4956_v25 = vpop.f32.mrf.mxu0 }
 0x773   : > { %v5015_v3 = vadd.f32 %v4955_v35, %v10471_v56  ;;  %v4957_v51 = vadd.f32 %v4956_v25, %v10562_v21  ;;  %7572 = vmatprep.mubr.msk.bf16.mxu1 %vm1316_vm0, %v10733_v44  ;;  %7579 = vmatprep.mubr.msk.bf16.mxu0 %vm1316_vm0, %v10733_v44  ;;  %v10753_v21 = vpop.f32.mrf.mxu1  ;;  %v5042_v63 = vmax.f32 %v5014_v45, 0.0 }
 0x774   : > { %v4960_v0 = vpop.f32.mrf.mxu0  ;;  %5677 = vmatmul.mubr.bf16.vlgmr.msra.gmra.mxu1 %v10738_v32  ;;  %5780 = vmatmul.mubr.bf16.vlgmr.msra.gmra.mxu0 %v10738_v32 }
 0x775   : > { %v5016_v27 = vadd.f32 %v4957_v51, %v10468_v55  ;;  %5837 = vmatpush1.bf16.msra.mxu1 %v10327_v38  ;;  %5926 = vmatpush1.bf16.msra.mxu0 %v10486_v58  ;;  %v5043_v57 = vmax.f32 %v5015_v3, 0.0  ;;  %v4961_v28 = vadd.f32 %v4960_v0, %v10577_v60  ;;  %v10764_v3 = vpop.f32.mrf.mxu1 }
 0x776   : > { %v4962_v34 = vpop.f32.mrf.mxu0  ;;  %5838 = vmatprep.subr.bf16.mxu1 %v11334_v23  ;;  %5927 = vmatprep.subr.bf16.mxu0 %v11334_v23 }
 0x777   : > { %v5044_v6 = vmax.f32 %v5016_v27, 0.0  ;;  %v4963_v26 = vadd.f32 %v4962_v34, %v10598_v4  ;;  %v10766_v51 = vpack.c.bf16 %v5043_v57, %v5041_v5 }
 0x778   : > { %v4964_v35 = vpop.f32.mrf.mxu0 }
 0x779   : > { %v10759_v25 = vpack.c.bf16 %v5044_v6, %v5042_v63  ;;  %v4965_v38 = vadd.f32 %v4964_v35, %v10613_v12  ;;  %5839 = vmatpush1.bf16.msra.mxu1 %v10339_v13  ;;  %5928 = vmatpush1.bf16.msra.mxu0 %v10501_v20  ;;  %v5018_v60 = vadd.f32 %v4963_v26, %v10468_v55 }
 0x77a   : > { %v4966_v45 = vpop.f32.mrf.mxu0  ;;  %5840 = vmatprep.subr.bf16.mxu1 %v11334_v23  ;;  %5929 = vmatprep.subr.bf16.mxu0 %v11334_v23  ;;  %v5017_v13 = vadd.f32 %v4961_v28, %v10471_v56 }
 0x77b   : > { %v5019_v4 = vadd.f32 %v4965_v38, %v10471_v56  ;;  %v4967_v8 = vadd.f32 %v4966_v45, %v10634_v19  ;;  %7573 = vmatprep.mubr.msk.bf16.mxu1 %vm1316_vm0, %v10759_v25  ;;  %7580 = vmatprep.mubr.msk.bf16.mxu0 %vm1316_vm0, %v10759_v25  ;;  %v10783_v19 = vpop.f32.mrf.mxu1  ;;  %v5046_v34 = vmax.f32 %v5018_v60, 0.0 }
 0x77c   : > { %v4970_v12 = vpop.f32.mrf.mxu0  ;;  %5685 = vmatmul.mubr.bf16.gmra.mxu1 %v10766_v51  ;;  %5788 = vmatmul.mubr.bf16.gmra.mxu0 %v10766_v51  ;;  %v5045_v26 = vmax.f32 %v5017_v13, 0.0 }
 0x77d   : > { %v5020_v0 = vadd.f32 %v4967_v8, %v10468_v55  ;;  %5841 = vmatpush1.bf16.msra.mxu1 %v10346_v40  ;;  %5930 = vmatpush1.bf16.msra.mxu0 %v10514_v61  ;;  %v5047_v27 = vmax.f32 %v5019_v4, 0.0  ;;  %v4971_v5 = vadd.f32 %v4970_v12, %v10649_v37  ;;  %v4749_v38 = vpop.f32.mrf.mxu1 }
 0x77e   : > { %v4972_v57 = vpop.f32.mrf.mxu0  ;;  %5842 = vmatprep.subr.bf16.mxu1 %v11334_v23  ;;  %5931 = vmatprep.subr.bf16.mxu0 %v11334_v23 }
 0x77f   : > { %v5048_v63 = vmax.f32 %v5020_v0, 0.0  ;;  %v4973_v6 = vadd.f32 %v4972_v57, %v10670_v29  ;;  %v10794_v45 = vpack.c.bf16 %v5047_v27, %v5045_v26 }
 0x780   : > { %v4974_v28 = vpop.f32.mrf.mxu0 }
 0x781   : > { %v10789_v35 = vpack.c.bf16 %v5048_v63, %v5046_v34  ;;  %v4975_v40 = vadd.f32 %v4974_v28, %v10685_v14  ;;  %5843 = vmatpush1.bf16.msra.mxu1 %v10356_v49  ;;  %5932 = vmatpush1.bf16.msra.mxu0 %v10537_v31  ;;  %v5022_v29 = vadd.f32 %v4973_v6, %v10468_v55 }
 0x782   : > { %v4976_v4 = vpop.f32.mrf.mxu0  ;;  %5844 = vmatprep.subr.bf16.mxu1 %v11334_v23  ;;  %5933 = vmatprep.subr.bf16.mxu0 %v11334_v23  ;;  %v5021_v49 = vadd.f32 %v4971_v5, %v10471_v56 }
 0x783   : > { %v5023_v37 = vadd.f32 %v4975_v40, %v10471_v56  ;;  %v4977_v60 = vadd.f32 %v4976_v4, %v10707_v48  ;;  %7574 = vmatprep.mubr.msk.bf16.mxu1 %vm1316_vm0, %v10789_v35  ;;  %7581 = vmatprep.mubr.msk.bf16.mxu0 %vm1316_vm0, %v10789_v35  ;;  %v4751_v48 = vpop.f32.mrf.mxu1  ;;  %v5050_v0 = vmax.f32 %v5022_v29, 0.0 }
 0x784   : > { %v4980_v14 = vpop.f32.mrf.mxu0  ;;  %5693 = vmatmul.mubr.bf16.gmra.mxu1 %v10794_v45  ;;  %5796 = vmatmul.mubr.bf16.gmra.mxu0 %v10794_v45  ;;  %v5049_v34 = vmax.f32 %v5021_v49, 0.0 }
 0x785   : > { %v5024_v8 = vadd.f32 %v4977_v60, %v10468_v55  ;;  %5845 = vmatpush1.bf16.msra.mxu1 %v10369_v9  ;;  %5934 = vmatpush1.bf16.msra.mxu0 %v10550_v50  ;;  %v5051_v13 = vmax.f32 %v5023_v37, 0.0  ;;  %v4981_v63 = vadd.f32 %v4980_v14, %v10725_v62  ;;  %v4753_v5 = vpop.f32.mrf.mxu1 }
 0x786   : > { %v4982_v12 = vpop.f32.mrf.mxu0  ;;  %5846 = vmatprep.subr.bf16.mxu1 %v11334_v23  ;;  %5935 = vmatprep.subr.bf16.mxu0 %v11334_v23 }
 0x787   : > { %v5052_v27 = vmax.f32 %v5024_v8, 0.0  ;;  %v4983_v57 = vadd.f32 %v4982_v12, %v10736_v53  ;;  %v10820_v28 = vpack.c.bf16 %v5051_v13, %v5049_v34 }
 0x788   : > { %v4984_v6 = vpop.f32.mrf.mxu0 }
 0x789   : > { %v10815_v26 = vpack.c.bf16 %v5052_v27, %v5050_v0  ;;  %v4985_v9 = vadd.f32 %v4984_v6, %v10753_v21  ;;  %5847 = vmatpush1.bf16.msra.mxu1 %v10386_v16  ;;  %5936 = vmatpush1.bf16.msra.mxu0 %v10573_v42  ;;  %v5026_v53 = vadd.f32 %v4983_v57, %v10468_v55 }
 0x78a   : > { %v4986_v40 = vpop.f32.mrf.mxu0  ;;  %5848 = vmatprep.subr.bf16.mxu1 %v11334_v23  ;;  %5937 = vmatprep.subr.bf16.mxu0 %v11334_v23  ;;  %v5025_v16 = vadd.f32 %v4981_v63, %v10471_v56 }
 0x78b   : > { %v5027_v62 = vadd.f32 %v4985_v9, %v10471_v56  ;;  %v4987_v4 = vadd.f32 %v4986_v40, %v10764_v3  ;;  %7575 = vmatprep.mubr.msk.bf16.mxu1 %vm1316_vm0, %v10815_v26  ;;  %7582 = vmatprep.mubr.msk.bf16.mxu0 %vm1316_vm0, %v10815_v26  ;;  %v4757_v3 = vpop.f32.mrf.mxu1  ;;  %v5054_v49 = vmax.f32 %v5026_v53, 0.0 }
 0x78c   : > { %v4990_v21 = vpop.f32.mrf.mxu0  ;;  %5701 = vmatmul.mubr.bf16.gmra.mxu1 %v10820_v28  ;;  %5804 = vmatmul.mubr.bf16.gmra.mxu0 %v10820_v28  ;;  %v5053_v13 = vmax.f32 %v5025_v16, 0.0 }
 0x78d   : > { %v5028_v29 = vadd.f32 %v4987_v4, %v10468_v55  ;;  %5849 = vmatpush1.bf16.msra.mxu1 %v10400_v24  ;;  %5938 = vmatpush1.bf16.msra.mxu0 %v10586_v33  ;;  %v5055_v37 = vmax.f32 %v5027_v62, 0.0  ;;  %v4991_v12 = vadd.f32 %v4990_v21, %v10783_v19  ;;  %v4759_v24 = vpop.f32.mrf.mxu1 }
 0x78e   : > { %v4992_v60 = vpop.f32.mrf.mxu0  ;;  %5850 = vmatprep.subr.bf16.mxu1 %v11334_v23  ;;  %5939 = vmatprep.subr.bf16.mxu0 %v11334_v23 }
 0x78f   : > { %v5056_v14 = vmax.f32 %v5028_v29, 0.0  ;;  %v4993_v8 = vadd.f32 %v4992_v60, %v4749_v38  ;;  %v10844_v34 = vpack.c.bf16 %v5055_v37, %v5053_v13 }
 0x790   : > { %v4994_v0 = vpop.f32.mrf.mxu0 }
 0x791   : > { %v10840_v27 = vpack.c.bf16 %v5056_v14, %v5054_v49  ;;  %v4995_v57 = vadd.f32 %v4994_v0, %v4751_v48  ;;  %5851 = vmatpush1.bf16.msra.mxu1 %v10411_v39  ;;  %5940 = vmatpush1.bf16.msra.mxu0 %v10609_v43  ;;  %v5030_v38 = vadd.f32 %v4993_v8, %v10468_v55 }
 0x792   : > { %v4996_v63 = vpop.f32.mrf.mxu0  ;;  %5856 = vmatprep.subr.bf16.mxu1 %v11334_v23  ;;  %5945 = vmatprep.subr.bf16.mxu0 %v11334_v23  ;;  %v5029_v39 = vadd.f32 %v4991_v12, %v10471_v56 }
 0x793   : > { %v5031_v19 = vadd.f32 %v4995_v57, %v10471_v56  ;;  %v4997_v6 = vadd.f32 %v4996_v63, %v4753_v5  ;;  %7576 = vmatprep.mubr.msk.bf16.mxu1 %vm1316_vm0, %v10840_v27  ;;  %7583 = vmatprep.mubr.msk.bf16.mxu0 %vm1316_vm0, %v10840_v27  ;;  %v4761_v5 = vpop.f32.mrf.mxu1  ;;  %v5058_v62 = vmax.f32 %v5030_v38, 0.0 }
 0x794   : > { %v5000_v48 = vpop.f32.mrf.mxu0  ;;  %5709 = vmatmul.mubr.bf16.gmra.mxu1 %v10844_v34  ;;  %5812 = vmatmul.mubr.bf16.gmra.mxu0 %v10844_v34  ;;  %v5057_v21 = vmax.f32 %v5029_v39, 0.0 }
 0x795   : > { %v5032_v9 = vadd.f32 %v4997_v6, %v10468_v55  ;;  %5857 = vmatpush2.bf16.msra.mxu1 %v10418_v47  ;;  %5946 = vmatpush2.bf16.msra.mxu0 %v10622_v30  ;;  %v5059_v40 = vmax.f32 %v5031_v19, 0.0  ;;  %v5001_v29 = vadd.f32 %v5000_v48, %v4757_v3  ;;  %v4763_v47 = vpop.f32.mrf.mxu1 }
 0x796   : > { %v5002_v53 = vpop.f32.mrf.mxu0  ;;  %5858 = vmatprep.subr.bf16.mxu1 %v11334_v23  ;;  %5947 = vmatprep.subr.bf16.mxu0 %v11334_v23 }
 0x797   : > { %v5060_v4 = vmax.f32 %v5032_v9, 0.0  ;;  %v5003_v16 = vadd.f32 %v5002_v53, %v4759_v24  ;;  %v10866_v14 = vpack.c.bf16 %v5059_v40, %v5057_v21 }
 0x798   : > { %v5004_v37 = vpop.f32.mrf.mxu0 }
 0x799   : > { %v10862_v60 = vpack.c.bf16 %v5060_v4, %v5058_v62  ;;  %v5005_v49 = vadd.f32 %v5004_v37, %v4761_v5  ;;  %5859 = vmatpush2.bf16.msra.mxu1 %v10428_v46  ;;  %5948 = vmatpush2.bf16.msra.mxu0 %v10645_v22  ;;  %v5034_v13 = vadd.f32 %v5003_v16, %v10468_v55 }
 0x79a   : > { %v5006_v8 = vpop.f32.mrf.mxu0  ;;  %5860 = vmatprep.subr.bf16.mxu1 %v11334_v23  ;;  %5949 = vmatprep.subr.bf16.mxu0 %v11334_v23  ;;  %v5033_v46 = vadd.f32 %v5001_v29, %v10471_v56 }
 0x79b   : > { %v5035_v3 = vadd.f32 %v5005_v49, %v10471_v56  ;;  %v5007_v12 = vadd.f32 %v5006_v8, %v4763_v47  ;;  %7577 = vmatprep.mubr.msk.bf16.mxu1 %vm1316_vm0, %v10862_v60  ;;  %7584 = vmatprep.mubr.msk.bf16.mxu0 %vm1316_vm0, %v10862_v60  ;;  %v5062_v24 = vmax.f32 %v5034_v13, 0.0 }
 0x79c   : > { %5717 = vmatmul.mubr.bf16.gmra.mxu1 %v10866_v14  ;;  %5820 = vmatmul.mubr.bf16.gmra.mxu0 %v10866_v14  ;;  %v5061_v38 = vmax.f32 %v5033_v46, 0.0 }
 0x79d   : > { %v5036_v0 = vadd.f32 %v5007_v12, %v10468_v55  ;;  %5861 = vmatpush2.bf16.msra.mxu1 %v10435_v17  ;;  %5950 = vmatpush2.bf16.msra.mxu0 %v10658_v15  ;;  %v5063_v57 = vmax.f32 %v5035_v3, 0.0  ;;  %v11336_v17 = vld [vmem:[#allocation2_spill] sm:$0xff] }
 0x79e   : > { %5862 = vmatprep.subr.bf16.mxu1 %v11334_v23  ;;  %5951 = vmatprep.subr.bf16.mxu0 %v11334_v23  ;;  %v11340_v55 = vld [vmem:[#allocation6_spill] sm:$0xff] }
 0x79f   : > { %v5064_v63 = vmax.f32 %v5036_v0, 0.0  ;;  %v5077_v56 = vpack.c.bf16 %v5063_v57, %v5061_v38 }
 0x7a1   : > { %v5078_v19 = vpack.c.bf16 %v5064_v63, %v5062_v24  ;;  %5863 = vmatpush2.bf16.msra.mxu1 %v10444_v18  ;;  %5952 = vmatpush2.bf16.msra.mxu0 %v10681_v2  ;;  %v11337_v18 = vld [vmem:[#allocation3_spill] sm:$0xff] }
 0x7a2   : > { %5864 = vmatprep.subr.bf16.mxu1 %v11334_v23  ;;  %5953 = vmatprep.subr.bf16.mxu0 %v11334_v23 }
 0x7a3   : > { %7578 = vmatprep.mubr.msk.bf16.mxu1 %vm1316_vm0, %v5078_v19  ;;  %7585 = vmatprep.mubr.msk.bf16.mxu0 %vm1316_vm0, %v5078_v19 }
 0x7a4   : > { %5725 = vmatmul.mubr.bf16.gmra.mxu1 %v5077_v56  ;;  %5828 = vmatmul.mubr.bf16.gmra.mxu0 %v5077_v56 }
 0x7a5   : > { %5865 = vmatpush2.bf16.msra.mxu1 %v10451_v41  ;;  %7586 = vmatprep.mubr.msk.bf16.mxu1 %vm1316_vm0, %v10733_v44  ;;  %v11338_v41 = vld [vmem:[#allocation4_spill] sm:$0xff] }
 0x7a6   : > { %5954 = vmatpush2.bf16.msra.mxu0 %v10695_v59  ;;  %7593 = vmatprep.mubr.msk.bf16.mxu0 %vm1316_vm0, %v10507_v54 }
 0x7a7   : > { %5866 = vmatprep.subr.bf16.mxu1 %v11334_v23  ;;  %5955 = vmatprep.subr.bf16.mxu0 %v11334_v23 }
 0x7a9   : > { %5867 = vmatpush2.bf16.msra.mxu1 %v10459_v10  ;;  %v11339_v10 = vld [vmem:[#allocation5_spill] sm:$0xff] }
 0x7aa   : > { %5956 = vmatpush2.bf16.msra.mxu0 %v10719_v52  ;;  %7700 = vmatprep.subr.bf16.mxu1 %v11334_v23 }
 0x7ac   : > { %5869 = vmatmul.mubr.bf16.vlgmr.msra.gmra.mxu1 %v10738_v32 }
 0x7ad   : > { %7714 = vmatpush1.bf16.msra.mxu1 %v10486_v58  ;;  %5958 = vmatmul.mubr.bf16.vlgmr.msra.gmra.mxu0 %v10516_v1  ;;  %v11341_v58 = vld [vmem:[#allocation7_spill] sm:$0xff] }
 0x7ae   : > { %7587 = vmatprep.mubr.msk.bf16.mxu1 %vm1316_vm0, %v10759_v25  ;;  %7594 = vmatprep.mubr.msk.bf16.mxu0 %vm1316_vm0, %v10543_v36 }
 0x7af   : > { %7701 = vmatprep.subr.bf16.mxu1 %v11334_v23 }
 0x7b1   : > { %7715 = vmatpush1.bf16.msra.mxu1 %v10501_v20  ;;  %v11342_v20 = vld [vmem:[#allocation8_spill] sm:$0xff] }
 0x7b2   : > { %7702 = vmatprep.subr.bf16.mxu1 %v11334_v23 }
 0x7b4   : > { %5877 = vmatmul.mubr.bf16.gmra.mxu1 %v10766_v51 }
 0x7b5   : > { %7716 = vmatpush1.bf16.msra.mxu1 %v10514_v61  ;;  %5966 = vmatmul.mubr.bf16.gmra.mxu0 %v10552_v11 }
 0x7b6   : > { %7588 = vmatprep.mubr.msk.bf16.mxu1 %vm1316_vm0, %v10789_v35  ;;  %7595 = vmatprep.mubr.msk.bf16.mxu0 %vm1316_vm0, %v11336_v17 }
 0x7b7   : > { %7703 = vmatprep.subr.bf16.mxu1 %v11334_v23 }
 0x7b9   : > { %7717 = vmatpush1.bf16.msra.mxu1 %v10537_v31 }
 0x7ba   : > { %7704 = vmatprep.subr.bf16.mxu1 %v11334_v23 }
 0x7bc   : > { %5885 = vmatmul.mubr.bf16.gmra.mxu1 %v10794_v45 }
 0x7bd   : > { %7718 = vmatpush1.bf16.msra.mxu1 %v10550_v50  ;;  %5974 = vmatmul.mubr.bf16.gmra.mxu0 %v11337_v18 }
 0x7be   : > { %7589 = vmatprep.mubr.msk.bf16.mxu1 %vm1316_vm0, %v10815_v26  ;;  %7596 = vmatprep.mubr.msk.bf16.mxu0 %vm1316_vm0, %v11338_v41 }
 0x7bf   : > { %7705 = vmatprep.subr.bf16.mxu1 %v11334_v23 }
 0x7c1   : > { %7719 = vmatpush1.bf16.msra.mxu1 %v10573_v42 }
 0x7c2   : > { %7706 = vmatprep.subr.bf16.mxu1 %v11334_v23 }
 0x7c4   : > { %5893 = vmatmul.mubr.bf16.gmra.mxu1 %v10820_v28 }
 0x7c5   : > { %7720 = vmatpush1.bf16.msra.mxu1 %v10586_v33  ;;  %5982 = vmatmul.mubr.bf16.gmra.mxu0 %v11339_v10 }
 0x7c6   : > { %7590 = vmatprep.mubr.msk.bf16.mxu1 %vm1316_vm0, %v10840_v27  ;;  %7707 = vmatprep.subr.bf16.mxu1 %v11334_v23 }
 0x7c9   : > { %7721 = vmatpush1.bf16.msra.mxu1 %v10609_v43 }
 0x7ca   : > { %7708 = vmatprep.subr.bf16.mxu1 %v11334_v23 }
 0x7cc   : > { %5901 = vmatmul.mubr.bf16.gmra.mxu1 %v10844_v34 }
 0x7cd   : > { %7722 = vmatpush2.bf16.msra.mxu1 %v10622_v30  ;;  %7591 = vmatprep.mubr.msk.bf16.mxu1 %vm1316_vm0, %v10862_v60 }
 0x7ce   : > { %7709 = vmatprep.subr.bf16.mxu1 %v11334_v23 }
 0x7d1   : > { %7723 = vmatpush2.bf16.msra.mxu1 %v10645_v22 }
 0x7d2   : > { %7710 = vmatprep.subr.bf16.mxu1 %v11334_v23 }
 0x7d4   : > { %5909 = vmatmul.mubr.bf16.gmra.mxu1 %v10866_v14 }
 0x7d5   : > { %7724 = vmatpush2.bf16.msra.mxu1 %v10658_v15  ;;  %7592 = vmatprep.mubr.msk.bf16.mxu1 %vm1316_vm0, %v5078_v19 }
 0x7d6   : > { %7711 = vmatprep.subr.bf16.mxu1 %v11334_v23 }
 0x7d9   : > { %7725 = vmatpush2.bf16.msra.mxu1 %v10681_v2 }
 0x7da   : > { %7712 = vmatprep.subr.bf16.mxu1 %v11334_v23 }
 0x7dc   : > { %5917 = vmatmul.mubr.bf16.gmra.mxu1 %v5077_v56  ;;  %v11020_v56 = vld [vmem:[%s11307_s17] ss:$0 sm:$0xff] }
 0x7dd   : > { %7726 = vmatpush2.bf16.msra.mxu1 %v10695_v59  ;;  %7597 = vmatprep.mubr.msk.bf16.mxu1 %vm1316_vm0, %v11340_v55 }
 0x7de   : > { %7713 = vmatprep.subr.bf16.mxu1 %v11334_v23 }
 0x7e1   : > { %7727 = vmatpush2.bf16.msra.mxu1 %v10719_v52 }
 0x7e4   : > { %5990 = vmatmul.mubr.bf16.vlgmr.msra.gmra.mxu1 %v11341_v58 }
 0x7e5   : > { %7598 = vmatprep.mubr.msk.bf16.mxu1 %vm1316_vm0, %v10687_v7 }
 0x7ec   : > { %5998 = vmatmul.mubr.bf16.gmra.mxu1 %v11342_v20 }
 0x7ed   : > { %6005 = vmatprep.mubr.bf16.mxu1 %v11334_v23 }
 0x7f4   : > { %6006 = vmatmul.mubr.bf16.gmra.mxu1 %v11334_v23 }
 0x7fa   : > { %v10963_v54 = vpop.f32.mrf.mxu1  ;;  %v5484_v61 = vpop.f32.mrf.mxu0 }
 0x7fc   : > { %v5255_v1 = vpop.f32.mrf.mxu1  ;;  %v5486_v31 = vpop.f32.mrf.mxu0 }
 0x7fe   : > { %v10965_v36 = vpop.f32.mrf.mxu1  ;;  %v10967_v50 = vpop.f32.mrf.mxu0 }
 0x800   : > { %v5258_v11 = vpop.f32.mrf.mxu1  ;;  %v5489_v42 = vpop.f32.mrf.mxu0 }
 0x802   : > { %v10969_v33 = vpop.f32.mrf.mxu1  ;;  %v10971_v7 = vpop.f32.mrf.mxu0 }
 0x804   : > { %v5263_v43 = vpop.f32.mrf.mxu1  ;;  %v5494_v30 = vpop.f32.mrf.mxu0 }
 0x806   : > { %v10973_v22 = vpop.f32.mrf.mxu1  ;;  %v10975_v15 = vpop.f32.mrf.mxu0 }
 0x808   : > { %v5266_v23 = vpop.f32.mrf.mxu1  ;;  %v5497_v2 = vpop.f32.mrf.mxu0 }
 0x80a   : > { %v10977_v59 = vpop.f32.mrf.mxu1  ;;  %v10979_v52 = vpop.f32.mrf.mxu0 }
 0x80c   : > { %v5271_v44 = vpop.f32.mrf.mxu1  ;;  %v5502_v32 = vpop.f32.mrf.mxu0 }
 0x80e   : > { %v10981_v25 = vpop.f32.mrf.mxu1  ;;  %v10983_v51 = vpop.f32.mrf.mxu0 }
 0x810   : > { %v5274_v35 = vpop.f32.mrf.mxu1  ;;  %v5505_v45 = vpop.f32.mrf.mxu0 }
 0x812   : > { %v10985_v26 = vpop.f32.mrf.mxu1  ;;  %v10987_v28 = vpop.f32.mrf.mxu0 }
 0x814   : > { %v5279_v27 = vpop.f32.mrf.mxu1  ;;  %v5510_v34 = vpop.f32.mrf.mxu0 }
 0x816   : > { %v10989_v6 = vpop.f32.mrf.mxu1  ;;  %v10991_v39 = vpop.f32.mrf.mxu0 }
 0x818   : > { %v5282_v48 = vpop.f32.mrf.mxu1  ;;  %v5513_v9 = vpop.f32.mrf.mxu0 }
 0x81a   : > { %v10993_v5 = vpop.f32.mrf.mxu1  ;;  %v10995_v40 = vpop.f32.mrf.mxu0 }
 0x81c   : > { %v5287_v53 = vpop.f32.mrf.mxu1  ;;  %v5518_v62 = vpop.f32.mrf.mxu0 }
 0x81e   : > { %v10997_v4 = vpop.f32.mrf.mxu1  ;;  %v10999_v16 = vpop.f32.mrf.mxu0 }
 0x820   : > { %v5290_v21 = vpop.f32.mrf.mxu1  ;;  %v5521_v29 = vpop.f32.mrf.mxu0 }
 0x822   : > { %v11001_v37 = vpop.f32.mrf.mxu1  ;;  %v11003_v60 = vpop.f32.mrf.mxu0 }
 0x824   : > { %v5295_v49 = vpop.f32.mrf.mxu1  ;;  %v5526_v47 = vpop.f32.mrf.mxu0 }
 0x826   : > { %v11005_v14 = vpop.f32.mrf.mxu1  ;;  %v11007_v8 = vpop.f32.mrf.mxu0 }
 0x828   : > { %v5298_v13 = vpop.f32.mrf.mxu1  ;;  %v5529_v3 = vpop.f32.mrf.mxu0 }
 0x82a   : > { %v11009_v12 = vpop.f32.mrf.mxu1  ;;  %v11011_v46 = vpop.f32.mrf.mxu0 }
 0x82c   : > { %v5303_v0 = vpop.f32.mrf.mxu1  ;;  %v5534_v57 = vpop.f32.mrf.mxu0 }
 0x82e   : > { %v11013_v24 = vpop.f32.mrf.mxu1  ;;  %v11015_v63 = vpop.f32.mrf.mxu0 }
 0x830   : > { %v5306_v38 = vpop.f32.mrf.mxu1  ;;  %v5537_v19 = vpop.f32.mrf.mxu0 }
 0x834   : > { %v5678_v17 = vpop.f32.mrf.mxu1  ;;  %v5781_v18 = vpop.f32.mrf.mxu0 }
 0x835   : > { %v5679_v41 = vadd.f32 %v5678_v17, %v5484_v61  ;;  %v5782_v10 = vadd.f32 %v11020_v56, %v5781_v18 }
 0x836   : > { %v5680_v55 = vpop.f32.mrf.mxu1  ;;  %v5783_v58 = vpop.f32.mrf.mxu0 }
 0x837   : > { %v5733_v20 = vadd.f32 %v11020_v56, %v5679_v41  ;;  %v7627_v1 = vmul.f32 -1.442695, %v5782_v10 }
 0x838   : > { %v5681_v31 = vpop.f32.mrf.mxu1  ;;  %v5784_v11 = vpop.f32.mrf.mxu0 }
 0x839   : > { %v7613_v42 = vmul.f32 -1.442695, %v5733_v20  ;;  %8267 = vpow2.f32 %v7627_v1  ;;  %v5682_v43 = vadd.f32 %v5681_v31, %v10967_v50  ;;  %v5785_v30 = vadd.f32 %v11020_v56, %v5784_v11 }
 0x83a   : > { %v5683_v23 = vpop.f32.mrf.mxu1  ;;  %v5786_v2 = vpop.f32.mrf.mxu0 }
 0x83b   : > { %v5734_v44 = vadd.f32 %v11020_v56, %v5682_v43  ;;  %8269 = vpow2.f32 %v7613_v42  ;;  %v7628_v61 = vmul.f32 -1.442695, %v5785_v30 }
 0x83c   : > { %v5686_v32 = vpop.f32.mrf.mxu1  ;;  %v5789_v35 = vpop.f32.mrf.mxu0 }
 0x83d   : > { %v7614_v45 = vmul.f32 -1.442695, %v5734_v44  ;;  %v5687_v27 = vadd.f32 %v5686_v32, %v10971_v7  ;;  %v5790_v34 = vadd.f32 %v11020_v56, %v5789_v35  ;;  %8271 = vpow2.f32 %v7628_v61 }
 0x83e   : > { %v5688_v48 = vpop.f32.mrf.mxu1  ;;  %v5791_v9 = vpop.f32.mrf.mxu0 }
 0x83f   : > { %8273 = vpow2.f32 %v7614_v45  ;;  %v5735_v50 = vadd.f32 %v11020_v56, %v5687_v27  ;;  %v7629_v53 = vmul.f32 -1.442695, %v5790_v34 }
 0x840   : > { %v5689_v62 = vpop.f32.mrf.mxu1  ;;  %v5792_v21 = vpop.f32.mrf.mxu0 }
 0x841   : > { %v7615_v29 = vmul.f32 -1.442695, %v5735_v50  ;;  %8275 = vpow2.f32 %v7629_v53  ;;  %v5690_v49 = vadd.f32 %v5689_v62, %v10975_v15  ;;  %v5793_v47 = vadd.f32 %v11020_v56, %v5792_v21 }
 0x842   : > { %v5691_v13 = vpop.f32.mrf.mxu1  ;;  %v5794_v3 = vpop.f32.mrf.mxu0 }
 0x843   : > { %8277 = vpow2.f32 %v7615_v29  ;;  %v5736_v7 = vadd.f32 %v11020_v56, %v5690_v49  ;;  %v7630_v0 = vmul.f32 -1.442695, %v5793_v47 }
 0x844   : > { %v5694_v57 = vpop.f32.mrf.mxu1  ;;  %v5797_v38 = vpop.f32.mrf.mxu0 }
 0x845   : > { %v7616_v19 = vmul.f32 -1.442695, %v5736_v7  ;;  %8279 = vpow2.f32 %v7630_v0  ;;  %v5695_v17 = vadd.f32 %v5694_v57, %v10979_v52  ;;  %v5798_v18 = vadd.f32 %v11020_v56, %v5797_v38 }
 0x846   : > { %v8268_v41 = vpop.eup %8267  ;;  %v5696_v10 = vpop.f32.mrf.mxu1 }
 0x847   : > { %v5799_v55 = vpop.f32.mrf.mxu0  ;;  %v6238_v15 = vadd.f32 1.0, %v8268_v41  ;;  %8281 = vpow2.f32 %v7616_v19  ;;  %v5737_v58 = vadd.f32 %v11020_v56, %v5695_v17  ;;  %v7631_v20 = vmul.f32 -1.442695, %v5798_v18 }
 0x848   : > { %v5697_v1 = vpop.f32.mrf.mxu1  ;;  %v8270_v11 = vpop.eup %8269 }
 0x849   : > { %v5800_v31 = vpop.f32.mrf.mxu0  ;;  %8283 = vrcp.f32 %v6238_v15  ;;  %v7617_v42 = vmul.f32 -1.442695, %v5737_v58  ;;  %v5698_v43 = vadd.f32 %v5697_v1, %v10983_v51  ;;  %v6154_v52 = vadd.f32 1.0, %v8270_v11 }
 0x84a   : > { %v5801_v30 = vadd.f32 %v11020_v56, %v5800_v31  ;;  %8285 = vpow2.f32 %v7631_v20  ;;  %v5699_v23 = vpop.f32.mrf.mxu1  ;;  %v8272_v44 = vpop.eup %8271 }
 0x84b   : > { %v5802_v2 = vpop.f32.mrf.mxu0  ;;  %8287 = vpow2.f32 %v7617_v42  ;;  %v5738_v61 = vadd.f32 %v11020_v56, %v5698_v43  ;;  %v6239_v45 = vadd.f32 1.0, %v8272_v44 }
 0x84c   : > { %v7632_v32 = vmul.f32 -1.442695, %v5801_v30  ;;  %v8274_v35 = vpop.eup %8273  ;;  %8289 = vrcp.f32 %v6154_v52  ;;  %v5702_v27 = vpop.f32.mrf.mxu1 }
 0x84d   : > { %v5805_v34 = vpop.f32.mrf.mxu0  ;;  %v7618_v48 = vmul.f32 -1.442695, %v5738_v61  ;;  %v5703_v51 = vadd.f32 %v5702_v27, %v10987_v28  ;;  %v6155_v21 = vadd.f32 1.0, %v8274_v35 }
 0x84e   : > { %8291 = vpow2.f32 %v7632_v32  ;;  %v8276_v9 = vpop.eup %8275  ;;  %v5806_v50 = vadd.f32 %v11020_v56, %v5805_v34  ;;  %v5704_v53 = vpop.f32.mrf.mxu1 }
 0x84f   : > { %v5807_v62 = vpop.f32.mrf.mxu0  ;;  %8293 = vrcp.f32 %v6239_v45  ;;  %v6240_v29 = vadd.f32 1.0, %v8276_v9  ;;  %v5739_v49 = vadd.f32 %v11020_v56, %v5703_v51 }
 0x850   : > { %v8278_v47 = vpop.eup %8277  ;;  %8295 = vpow2.f32 %v7618_v48  ;;  %v7633_v13 = vmul.f32 -1.442695, %v5806_v50  ;;  %v5705_v3 = vpop.f32.mrf.mxu1 }
 0x851   : > { %v5808_v7 = vpop.f32.mrf.mxu0  ;;  %v6156_v0 = vadd.f32 1.0, %v8278_v47  ;;  %8297 = vrcp.f32 %v6240_v29  ;;  %v7619_v57 = vmul.f32 -1.442695, %v5739_v49  ;;  %v5706_v28 = vadd.f32 %v5705_v3, %v10991_v39 }
 0x852   : > { %v8280_v38 = vpop.eup %8279  ;;  %8299 = vpow2.f32 %v7633_v13  ;;  %v5809_v19 = vadd.f32 %v11020_v56, %v5808_v7  ;;  %v5707_v17 = vpop.f32.mrf.mxu1 }
 0x853   : > { %v5810_v18 = vpop.f32.mrf.mxu0  ;;  %8301 = vrcp.f32 %v6155_v21  ;;  %v6241_v41 = vadd.f32 1.0, %v8280_v38  ;;  %v5740_v10 = vadd.f32 %v11020_v56, %v5706_v28 }
 0x854   : > { %v8282_v55 = vpop.eup %8281  ;;  %8303 = vpow2.f32 %v7619_v57  ;;  %v7634_v15 = vmul.f32 -1.442695, %v5809_v19  ;;  %v5710_v58 = vpop.f32.mrf.mxu1 }
 0x855   : > { %v5813_v20 = vpop.f32.mrf.mxu0  ;;  %8305 = vrcp.f32 %v6156_v0  ;;  %v7620_v1 = vmul.f32 -1.442695, %v5740_v10  ;;  %v5711_v31 = vadd.f32 %v5710_v58, %v10995_v40  ;;  %v6157_v52 = vadd.f32 1.0, %v8282_v55 }
 0x856   : > { %v8284_v39 = vpop.eup %8283  ;;  %8307 = vpow2.f32 %v7634_v15  ;;  %v5814_v11 = vadd.f32 %v11020_v56, %v5813_v20  ;;  %v5712_v42 = vpop.f32.mrf.mxu1 }
 0x857   : > { %v5815_v43 = vpop.f32.mrf.mxu0  ;;  %v8286_v30 = vpop.eup %8285  ;;  %8309 = vrcp.f32 %v6241_v41  ;;  %v5741_v23 = vadd.f32 %v11020_v56, %v5711_v31  ;;  %6434 = vrot.lane.b32.xlu0 %v8284_v39, %s8502_s3 }
 0x858   : > { %v8288_v2 = vpop.eup %8287  ;;  %v6242_v44 = vadd.f32 1.0, %v8286_v30  ;;  %8311 = vpow2.f32 %v7620_v1  ;;  %v5713_v61 = vpop.f32.mrf.mxu1  ;;  %v7635_v51 = vmul.f32 -1.442695, %v5814_v11 }
 0x859   : > { %v5816_v32 = vpop.f32.mrf.mxu0  ;;  %v8290_v40 = vpop.eup %8289  ;;  %v6158_v35 = vadd.f32 1.0, %v8288_v2  ;;  %v7621_v45 = vmul.f32 -1.442695, %v5741_v23  ;;  %v5714_v27 = vadd.f32 %v5713_v61, %v10999_v16 }
 0x85a   : > { %v5817_v34 = vadd.f32 %v11020_v56, %v5816_v32  ;;  %8313 = vrcp.f32 %v6242_v44  ;;  %6378 = vrot.lane.b32.xlu1 %v8290_v40, %s8503_s26  ;;  %v5715_v9 = vpop.f32.mrf.mxu1 }
 0x85b   : > { %v8292_v48 = vpop.eup %8291  ;;  %v5818_v50 = vpop.f32.mrf.mxu0  ;;  %8315 = vrcp.f32 %v6157_v52  ;;  %v5742_v53 = vadd.f32 %v11020_v56, %v5714_v27 }
 0x85c   : > { %v8294_v62 = vpop.eup %8293  ;;  %8317 = vrcp.f32 %v6158_v35  ;;  %v6243_v21 = vadd.f32 1.0, %v8292_v48  ;;  %v7636_v29 = vmul.f32 -1.442695, %v5817_v34  ;;  %v5718_v49 = vpop.f32.mrf.mxu1 }
 0x85d   : > { %v5821_v47 = vpop.f32.mrf.mxu0  ;;  %v8296_v16 = vpop.eup %8295  ;;  %8319 = vpow2.f32 %v7621_v45  ;;  %v7622_v13 = vmul.f32 -1.442695, %v5742_v53  ;;  %v5719_v3 = vadd.f32 %v5718_v49, %v11003_v60 }
 0x85e   : > { %v5822_v7 = vadd.f32 %v11020_v56, %v5821_v47  ;;  %v8298_v0 = vpop.eup %8297  ;;  %8321 = vpow2.f32 %v7635_v51  ;;  %6436 = vrot.lane.b32.xlu1 %v8294_v62, %s8502_s3  ;;  %v5720_v57 = vpop.f32.mrf.mxu1  ;;  %v6159_v19 = vadd.f32 1.0, %v8296_v16 }
 0x85f   : > { %v5823_v28 = vpop.f32.mrf.mxu0  ;;  %v8300_v38 = vpop.eup %8299  ;;  %8323 = vpow2.f32 %v7622_v13  ;;  %v5743_v17 = vadd.f32 %v11020_v56, %v5719_v3  ;;  %6438 = vrot.lane.b32.xlu0 %v8298_v0, %s8502_s3 }
 0x860   : > { %v8302_v18 = vpop.eup %8301  ;;  %8325 = vrcp.f32 %v6243_v21  ;;  %v6244_v41 = vadd.f32 1.0, %v8300_v38  ;;  %v7637_v10 = vmul.f32 -1.442695, %v5822_v7  ;;  %v5721_v60 = vpop.f32.mrf.mxu1 }
 0x861   : > { %v5824_v55 = vpop.f32.mrf.mxu0  ;;  %v8304_v15 = vpop.eup %8303  ;;  %8327 = vpow2.f32 %v7636_v29  ;;  %v7623_v58 = vmul.f32 -1.442695, %v5743_v17  ;;  %v5722_v20 = vadd.f32 %v5721_v60, %v11007_v8 }
 0x862   : > { %v5825_v1 = vadd.f32 %v11020_v56, %v5824_v55  ;;  %v8306_v31 = vpop.eup %8305  ;;  %v6160_v39 = vadd.f32 1.0, %v8304_v15  ;;  %8329 = vrcp.f32 %v6244_v41  ;;  %6380 = vrot.lane.b32.xlu1 %v8302_v18, %s8503_s26  ;;  %v5723_v11 = vpop.f32.mrf.mxu1 }
 0x863   : > { %v5826_v42 = vpop.f32.mrf.mxu0  ;;  %v8308_v43 = vpop.eup %8307  ;;  %8331 = vrcp.f32 %v6159_v19  ;;  %v5744_v30 = vadd.f32 %v11020_v56, %v5722_v20  ;;  %6382 = vrot.lane.b32.xlu0 %v8306_v31, %s8503_s26 }
 0x864   : > { %v8310_v52 = vpop.eup %8309  ;;  %v6245_v23 = vadd.f32 1.0, %v8308_v43  ;;  %8333 = vpow2.f32 %v7623_v58  ;;  %v7638_v2 = vmul.f32 -1.442695, %v5825_v1  ;;  %v5726_v8 = vpop.f32.mrf.mxu1 }
 0x865   : > { %v5829_v44 = vpop.f32.mrf.mxu0  ;;  %v8312_v61 = vpop.eup %8311  ;;  %8335 = vpow2.f32 %v7637_v10  ;;  %v7624_v32 = vmul.f32 -1.442695, %v5744_v30  ;;  %v5727_v40 = vadd.f32 %v5726_v8, %v11011_v46 }
 0x866   : > { %v5830_v35 = vadd.f32 %v11020_v56, %v5829_v44  ;;  %8337 = vrcp.f32 %v6160_v39  ;;  %6440 = vrot.lane.b32.xlu1 %v8310_v52, %s8502_s3  ;;  %v5728_v45 = vpop.f32.mrf.mxu1  ;;  %v6161_v48 = vadd.f32 1.0, %v8312_v61 }
 0x867   : > { %v5831_v27 = vpop.f32.mrf.mxu0  ;;  %v8314_v34 = vpop.eup %8313  ;;  %8339 = vrcp.f32 %v6245_v23  ;;  %v5745_v51 = vadd.f32 %v11020_v56, %v5727_v40 }
 0x868   : > { %v7639_v9 = vmul.f32 -1.442695, %v5830_v35  ;;  %v8316_v50 = vpop.eup %8315  ;;  %8341 = vpow2.f32 %v7624_v32  ;;  %6442 = vrot.lane.b32.xlu0 %v8314_v34, %s8502_s3  ;;  %v5729_v53 = vpop.f32.mrf.mxu1 }
 0x869   : > { %v5832_v62 = vpop.f32.mrf.mxu0  ;;  %v8318_v46 = vpop.eup %8317  ;;  %8343 = vpow2.f32 %v7638_v2  ;;  %v7625_v21 = vmul.f32 -1.442695, %v5745_v51  ;;  %v5730_v29 = vadd.f32 %v5729_v53, %v11015_v63 }
 0x86a   : > { %v5833_v49 = vadd.f32 %v11020_v56, %v5832_v62  ;;  %v8320_v47 = vpop.eup %8319  ;;  %8345 = vpow2.f32 %v7639_v9  ;;  %6384 = vrot.lane.b32.xlu1 %v8316_v50, %s8503_s26  ;;  %v5731_v16 = vpop.f32.mrf.mxu1 }
 0x86b   : > { %v5834_v13 = vpop.f32.mrf.mxu0  ;;  %v8322_v3 = vpop.eup %8321  ;;  %8347 = vrcp.f32 %v6161_v48  ;;  %v5746_v7 = vadd.f32 %v11020_v56, %v5730_v29  ;;  %v6162_v41 = vadd.f32 1.0, %v8320_v47 }
 0x86c   : > { %v7640_v0 = vmul.f32 -1.442695, %v5833_v49  ;;  %v8324_v57 = vpop.eup %8323  ;;  %v6246_v28 = vadd.f32 1.0, %v8322_v3  ;;  %8349 = vpow2.f32 %v7625_v21  ;;  %6386 = vrot.lane.b32.xlu0 %v8318_v46, %s8503_s26  ;;  %v5870_v38 = vpop.f32.mrf.mxu1 }
 0x86d   : > { %v8326_v63 = vpop.eup %8325  ;;  %v7626_v19 = vmul.f32 -1.442695, %v5746_v7  ;;  %v5959_v17 = vpop.f32.mrf.mxu0  ;;  %v6163_v15 = vadd.f32 1.0, %v8324_v57 }
 0x86e   : > { %8351 = vpow2.f32 %v7640_v0  ;;  %v8328_v18 = vpop.eup %8327  ;;  %v5960_v10 = vadd.f32 %v5959_v17, %v5870_v38  ;;  %6444 = vrot.lane.b32.xlu1 %v8326_v63, %s8502_s3  ;;  %v5872_v60 = vpop.f32.mrf.mxu1 }
 0x86f   : > { %8353 = vrcp.f32 %v6246_v28  ;;  %v8330_v55 = vpop.eup %8329  ;;  %v6247_v58 = vadd.f32 1.0, %v8328_v18  ;;  %v5961_v20 = vpop.f32.mrf.mxu0 }
 0x870   : > { %v8332_v1 = vpop.eup %8331  ;;  %8355 = vpow2.f32 %v7626_v19  ;;  %v6014_v31 = vadd.f32 %v11020_v56, %v5960_v10  ;;  %6446 = vrot.lane.b32.xlu0 %v8330_v55, %s8502_s3  ;;  %v5873_v39 = vpop.f32.mrf.mxu1 }
 0x871   : > { %v8334_v11 = vpop.eup %8333  ;;  %8357 = vrcp.f32 %v6247_v58  ;;  %v5962_v42 = vpop.f32.mrf.mxu0 }
 0x872   : > { %v8336_v43 = vpop.eup %8335  ;;  %8359 = vrcp.f32 %v6162_v41  ;;  %v7641_v30 = vmul.f32 -1.442695, %v6014_v31  ;;  %v5963_v52 = vadd.f32 %v5962_v42, %v5873_v39  ;;  %6388 = vrot.lane.b32.xlu1 %v8332_v1, %s8503_s26  ;;  %v5875_v23 = vpop.f32.mrf.mxu1  ;;  %v6164_v34 = vadd.f32 1.0, %v8334_v11 }
 0x873   : > { %v8338_v2 = vpop.eup %8337  ;;  %8361 = vrcp.f32 %v6163_v15  ;;  %v6248_v8 = vadd.f32 1.0, %v8336_v43  ;;  %v5964_v44 = vpop.f32.mrf.mxu0 }
 0x874   : > { %v8340_v61 = vpop.eup %8339  ;;  %8363 = vpow2.f32 %v7641_v30  ;;  %v6015_v32 = vadd.f32 %v11020_v56, %v5963_v52  ;;  %6390 = vrot.lane.b32.xlu0 %v8338_v2, %s8503_s26  ;;  %v5878_v40 = vpop.f32.mrf.mxu1 }
 0x875   : > { %v8342_v35 = vpop.eup %8341  ;;  %8365 = vrcp.f32 %v6248_v8  ;;  %v5967_v45 = vpop.f32.mrf.mxu0 }
 0x876   : > { %v8344_v27 = vpop.eup %8343  ;;  %v7642_v48 = vmul.f32 -1.442695, %v6015_v32  ;;  %v5968_v51 = vadd.f32 %v5967_v45, %v5878_v40  ;;  %6448 = vrot.lane.b32.xlu1 %v8340_v61, %s8502_s3  ;;  %v5880_v9 = vpop.f32.mrf.mxu1  ;;  %v6165_v16 = vadd.f32 1.0, %v8342_v35 }
 0x877   : > { %v8346_v50 = vpop.eup %8345  ;;  %v6249_v53 = vadd.f32 1.0, %v8344_v27  ;;  %v5969_v62 = vpop.f32.mrf.mxu0 }
 0x878   : > { %v8348_v46 = vpop.eup %8347  ;;  %v6250_v21 = vadd.f32 1.0, %v8346_v50  ;;  %8367 = vpow2.f32 %v7642_v48  ;;  %v6016_v29 = vadd.f32 %v11020_v56, %v5968_v51  ;;  %v5881_v49 = vpop.f32.mrf.mxu1 }
 0x879   : > { %v8350_v47 = vpop.eup %8349  ;;  %8369 = vrcp.f32 %v6249_v53  ;;  %v5970_v13 = vpop.f32.mrf.mxu0 }
 0x87a   : > { %8371 = vrcp.f32 %v6164_v34  ;;  %v7643_v7 = vmul.f32 -1.442695, %v6016_v29  ;;  %v5971_v0 = vadd.f32 %v5970_v13, %v5881_v49  ;;  %6392 = vrot.lane.b32.xlu1 %v8348_v46, %s8503_s26  ;;  %v5883_v57 = vpop.f32.mrf.mxu1  ;;  %v6166_v60 = vadd.f32 1.0, %v8350_v47 }
 0x87b   : > { %v8352_v3 = vpop.eup %8351  ;;  %8373 = vrcp.f32 %v6250_v21  ;;  %v5972_v38 = vpop.f32.mrf.mxu0 }
 0x87c   : > { %v8354_v28 = vpop.eup %8353  ;;  %v6251_v63 = vadd.f32 1.0, %v8352_v3  ;;  %8375 = vpow2.f32 %v7643_v7  ;;  %v6017_v19 = vadd.f32 %v11020_v56, %v5971_v0  ;;  %v5886_v17 = vpop.f32.mrf.mxu1 }
 0x87d   : > { %6450 = vrot.lane.b32.xlu0 %v8354_v28, %s8502_s3  ;;  %v8356_v18 = vpop.eup %8355  ;;  %8377 = vrcp.f32 %v6165_v16  ;;  %v5975_v41 = vpop.f32.mrf.mxu0 }
 0x87e   : > { %v8358_v10 = vpop.eup %8357  ;;  %v7644_v55 = vmul.f32 -1.442695, %v6017_v19  ;;  %v5976_v15 = vadd.f32 %v5975_v41, %v5886_v17  ;;  %v5888_v58 = vpop.f32.mrf.mxu1  ;;  %v6167_v1 = vadd.f32 1.0, %v8356_v18  ;;  %8379 = vrcp.f32 %v6251_v63 }
 0x87f   : > { %v8360_v20 = vpop.eup %8359  ;;  %6452 = vrot.lane.b32.xlu1 %v8358_v10, %s8502_s3  ;;  %v5977_v31 = vpop.f32.mrf.mxu0 }
 0x880   : > { %v8362_v39 = vpop.eup %8361  ;;  %v6018_v11 = vadd.f32 %v11020_v56, %v5976_v15  ;;  %v5889_v42 = vpop.f32.mrf.mxu1  ;;  %8381 = vpow2.f32 %v7644_v55 }
 0x881   : > { %6394 = vrot.lane.b32.xlu0 %v8360_v20, %s8503_s26  ;;  %v8364_v43 = vpop.eup %8363  ;;  %v5978_v30 = vpop.f32.mrf.mxu0  ;;  %8383 = vrcp.f32 %v6166_v60 }
 0x882   : > { %v8366_v52 = vpop.eup %8365  ;;  %v6322_v23 = vadd.f32 1.0, %v8364_v43  ;;  %v7645_v2 = vmul.f32 -1.442695, %v6018_v11  ;;  %v5979_v8 = vadd.f32 %v5978_v30, %v5889_v42  ;;  %v5891_v44 = vpop.f32.mrf.mxu1  ;;  %8385 = vrcp.f32 %v6167_v1 }
 0x883   : > { %6396 = vrot.lane.b32.xlu1 %v8362_v39, %s8503_s26  ;;  %v5980_v61 = vpop.f32.mrf.mxu0 }
 0x884   : > { %8387 = vrcp.f32 %v6322_v23  ;;  %v6019_v32 = vadd.f32 %v11020_v56, %v5979_v8  ;;  %v5894_v40 = vpop.f32.mrf.mxu1 }
 0x885   : > { %6454 = vrot.lane.b32.xlu0 %v8366_v52, %s8502_s3  ;;  %v8368_v35 = vpop.eup %8367  ;;  %8389 = vpow2.f32 %v7645_v2  ;;  %v5983_v45 = vpop.f32.mrf.mxu0 }
 0x886   : > { %v8370_v27 = vpop.eup %8369  ;;  %v6323_v34 = vadd.f32 1.0, %v8368_v35  ;;  %v7646_v48 = vmul.f32 -1.442695, %v6019_v32  ;;  %v5984_v51 = vadd.f32 %v5983_v45, %v5894_v40  ;;  %v5896_v9 = vpop.f32.mrf.mxu1 }
 0x887   : > { %v8372_v50 = vpop.eup %8371  ;;  %6456 = vrot.lane.b32.xlu1 %v8370_v27, %s8502_s3  ;;  %v5985_v53 = vpop.f32.mrf.mxu0 }
 0x888   : > { %v8374_v62 = vpop.eup %8373  ;;  %8391 = vrcp.f32 %v6323_v34  ;;  %v6020_v46 = vadd.f32 %v11020_v56, %v5984_v51  ;;  %v5897_v21 = vpop.f32.mrf.mxu1 }
 0x889   : > { %6398 = vrot.lane.b32.xlu0 %v8372_v50, %s8503_s26  ;;  %v8376_v29 = vpop.eup %8375  ;;  %8393 = vpow2.f32 %v7646_v48  ;;  %v5986_v49 = vpop.f32.mrf.mxu0 }
 0x88a   : > { %v8378_v47 = vpop.eup %8377  ;;  %v6324_v16 = vadd.f32 1.0, %v8376_v29  ;;  %v7647_v13 = vmul.f32 -1.442695, %v6020_v46  ;;  %v5987_v3 = vadd.f32 %v5986_v49, %v5897_v21  ;;  %v5899_v7 = vpop.f32.mrf.mxu1 }
 0x88b   : > { %6400 = vrot.lane.b32.xlu1 %v8378_v47, %s8503_s26  ;;  %v5988_v0 = vpop.f32.mrf.mxu0  ;;  %v8380_v38 = vpop.eup %8379 }
 0x88c   : > { %8395 = vrcp.f32 %v6324_v16  ;;  %v6021_v57 = vadd.f32 %v11020_v56, %v5987_v3  ;;  %v5902_v28 = vpop.f32.mrf.mxu1 }
 0x88d   : > { %6458 = vrot.lane.b32.xlu0 %v8374_v62, %s8502_s3  ;;  %8397 = vpow2.f32 %v7647_v13  ;;  %v8382_v63 = vpop.eup %8381 }
 0x88e   : > { %v7648_v19 = vmul.f32 -1.442695, %v6021_v57  ;;  %v5904_v17 = vpop.f32.mrf.mxu1  ;;  %v8384_v18 = vpop.eup %8383  ;;  %v6325_v41 = vadd.f32 1.0, %v8382_v63 }
 0x88f   : > { %6460 = vrot.lane.b32.xlu1 %v8380_v38, %s8502_s3  ;;  %v8386_v10 = vpop.eup %8385 }
 0x890   : > { %8399 = vpow2.f32 %v7648_v19  ;;  %v5905_v60 = vpop.f32.mrf.mxu1 }
 0x891   : > { %6402 = vrot.lane.b32.xlu0 %v8384_v18, %s8503_s26  ;;  %v8388_v55 = vpop.eup %8387  ;;  %8401 = vrcp.f32 %v6325_v41 }
 0x892   : > { %v8390_v15 = vpop.eup %8389  ;;  %v5907_v58 = vpop.f32.mrf.mxu1 }
 0x893   : > { %v6326_v20 = vadd.f32 1.0, %v8390_v15  ;;  %6404 = vrot.lane.b32.xlu1 %v8386_v10, %s8503_s26 }
 0x894   : > { %v5910_v1 = vpop.f32.mrf.mxu1 }
 0x895   : > { %6490 = vrot.lane.b32.xlu0 %v8388_v55, %s8504_s27  ;;  %v8392_v31 = vpop.eup %8391  ;;  %8403 = vrcp.f32 %v6326_v20 }
 0x896   : > { %v8394_v39 = vpop.eup %8393  ;;  %v5912_v11 = vpop.f32.mrf.mxu1 }
 0x897   : > { %v6327_v42 = vadd.f32 1.0, %v8394_v39  ;;  %6492 = vrot.lane.b32.xlu1 %v8392_v31, %s8504_s27 }
 0x898   : > { %v5913_v43 = vpop.f32.mrf.mxu1 }
 0x899   : > { %v8396_v30 = vpop.eup %8395  ;;  %8405 = vrcp.f32 %v6327_v42 }
 0x89a   : > { %v8398_v52 = vpop.eup %8397  ;;  %6494 = vrot.lane.b32.xlu0 %v8396_v30, %s8504_s27  ;;  %v5915_v23 = vpop.f32.mrf.mxu1 }
 0x89b   : > { %v6328_v2 = vadd.f32 1.0, %v8398_v52 }
 0x89c   : > { %v5918_v8 = vpop.f32.mrf.mxu1 }
 0x89d   : > { %v8400_v44 = vpop.eup %8399  ;;  %8407 = vrcp.f32 %v6328_v2 }
 0x89e   : > { %v8402_v61 = vpop.eup %8401  ;;  %v6329_v32 = vadd.f32 1.0, %v8400_v44  ;;  %v5920_v40 = vpop.f32.mrf.mxu1 }
 0x89f   : > { %6496 = vrot.lane.b32.xlu1 %v8402_v61, %s8504_s27  ;;  %v5286_v61 = vadd.f32 %v11020_v56, %v10993_v5 }
 0x8a0   : > { %8409 = vrcp.f32 %v6329_v32  ;;  %v5921_v35 = vpop.f32.mrf.mxu1 }
 0x8a2   : > { %v8404_v45 = vpop.eup %8403  ;;  %v5923_v27 = vpop.f32.mrf.mxu1 }
 0x8a3   : > { %6498 = vrot.lane.b32.xlu0 %v8404_v45, %s8504_s27 }
 0x8a4   : > { %v5991_v34 = vpop.f32.mrf.mxu1 }
 0x8a5   : > { %v5992_v48 = vadd.f32 %v5991_v34, %v5902_v28  ;;  %v7607_v34 = vmul.f32 -1.442695, %v5286_v61 }
 0x8a6   : > { %v8406_v51 = vpop.eup %8405  ;;  %v5993_v9 = vpop.f32.mrf.mxu1 }
 0x8a7   : > { %v6022_v50 = vadd.f32 %v11020_v56, %v5992_v48  ;;  %6500 = vrot.lane.b32.xlu1 %v8406_v51, %s8504_s27 }
 0x8a8   : > { %v5994_v53 = vpop.f32.mrf.mxu1 }
 0x8a9   : > { %v7649_v62 = vmul.f32 -1.442695, %v6022_v50  ;;  %v5995_v46 = vadd.f32 %v5994_v53, %v5905_v60  ;;  %v5294_v53 = vadd.f32 %v11020_v56, %v11001_v37 }
 0x8aa   : > { %v8408_v21 = vpop.eup %8407  ;;  %v5996_v29 = vpop.f32.mrf.mxu1 }
 0x8ab   : > { %8411 = vpow2.f32 %v7649_v62  ;;  %v6023_v49 = vadd.f32 %v11020_v56, %v5995_v46  ;;  %6502 = vrot.lane.b32.xlu0 %v8408_v21, %s8504_s27  ;;  %v5297_v46 = vadd.f32 %v11020_v56, %v11005_v14  ;;  %v7609_v29 = vmul.f32 -1.442695, %v5294_v53 }
 0x8ac   : > { %v5999_v47 = vpop.f32.mrf.mxu1  ;;  %v5257_v14 = vadd.f32 %v11020_v56, %v10965_v36 }
 0x8ad   : > { %v8410_v16 = vpop.eup %8409  ;;  %v7650_v13 = vmul.f32 -1.442695, %v6023_v49  ;;  %v6000_v3 = vadd.f32 %v5999_v47, %v5910_v1  ;;  %v5254_v47 = vadd.f32 %v11020_v56, %v10963_v54  ;;  %v7610_v37 = vmul.f32 -1.442695, %v5297_v46 }
 0x8ae   : > { %6504 = vrot.lane.b32.xlu1 %v8410_v16, %s8504_s27  ;;  %v6001_v7 = vpop.f32.mrf.mxu1  ;;  %v5305_v54 = vadd.f32 %v11020_v56, %v11013_v24 }
 0x8af   : > { %8413 = vpow2.f32 %v7650_v13  ;;  %v6024_v0 = vadd.f32 %v11020_v56, %v6000_v3  ;;  %v5302_v3 = vadd.f32 %v11020_v56, %v11009_v12  ;;  %v7599_v7 = vmul.f32 -1.442695, %v5254_v47 }
 0x8b0   : > { %v6002_v57 = vpop.f32.mrf.mxu1  ;;  %v5262_v12 = vadd.f32 %v11020_v56, %v10969_v33  ;;  %v7612_v36 = vmul.f32 -1.442695, %v5305_v54 }
 0x8b1   : > { %v7651_v28 = vmul.f32 -1.442695, %v6024_v0  ;;  %v6003_v38 = vadd.f32 %v6002_v57, %v5913_v43 }
 0x8b2   : > { %v6004_v63 = vpop.f32.mrf.mxu1  ;;  %v7601_v24 = vmul.f32 -1.442695, %v5262_v12 }
 0x8b3   : > { %8415 = vpow2.f32 %v7651_v28  ;;  %v6025_v19 = vadd.f32 %v11020_v56, %v6003_v38  ;;  %v7611_v38 = vmul.f32 -1.442695, %v5302_v3 }
 0x8b4   : > { %v6007_v17 = vpop.f32.mrf.mxu1 }
 0x8b5   : > { %v7652_v18 = vmul.f32 -1.442695, %v6025_v19  ;;  %v6008_v41 = vadd.f32 %v6007_v17, %v5918_v8  ;;  %v7600_v19 = vmul.f32 -1.442695, %v5257_v14 }
 0x8b6   : > { %v6009_v10 = vpop.f32.mrf.mxu1 }
 0x8b7   : > { %8417 = vpow2.f32 %v7652_v18  ;;  %v6026_v60 = vadd.f32 %v11020_v56, %v6008_v41 }
 0x8b8   : > { %v8412_v55 = vpop.eup %8411  ;;  %v6010_v15 = vpop.f32.mrf.mxu1 }
 0x8b9   : > { %v6330_v58 = vadd.f32 1.0, %v8412_v55  ;;  %v7653_v20 = vmul.f32 -1.442695, %v6026_v60  ;;  %v6011_v1 = vadd.f32 %v6010_v15, %v5921_v35  ;;  %v5289_v35 = vadd.f32 %v11020_v56, %v10997_v4  ;;  %v8491_v55 = vld [vmem:[%s11307_s17] ss:$0 sm:$0xff] }
 0x8ba   : > { %v6012_v31 = vpop.f32.mrf.mxu1  ;;  %v5265_v33 = vadd.f32 %v8491_v55, %v10973_v22  ;;  %v5273_v22 = vadd.f32 %v8491_v55, %v10981_v25  ;;  %v5278_v61 = vadd.f32 %v8491_v55, %v10985_v26  ;;  %v5281_v53 = vadd.f32 %v8491_v55, %v10989_v6 }
 0x8bb   : > { %8419 = vrcp.f32 %v6330_v58  ;;  %v6027_v39 = vadd.f32 %v11020_v56, %v6011_v1  ;;  %v7608_v50 = vmul.f32 -1.442695, %v5289_v35 }
 0x8bc   : > { %v8414_v11 = vpop.eup %8413  ;;  %8421 = vpow2.f32 %v7653_v20  ;;  %v5270_v20 = vadd.f32 %v8491_v55, %v10977_v59  ;;  %v7602_v1 = vmul.f32 -1.442695, %v5265_v33 }
 0x8bd   : > { %v6331_v42 = vadd.f32 1.0, %v8414_v11  ;;  %v7654_v43 = vmul.f32 -1.442695, %v6027_v39 }
 0x8bf   : > { %8423 = vrcp.f32 %v6331_v42 }
 0x8c0   : > { %v8416_v30 = vpop.eup %8415  ;;  %8425 = vpow2.f32 %v7654_v43 }
 0x8c1   : > { %v6332_v52 = vadd.f32 1.0, %v8416_v30  ;;  %v7603_v30 = vmul.f32 -1.442695, %v5270_v20 }
 0x8c3   : > { %8427 = vrcp.f32 %v6332_v52 }
 0x8c4   : > { %v8418_v23 = vpop.eup %8417 }
 0x8c5   : > { %v6333_v2 = vadd.f32 1.0, %v8418_v23 }
 0x8c7   : > { %8429 = vrcp.f32 %v6333_v2 }
 0x8c8   : > { %v8420_v8 = vpop.eup %8419 }
 0x8c9   : > { %v8422_v44 = vpop.eup %8421  ;;  %6506 = vrot.lane.b32.xlu0 %v8420_v8, %s8504_s27  ;;  %v11120_v48 = vpop.permute.xlu0 %6434 }
 0x8ca   : > { %v6334_v32 = vadd.f32 1.0, %v8422_v44 }
 0x8cc   : > { %v8424_v40 = vpop.eup %8423  ;;  %8431 = vrcp.f32 %v6334_v32  ;;  %v11118_v45 = vpop.permute.xlu1 %6378  ;;  %v7604_v32 = vmul.f32 -1.442695, %v5273_v22 }
 0x8cd   : > { %v8426_v27 = vpop.eup %8425  ;;  %6508 = vrot.lane.b32.xlu1 %v8424_v40, %s8504_s27 }
 0x8ce   : > { %v6335_v51 = vadd.f32 1.0, %v8426_v27 }
 0x8d0   : > { %v8428_v9 = vpop.eup %8427  ;;  %8433 = vrcp.f32 %v6335_v51  ;;  %v11123_v5 = vpop.permute.xlu1 %6436 }
 0x8d1   : > { %8435 = vpow2.f32 %v7607_v34  ;;  %v11127_v4 = vpop.permute.xlu0 %6438  ;;  %6510 = vrot.lane.b32.xlu0 %v8428_v9, %s8504_s27 }
 0x8d2   : > { %8437 = vpow2.f32 %v7608_v50  ;;  %v7605_v50 = vmul.f32 -1.442695, %v5278_v61 }
 0x8d3   : > { %8439 = vpow2.f32 %v7609_v29 }
 0x8d4   : > { %v8430_v62 = vpop.eup %8429  ;;  %v11132_v21 = vpop.permute.xlu1 %6380  ;;  %8441 = vpow2.f32 %v7610_v37 }
 0x8d5   : > { %v11134_v49 = vpop.permute.xlu0 %6382  ;;  %6512 = vrot.lane.b32.xlu1 %v8430_v62, %s8504_s27  ;;  %8443 = vpow2.f32 %v7599_v7  ;;  %v7606_v7 = vmul.f32 -1.442695, %v5281_v53 }
 0x8d6   : > { %8445 = vpow2.f32 %v7611_v38 }
 0x8d7   : > { %8447 = vpow2.f32 %v7600_v19 }
 0x8d8   : > { %v11139_v16 = vpop.permute.xlu1 %6440  ;;  %8449 = vpow2.f32 %v7612_v36 }
 0x8d9   : > { %v8432_v13 = vpop.eup %8431 }
 0x8da   : > { %6514 = vrot.lane.b32.xlu0 %v8432_v13, %s8504_s27  ;;  %v11146_v0 = vpop.permute.xlu0 %6442 }
 0x8dc   : > { %v11150_v57 = vpop.permute.xlu1 %6384 }
 0x8dd   : > { %v8434_v28 = vpop.eup %8433 }
 0x8de   : > { %v8436_v63 = vpop.eup %8435  ;;  %v11154_v17 = vpop.permute.xlu0 %6386  ;;  %6516 = vrot.lane.b32.xlu1 %v8434_v28, %s8504_s27 }
 0x8df   : > { %v8438_v41 = vpop.eup %8437  ;;  %v6078_v10 = vadd.f32 1.0, %v8436_v63 }
 0x8e0   : > { %v11157_v18 = vpop.permute.xlu1 %6444  ;;  %v6079_v56 = vadd.f32 1.0, %v8438_v41  ;;  %v8440_v58 = vpop.eup %8439 }
 0x8e1   : > { %8451 = vrcp.f32 %v6078_v10  ;;  %v8442_v11 = vpop.eup %8441  ;;  %v6080_v42 = vadd.f32 1.0, %v8440_v58 }
 0x8e2   : > { %v11159_v60 = vpop.permute.xlu0 %6446  ;;  %8453 = vpow2.f32 %v7601_v24  ;;  %v8444_v43 = vpop.eup %8443  ;;  %v6081_v52 = vadd.f32 1.0, %v8442_v11 }
 0x8e3   : > { %8455 = vrcp.f32 %v6079_v56  ;;  %v8446_v2 = vpop.eup %8445  ;;  %v6070_v8 = vadd.f32 1.0, %v8444_v43 }
 0x8e4   : > { %v11165_v15 = vpop.permute.xlu1 %6388  ;;  %8457 = vpow2.f32 %v7602_v1  ;;  %v8448_v44 = vpop.eup %8447  ;;  %v6082_v35 = vadd.f32 1.0, %v8446_v2 }
 0x8e5   : > { %8459 = vrcp.f32 %v6080_v42  ;;  %v8450_v40 = vpop.eup %8449  ;;  %v6071_v51 = vadd.f32 1.0, %v8448_v44 }
 0x8e6   : > { %v11168_v31 = vpop.permute.xlu0 %6390  ;;  %8461 = vpow2.f32 %v7603_v30  ;;  %v6083_v46 = vadd.f32 1.0, %v8450_v40 }
 0x8e7   : > { %8463 = vrcp.f32 %v6081_v52 }
 0x8e8   : > { %v11170_v39 = vpop.permute.xlu1 %6448  ;;  %8465 = vrcp.f32 %v6070_v8 }
 0x8e9   : > { %8467 = vpow2.f32 %v7604_v32 }
 0x8ea   : > { %8469 = vrcp.f32 %v6082_v35 }
 0x8eb   : > { %8471 = vrcp.f32 %v6071_v51 }
 0x8ec   : > { %v11173_v23 = vpop.permute.xlu1 %6392  ;;  %8473 = vpow2.f32 %v7605_v50 }
 0x8ed   : > { %8475 = vrcp.f32 %v6083_v46 }
 0x8ee   : > { %v8452_v34 = vpop.eup %8451 }
 0x8ef   : > { %v6451_v59 = vpop.permute.xlu0 %6450  ;;  %v8454_v9 = vpop.eup %8453 }
 0x8f0   : > { %v8456_v29 = vpop.eup %8455  ;;  %v6072_v37 = vadd.f32 1.0, %v8454_v9 }
 0x8f1   : > { %v6453_v27 = vpop.permute.xlu1 %6452  ;;  %v8458_v14 = vpop.eup %8457 }
 0x8f2   : > { %v8460_v28 = vpop.eup %8459  ;;  %8477 = vrcp.f32 %v6072_v37  ;;  %v6073_v12 = vadd.f32 1.0, %v8458_v14 }
 0x8f3   : > { %v6395_v25 = vpop.permute.xlu0 %6394  ;;  %8479 = vpow2.f32 %v7606_v7  ;;  %v8462_v19 = vpop.eup %8461 }
 0x8f4   : > { %v6541_v62 = vsel %vm6532_vm4, %v8452_v34, %v6395_v25  ;;  %v8464_v41 = vpop.eup %8463  ;;  %8481 = vrcp.f32 %v6073_v12  ;;  %v6074_v58 = vadd.f32 1.0, %v8462_v19 }
 0x8f5   : > { %v11179_v26 = vsel %vm6547_vm5, %v6541_v62, %v6451_v59  ;;  %v6397_v47 = vpop.permute.xlu1 %6396  ;;  %v8466_v33 = vpop.eup %8465 }
 0x8f6   : > { %v6542_v3 = vsel %vm6532_vm4, %v8456_v29, %v6397_v47  ;;  %v8468_v20 = vpop.eup %8467  ;;  %v6533_v30 = vsel %vm6532_vm4, %v8466_v33, %v11118_v45  ;;  %8483 = vrcp.f32 %v6074_v58 }
 0x8f7   : > { %v6455_v13 = vpop.permute.xlu0 %6454  ;;  %v11183_v6 = vsel %vm6547_vm5, %v6542_v3, %v6453_v27  ;;  %v8470_v11 = vpop.eup %8469  ;;  %v6075_v2 = vadd.f32 1.0, %v8468_v20  ;;  %v6548_v32 = vsel %vm6547_vm5, %v6533_v30, %v11120_v48 }
 0x8f8   : > { %v8472_v43 = vpop.eup %8471 }
 0x8f9   : > { %v6457_v54 = vpop.permute.xlu1 %6456  ;;  %v8474_v52 = vpop.eup %8473  ;;  %v6534_v61 = vsel %vm6532_vm4, %v8472_v43, %v11132_v21  ;;  %8485 = vrcp.f32 %v6075_v2 }
 0x8fa   : > { %v8476_v59 = vpop.eup %8475  ;;  %v6076_v51 = vadd.f32 1.0, %v8474_v52  ;;  %v6549_v50 = vsel %vm6547_vm5, %v6534_v61, %v11123_v5 }
 0x8fb   : > { %v6399_v38 = vpop.permute.xlu0 %6398 }
 0x8fc   : > { %v6543_v63 = vsel %vm6532_vm4, %v8460_v28, %v6399_v38  ;;  %8487 = vrcp.f32 %v6076_v51 }
 0x8fd   : > { %v11187_v36 = vsel %vm6547_vm5, %v6543_v63, %v6455_v13  ;;  %v6401_v10 = vpop.permute.xlu1 %6400 }
 0x8fe   : > { %v6544_v55 = vsel %vm6532_vm4, %v8464_v41, %v6401_v10 }
 0x8ff   : > { %v6459_v24 = vpop.permute.xlu0 %6458  ;;  %v11191_v56 = vsel %vm6547_vm5, %v6544_v55, %v6457_v54  ;;  %v8478_v35 = vpop.eup %8477 }
 0x900   : > { %v8480_v21 = vpop.eup %8479  ;;  %v6535_v9 = vsel %vm6532_vm4, %v8478_v35, %v11134_v49 }
 0x901   : > { %v6461_v1 = vpop.permute.xlu1 %6460  ;;  %v6077_v62 = vadd.f32 1.0, %v8480_v21  ;;  %v6550_v47 = vsel %vm6547_vm5, %v6535_v9, %v11127_v4  ;;  %v8482_v37 = vpop.eup %8481 }
 0x902   : > { %v6536_v13 = vsel %vm6532_vm4, %v8482_v37, %v11150_v57 }
 0x903   : > { %v6403_v42 = vpop.permute.xlu0 %6402  ;;  %8489 = vrcp.f32 %v6077_v62  ;;  %v8484_v3 = vpop.eup %8483  ;;  %v6551_v14 = vsel %vm6547_vm5, %v6536_v13, %v11139_v16 }
 0x904   : > { %v6545_v22 = vsel %vm6532_vm4, %v8470_v11, %v6403_v42  ;;  %v6537_v54 = vsel %vm6532_vm4, %v8484_v3, %v11154_v17 }
 0x905   : > { %v11198_v8 = vsel %vm6547_vm5, %v6545_v22, %v6459_v24  ;;  %v6405_v44 = vpop.permute.xlu1 %6404  ;;  %v6552_v63 = vsel %vm6547_vm5, %v6537_v54, %v11146_v0 }
 0x906   : > { %v6546_v40 = vsel %vm6532_vm4, %v8476_v59, %v6405_v44  ;;  %v8486_v57 = vpop.eup %8485 }
 0x907   : > { %v6491_v45 = vpop.permute.xlu0 %6490  ;;  %v11212_v34 = vsel %vm6547_vm5, %v6546_v40, %v6461_v1  ;;  %v6538_v19 = vsel %vm6532_vm4, %v8486_v57, %v11165_v15 }
 0x908   : > { %v6563_v27 = vsel %vm6562_vm6, %v6548_v32, %v6491_v45  ;;  %v6553_v10 = vsel %vm6547_vm5, %v6538_v19, %v11157_v18 }
 0x909   : > { %v6578_v25 = vsel %vm6577_vm7, %v6563_v27, 0.0  ;;  %v6493_v48 = vpop.permute.xlu1 %6492  ;;  %v8488_v17 = vpop.eup %8487 }
 0x90a   : > { %6592 = vst [vmem:[%s11205_s21] sm:$0xff] %v6578_v25  ;;  %v6564_v53 = vsel %vm6562_vm6, %v6549_v50, %v6493_v48  ;;  %v6539_v24 = vsel %vm6532_vm4, %v8488_v17, %v11168_v31 }
 0x90b   : > { %v6579_v46 = vsel %vm6577_vm7, %v6564_v53, 0.0  ;;  %v6554_v20 = vsel %vm6547_vm5, %v6539_v24, %v11159_v60 }
 0x90c   : > { %6593 = vst [vmem:[%s11205_s21 + $0x8] sm:$0xff] %v6579_v46  ;;  %v6495_v29 = vpop.permute.xlu0 %6494 }
 0x90d   : > { %v6565_v49 = vsel %vm6562_vm6, %v6550_v47, %v6495_v29 }
 0x90e   : > { %v6580_v5 = vsel %vm6577_vm7, %v6565_v49, 0.0 }
 0x90f   : > { %6594 = vst [vmem:[%s11205_s21 + $0x10] sm:$0xff] %v6580_v5 }
 0x910   : > { %v8490_v15 = vpop.eup %8489 }
 0x911   : > { %v6497_v7 = vpop.permute.xlu1 %6496  ;;  %v6540_v33 = vsel %vm6532_vm4, %v8490_v15, %v11173_v23 }
 0x912   : > { %v6566_v4 = vsel %vm6562_vm6, %v6551_v14, %v6497_v7  ;;  %v6555_v11 = vsel %vm6547_vm5, %v6540_v33, %v11170_v39 }
 0x913   : > { %v6581_v28 = vsel %vm6577_vm7, %v6566_v4, 0.0 }
 0x914   : > { %6595 = vst [vmem:[%s11205_s21 + $0x18] sm:$0xff] %v6581_v28 }
 0x915   : > { %v6499_v38 = vpop.permute.xlu0 %6498 }
 0x916   : > { %v6567_v12 = vsel %vm6562_vm6, %v6552_v63, %v6499_v38 }
 0x917   : > { %v6582_v16 = vsel %vm6577_vm7, %v6567_v12, 0.0 }
 0x918   : > { %6596 = vst [vmem:[%s11205_s21 + $0x20] sm:$0xff] %v6582_v16 }
 0x919   : > { %v6501_v41 = vpop.permute.xlu1 %6500 }
 0x91a   : > { %v6568_v0 = vsel %vm6562_vm6, %v6553_v10, %v6501_v41 }
 0x91b   : > { %v6583_v55 = vsel %vm6577_vm7, %v6568_v0, 0.0 }
 0x91c   : > { %6597 = vst [vmem:[%s11205_s21 + $0x28] sm:$0xff] %v6583_v55 }
 0x91d   : > { %v6503_v58 = vpop.permute.xlu0 %6502 }
 0x91e   : > { %v6569_v18 = vsel %vm6562_vm6, %v6554_v20, %v6503_v58 }
 0x91f   : > { %v6584_v1 = vsel %vm6577_vm7, %v6569_v18, 0.0 }
 0x920   : > { %6598 = vst [vmem:[%s11205_s21 + $0x30] sm:$0xff] %v6584_v1  ;;  %v6505_v31 = vpop.permute.xlu1 %6504 }
 0x921   : > { %v6570_v42 = vsel %vm6562_vm6, %v6555_v11, %v6505_v31 }
 0x922   : > { %v6585_v43 = vsel %vm6577_vm7, %v6570_v42, 0.0 }
 0x923   : > { %6599 = vst [vmem:[%s11205_s21 + $0x38] sm:$0xff] %v6585_v43 }
 0x93b   : > { %v6507_v23 = vpop.permute.xlu0 %6506 }
 0x93c   : > { %v6571_v60 = vsel %vm6562_vm6, %v11179_v26, %v6507_v23 }
 0x93d   : > { %v6586_v30 = vsel %vm6577_vm7, %v6571_v60, 0.0 }
 0x93e   : > { %6600 = vst [vmem:[%s11205_s21 + $0x40] sm:$0xff] %v6586_v30 }
 0x93f   : > { %v6509_v22 = vpop.permute.xlu1 %6508 }
 0x940   : > { %v6572_v52 = vsel %vm6562_vm6, %v11183_v6, %v6509_v22 }
 0x941   : > { %v6587_v39 = vsel %vm6577_vm7, %v6572_v52, 0.0 }
 0x942   : > { %6601 = vst [vmem:[%s11205_s21 + $0x48] sm:$0xff] %v6587_v39 }
 0x943   : > { %v6511_v2 = vpop.permute.xlu0 %6510 }
 0x944   : > { %v6573_v59 = vsel %vm6562_vm6, %v11187_v36, %v6511_v2 }
 0x945   : > { %v6588_v44 = vsel %vm6577_vm7, %v6573_v59, 0.0 }
 0x946   : > { %6602 = vst [vmem:[%s11205_s21 + $0x50] sm:$0xff] %v6588_v44 }
 0x947   : > { %v6513_v26 = vpop.permute.xlu1 %6512 }
 0x948   : > { %v6574_v61 = vsel %vm6562_vm6, %v11191_v56, %v6513_v26 }
 0x949   : > { %v6589_v45 = vsel %vm6577_vm7, %v6574_v61, 0.0 }
 0x94a   : > { %6603 = vst [vmem:[%s11205_s21 + $0x58] sm:$0xff] %v6589_v45 }
 0x94c   : > { %v6515_v32 = vpop.permute.xlu0 %6514 }
 0x94d   : > { %v6575_v6 = vsel %vm6562_vm6, %v11198_v8, %v6515_v32 }
 0x94e   : > { %v6590_v40 = vsel %vm6577_vm7, %v6575_v6, 0.0 }
 0x94f   : > { %6604 = vst [vmem:[%s11205_s21 + $0x60] sm:$0xff] %v6590_v40 }
 0x950   : > { %v6517_v35 = vpop.permute.xlu1 %6516 }
 0x951   : > { %v6576_v36 = vsel %vm6562_vm6, %v11212_v34, %v6517_v35 }
 0x952   : > { %v6591_v27 = vsel %vm6577_vm7, %v6576_v36, 0.0 }
 0x953   : > { %6605 = vst [vmem:[%s11205_s21 + $0x68] sm:$0xff] %v6591_v27 }
 0x954 PF: > { %s30_s0 = sadd.s32 1, %s8498_s0  }
 0x955   : > { %p27_p4 = scmp.ge.s32.totalorder %s30_s0, 4  }
 0x957   :  { %29 = sbr.rel (!%p27_p4) target bundleno = 5 (0x5), region = 155 }

</bundles_post_ra>
